<compile_context>
chip_gen: v7x
topology: tpu7x:2x2x1
jax: 0.10.0
libtpu: 0.0.40
codegen_flags: <defaults>
</compile_context>

<pallas_src>
import jax
import jax.numpy as jnp
from jax.experimental import pallas as pl
from jax.experimental.pallas import tpu as pltpu

# ---- model constants (Linear(288,10) implies 28x28 MNIST input) -------------
C1, C2 = 16, 32          # conv channel counts
K1, K2 = 8, 4            # conv kernel sizes
IMG = 28                 # input spatial
H1 = (IMG - K1) // 2 + 1 # 11 : conv1 output spatial
P1 = H1 - 1              # 10 : pool1 output spatial
H2 = (P1 - K2) // 2 + 1  # 4  : conv2 output spatial
P2 = H2 - 1              # 3  : pool2 output spatial
NCLS = 10
NOUT = 128               # lane-padded logits width (lane-dense output store)

L1 = H1 * C1             # 176 : conv1 row lanes, (ow, c) merged
LP1 = P1 * C1            # 160 : pool1 row lanes, (ow, c) merged
KIN1 = K1 * IMG          # 224 : conv1 banded-matmul contraction depth
KIN2 = K2 * LP1          # 640 : conv2 banded-matmul contraction depth
L2 = H2 * C2             # 128 : conv2 row lanes, (ow2, co) merged
FLAT = P2 * P2 * C2      # 288 : flattened features


def _classifier_kernel(x_ref, w1_ref, b1_ref, w2_ref, b2_ref, w3_ref, b3_ref,
                       o_ref, p1_ref):
    # Weights / biases stay VMEM-resident (constant index_map); load once.
    w1 = w1_ref[...]                       # (224, 176)
    b1 = b1_ref[...]                       # (1, 176)

    # ---- Conv1 (1->16, 8x8, stride 2) + ReLU: one MXU matmul per output row.
    # x lanes = ih*28+iw; row oh needs input rows 2*oh..2*oh+7 = one contiguous
    # 224-lane slice.  Output lanes = ow*16 + c (lane-dense, 176 wide).
    def conv1_row(oh):
        xr = x_ref[:, 2 * IMG * oh: 2 * IMG * oh + KIN1]        # (TB, 224)
        a = jnp.dot(xr, w1, preferred_element_type=jnp.float32) + b1
        return jnp.maximum(a, 0.0)                              # (TB, 176)

    # ---- MaxPool2d(2, stride 1): 11x11 -> 10x10, keeping only 2 conv rows live.
    prev = conv1_row(0)
    for y in range(P1):                                         # static unroll
        nxt = conv1_row(y + 1)
        vm = jnp.maximum(prev, nxt)                             # vertical max
        p1_ref[y] = jnp.maximum(vm[:, :LP1], vm[:, C1:L1])      # horizontal max
        prev = nxt

    # ---- Conv2 (16->32, 4x4, stride 2) + ReLU: one banded matmul per output
    # row; contraction lane = kh*160 + ow*16 + ci, output lanes = ow2*32 + co.
    w2 = w2_ref[...]                       # (640, 128)
    b2 = b2_ref[...]                       # (1, 128)
    out2 = []
    for oh2 in range(H2):                                       # static unroll
        arow = jnp.concatenate(
            [p1_ref[2 * oh2 + kh] for kh in range(K2)], axis=1)  # (TB, 640)
        z = jnp.dot(arow, w2, preferred_element_type=jnp.float32) + b2
        out2.append(jnp.maximum(z, 0.0))                        # (TB, 128)

    # ---- MaxPool2d(2, stride 1): 4x4 -> 3x3, then Flatten in (h, w, c) order
    # (the Linear weight rows were pre-permuted to match in the wrapper).
    rows = []
    for h in range(P2):                                         # static unroll
        vm = jnp.maximum(out2[h], out2[h + 1])                  # (TB, 128)
        rows.append(jnp.maximum(vm[:, :P2 * C2], vm[:, C2:H2 * C2]))  # (TB, 96)
    flat = jnp.concatenate(rows, axis=1)                        # (TB, 288)

    # ---- Linear(288, 10 padded to 128) + LogSoftmax(dim=1).
    logits = jnp.dot(flat, w3_ref[...],
                     preferred_element_type=jnp.float32) + b3_ref[...]
    m = jnp.max(logits, axis=1, keepdims=True)
    e = jnp.exp(logits - m)
    s = jnp.sum(e, axis=1, keepdims=True)
    o_ref[...] = (logits - m) - jnp.log(s)                      # (TB, 128)


def _prep_params(params):
    """Pre-permute / band-expand weights once so every kernel op is lane-dense."""
    w1 = params["w1"].astype(jnp.float32).reshape(C1, K1, K1)    # (c, kh, kw)
    w2 = params["w2"].astype(jnp.float32)                        # (co, ci, kh, kw)
    w3 = params["w3"].astype(jnp.float32)                        # (10, 288)

    # Conv1 banded weight: W1[kh*28+iw, ow*16+c] = w1[c,kh,iw-2*ow] (band else 0)
    w1t = jnp.transpose(w1, (1, 2, 0))                           # (kh, kw, c)
    W1 = jnp.zeros((K1, IMG, H1, C1), jnp.float32)
    for ow in range(H1):
        W1 = W1.at[:, 2 * ow: 2 * ow + K1, ow, :].set(w1t)
    W1 = W1.reshape(KIN1, L1)                                    # (224, 176)
    B1 = jnp.tile(params["b1"].astype(jnp.float32), H1).reshape(1, L1)

    # Conv2 banded weight: W2[kh*160+ow*16+ci, ow2*32+co] = w2[co,ci,kh,ow-2*ow2]
    w2t = jnp.transpose(w2, (2, 3, 1, 0))                        # (kh, kw, ci, co)
    W2 = jnp.zeros((K2, P1, C1, H2, C2), jnp.float32)
    for ow2 in range(H2):
        W2 = W2.at[:, 2 * ow2: 2 * ow2 + K2, :, ow2, :].set(w2t)
    W2 = W2.reshape(KIN2, L2)                                    # (640, 128)
    B2 = jnp.tile(params["b2"].astype(jnp.float32), H2).reshape(1, L2)

    # Linear: permute PyTorch (c,h,w) flatten order -> our (h,w,c); pad to 128
    # lanes with zero weights and -1e30 bias so log-softmax ignores pad lanes.
    w3p = jnp.transpose(w3.reshape(NCLS, C2, P2, P2),
                        (2, 3, 1, 0)).reshape(FLAT, NCLS)        # (288, 10)
    W3 = jnp.zeros((FLAT, NOUT), jnp.float32).at[:, :NCLS].set(w3p)
    B3 = jnp.full((1, NOUT), -1e30, jnp.float32).at[0, :NCLS].set(
        params["b3"].astype(jnp.float32))
    return W1, B1, W2, B2, W3, B3


def _pick_tb(n):
    # Target 256 rows/step (fills the 256-tall MXU on v6e/v7x); shrink for small
    # batches so the grid keeps >=2 steps when possible (v7x has 2 TensorCores).
    tb = 256
    while tb > 8 and n < 2 * tb:
        tb //= 2
    return tb


@jax.jit
def classifier_forward(x_nchw, params):
    n = x_nchw.shape[0]
    W1, B1, W2, B2, W3, B3 = _prep_params(params)

    tb = _pick_tb(n)
    npad = -(-n // tb) * tb
    x = x_nchw[:, 0].astype(jnp.float32).reshape(n, IMG * IMG)   # lane-dense (N,784)
    if npad != n:
        x = jnp.pad(x, ((0, npad - n), (0, 0)))

    out = pl.pallas_call(
        _classifier_kernel,
        out_shape=jax.ShapeDtypeStruct((npad, NOUT), jnp.float32),
        grid_spec=pltpu.PrefetchScalarGridSpec(
            num_scalar_prefetch=0,
            grid=(npad // tb,),
            in_specs=[
                pl.BlockSpec((tb, IMG * IMG), lambda b: (b, 0)),   # input block
                pl.BlockSpec((KIN1, L1), lambda b: (0, 0)),        # conv1 weight
                pl.BlockSpec((1, L1), lambda b: (0, 0)),           # conv1 bias
                pl.BlockSpec((KIN2, L2), lambda b: (0, 0)),        # conv2 weight
                pl.BlockSpec((1, L2), lambda b: (0, 0)),           # conv2 bias
                pl.BlockSpec((FLAT, NOUT), lambda b: (0, 0)),      # linear weight
                pl.BlockSpec((1, NOUT), lambda b: (0, 0)),         # linear bias
            ],
            out_specs=pl.BlockSpec((tb, NOUT), lambda b: (b, 0)),
            scratch_shapes=[
                pltpu.VMEM((P1, tb, LP1), jnp.float32),            # pool1 rows
            ],
        ),
        compiler_params=pltpu.CompilerParams(
            dimension_semantics=("parallel",)),
    )(x, W1, B1, W2, B2, W3, B3)
    return out[:n, :NCLS]


def _reference_forward(x_nchw, params):
    """Pure-JAX/XLA reference with PyTorch semantics (for validation only)."""
    y = jax.lax.conv_general_dilated(
        x_nchw, params["w1"], window_strides=(2, 2), padding="VALID",
        dimension_numbers=("NCHW", "OIHW", "NCHW"))
    y = jnp.maximum(y + params["b1"].reshape(1, C1, 1, 1), 0.0)
    y = jax.lax.reduce_window(y, -jnp.inf, jax.lax.max,
                              (1, 1, 2, 2), (1, 1, 1, 1), "VALID")
    y = jax.lax.conv_general_dilated(
        y, params["w2"], window_strides=(2, 2), padding="VALID",
        dimension_numbers=("NCHW", "OIHW", "NCHW"))
    y = jnp.maximum(y + params["b2"].reshape(1, C2, 1, 1), 0.0)
    y = jax.lax.reduce_window(y, -jnp.inf, jax.lax.max,
                              (1, 1, 2, 2), (1, 1, 1, 1), "VALID")
    y = y.reshape(y.shape[0], -1)                   # (N, 288), (c, h, w) order
    y = y @ params["w3"].T + params["b3"]
    return jax.nn.log_softmax(y, axis=1)


if __name__ == "__main__":
    key = jax.random.PRNGKey(0)
    k1, k2, k3, k4, k5, k6, kx = jax.random.split(key, 7)

    params = {
        "w1": 0.1 * jax.random.normal(k1, (16, 1, 8, 8), jnp.float32),
        "b1": 0.1 * jax.random.normal(k2, (16,), jnp.float32),
        "w2": 0.1 * jax.random.normal(k3, (32, 16, 4, 4), jnp.float32),
        "b2": 0.1 * jax.random.normal(k4, (32,), jnp.float32),
        "w3": 0.1 * jax.random.normal(k5, (10, 288), jnp.float32),
        "b3": 0.1 * jax.random.normal(k6, (10,), jnp.float32),
    }
    # MNIST-shaped input (Linear(288,10) implies 28x28); batch=2, NCHW.
    x = jax.random.normal(kx, (2, 1, 28, 28), jnp.float32)

    out = jax.block_until_ready(classifier_forward(x, params))
    assert out.shape == (2, 10), out.shape
    assert bool(jnp.all(jnp.isfinite(out)))
    # log-softmax rows exponentiate-sum to 1
    assert jnp.allclose(jnp.exp(out).sum(axis=1), 1.0, atol=1e-4)
    # match the XLA reference (tolerance covers default-precision MXU rounding
    # on both paths; real layout/indexing bugs give O(1) errors).
    ref = jax.block_until_ready(_reference_forward(x, params))
    assert jnp.allclose(out, ref, atol=2e-2, rtol=0.0), float(
        jnp.max(jnp.abs(out - ref)))
    print("KERNEL_OK")
</pallas_src>

<mosaic_0001>
module attributes {stable_mosaic.version = 11 : i64} {
  func.func @_classifier_kernel(%arg0: i32, %arg1: memref<8x784xf32, #tpu.memory_space<vmem>>, %arg2: memref<224x176xf32, #tpu.memory_space<vmem>>, %arg3: memref<1x176xf32, #tpu.memory_space<vmem>>, %arg4: memref<640x128xf32, #tpu.memory_space<vmem>>, %arg5: memref<1x128xf32, #tpu.memory_space<vmem>>, %arg6: memref<288x128xf32, #tpu.memory_space<vmem>>, %arg7: memref<1x128xf32, #tpu.memory_space<vmem>>, %arg8: memref<8x128xf32, #tpu.memory_space<vmem>>, %arg9: memref<10x8x160xf32, #tpu.memory_space<vmem>>) attributes {dimension_semantics = [#tpu.dimension_semantics<parallel>], iteration_bounds = array<i64: 1>, scalar_prefetch = 0 : i64, scratch_operands = 1 : i64, tpu.core_type = #tpu.core_type<tc>, window_params = [{transform_indices = @transform_0, window_bounds = array<i64: 8, 784>}, {pipeline_mode = #tpu.pipeline_mode<synchronous>, transform_indices = @transform_1, window_bounds = array<i64: 224, 176>}, {pipeline_mode = #tpu.pipeline_mode<synchronous>, transform_indices = @transform_2, window_bounds = array<i64: 1, 176>}, {pipeline_mode = #tpu.pipeline_mode<synchronous>, transform_indices = @transform_3, window_bounds = array<i64: 640, 128>}, {pipeline_mode = #tpu.pipeline_mode<synchronous>, transform_indices = @transform_4, window_bounds = array<i64: 1, 128>}, {pipeline_mode = #tpu.pipeline_mode<synchronous>, transform_indices = @transform_5, window_bounds = array<i64: 288, 128>}, {pipeline_mode = #tpu.pipeline_mode<synchronous>, transform_indices = @transform_6, window_bounds = array<i64: 1, 128>}, {transform_indices = @transform_7, window_bounds = array<i64: 8, 128>}]} {
    %c0 = arith.constant 0 : index
    %c0_0 = arith.constant 0 : index
    %0 = vector.load %arg2[%c0, %c0_0] : memref<224x176xf32, #tpu.memory_space<vmem>>, vector<224x176xf32>
    %c0_1 = arith.constant 0 : index
    %c0_2 = arith.constant 0 : index
    %1 = vector.load %arg3[%c0_1, %c0_2] : memref<1x176xf32, #tpu.memory_space<vmem>>, vector<1x176xf32>
    %c0_3 = arith.constant 0 : index
    %c0_4 = arith.constant 0 : index
    %2 = vector.load %arg1[%c0_3, %c0_4] : memref<8x784xf32, #tpu.memory_space<vmem>>, vector<8x224xf32>
    %cst = arith.constant dense<0.000000e+00> : vector<8x176xf32>
    %3 = tpu.matmul %2, %0, %cst {dimension_numbers = #tpu.dot_dimension_numbers<[1], [0], [0], [1], [0, 0, 1, 1], [], []>} : vector<8x224xf32>, vector<224x176xf32>, vector<8x176xf32> -> vector<8x176xf32>
    %4 = vector.broadcast %1 : vector<1x176xf32> to vector<8x176xf32>
    %5 = arith.addf %3, %4 : vector<8x176xf32>
    %cst_5 = arith.constant 0.000000e+00 : f32
    %6 = vector.broadcast %cst_5 : f32 to vector<8x176xf32>
    %7 = arith.maximumf %5, %6 : vector<8x176xf32>
    %c0_6 = arith.constant 0 : index
    %c56 = arith.constant 56 : index
    %8 = vector.load %arg1[%c0_6, %c56] : memref<8x784xf32, #tpu.memory_space<vmem>>, vector<8x224xf32>
    %cst_7 = arith.constant dense<0.000000e+00> : vector<8x176xf32>
    %9 = tpu.matmul %8, %0, %cst_7 {dimension_numbers = #tpu.dot_dimension_numbers<[1], [0], [0], [1], [0, 0, 1, 1], [], []>} : vector<8x224xf32>, vector<224x176xf32>, vector<8x176xf32> -> vector<8x176xf32>
    %10 = vector.broadcast %1 : vector<1x176xf32> to vector<8x176xf32>
    %11 = arith.addf %9, %10 : vector<8x176xf32>
    %cst_8 = arith.constant 0.000000e+00 : f32
    %12 = vector.broadcast %cst_8 : f32 to vector<8x176xf32>
    %13 = arith.maximumf %11, %12 : vector<8x176xf32>
    %14 = arith.maximumf %7, %13 : vector<8x176xf32>
    %15 = vector.extract_strided_slice %14 {offsets = [0, 0], sizes = [8, 160], strides = [1, 1]} : vector<8x176xf32> to vector<8x160xf32>
    %16 = vector.extract_strided_slice %14 {offsets = [0, 16], sizes = [8, 160], strides = [1, 1]} : vector<8x176xf32> to vector<8x160xf32>
    %17 = arith.maximumf %15, %16 : vector<8x160xf32>
    %c0_9 = arith.constant 0 : index
    %c0_10 = arith.constant 0 : index
    %c0_11 = arith.constant 0 : index
    %18 = vector.load %arg9[%c0_9, %c0_10, %c0_11] : memref<10x8x160xf32, #tpu.memory_space<vmem>>, vector<1x8x160xf32>
    %19 = vector.shape_cast %18 : vector<1x8x160xf32> to vector<8x160xf32>
    %20 = vector.shape_cast %17 : vector<8x160xf32> to vector<1x8x160xf32>
    tpu.vector_store %arg9[%c0_9, %c0_10, %c0_11], %20 {strides = array<i32>} : memref<10x8x160xf32, #tpu.memory_space<vmem>>, vector<1x8x160xf32>,
    %c0_12 = arith.constant 0 : index
    %c112 = arith.constant 112 : index
    %21 = vector.load %arg1[%c0_12, %c112] : memref<8x784xf32, #tpu.memory_space<vmem>>, vector<8x224xf32>
    %cst_13 = arith.constant dense<0.000000e+00> : vector<8x176xf32>
    %22 = tpu.matmul %21, %0, %cst_13 {dimension_numbers = #tpu.dot_dimension_numbers<[1], [0], [0], [1], [0, 0, 1, 1], [], []>} : vector<8x224xf32>, vector<224x176xf32>, vector<8x176xf32> -> vector<8x176xf32>
    %23 = vector.broadcast %1 : vector<1x176xf32> to vector<8x176xf32>
    %24 = arith.addf %22, %23 : vector<8x176xf32>
    %cst_14 = arith.constant 0.000000e+00 : f32
    %25 = vector.broadcast %cst_14 : f32 to vector<8x176xf32>
    %26 = arith.maximumf %24, %25 : vector<8x176xf32>
    %27 = arith.maximumf %13, %26 : vector<8x176xf32>
    %28 = vector.extract_strided_slice %27 {offsets = [0, 0], sizes = [8, 160], strides = [1, 1]} : vector<8x176xf32> to vector<8x160xf32>
    %29 = vector.extract_strided_slice %27 {offsets = [0, 16], sizes = [8, 160], strides = [1, 1]} : vector<8x176xf32> to vector<8x160xf32>
    %30 = arith.maximumf %28, %29 : vector<8x160xf32>
    %c1 = arith.constant 1 : index
    %c0_15 = arith.constant 0 : index
    %c0_16 = arith.constant 0 : index
    %31 = vector.load %arg9[%c1, %c0_15, %c0_16] : memref<10x8x160xf32, #tpu.memory_space<vmem>>, vector<1x8x160xf32>
    %32 = vector.shape_cast %31 : vector<1x8x160xf32> to vector<8x160xf32>
    %33 = vector.shape_cast %30 : vector<8x160xf32> to vector<1x8x160xf32>
    tpu.vector_store %arg9[%c1, %c0_15, %c0_16], %33 {strides = array<i32>} : memref<10x8x160xf32, #tpu.memory_space<vmem>>, vector<1x8x160xf32>,
    %c0_17 = arith.constant 0 : index
    %c168 = arith.constant 168 : index
    %34 = vector.load %arg1[%c0_17, %c168] : memref<8x784xf32, #tpu.memory_space<vmem>>, vector<8x224xf32>
    %cst_18 = arith.constant dense<0.000000e+00> : vector<8x176xf32>
    %35 = tpu.matmul %34, %0, %cst_18 {dimension_numbers = #tpu.dot_dimension_numbers<[1], [0], [0], [1], [0, 0, 1, 1], [], []>} : vector<8x224xf32>, vector<224x176xf32>, vector<8x176xf32> -> vector<8x176xf32>
    %36 = vector.broadcast %1 : vector<1x176xf32> to vector<8x176xf32>
    %37 = arith.addf %35, %36 : vector<8x176xf32>
    %cst_19 = arith.constant 0.000000e+00 : f32
    %38 = vector.broadcast %cst_19 : f32 to vector<8x176xf32>
    %39 = arith.maximumf %37, %38 : vector<8x176xf32>
    %40 = arith.maximumf %26, %39 : vector<8x176xf32>
    %41 = vector.extract_strided_slice %40 {offsets = [0, 0], sizes = [8, 160], strides = [1, 1]} : vector<8x176xf32> to vector<8x160xf32>
    %42 = vector.extract_strided_slice %40 {offsets = [0, 16], sizes = [8, 160], strides = [1, 1]} : vector<8x176xf32> to vector<8x160xf32>
    %43 = arith.maximumf %41, %42 : vector<8x160xf32>
    %c2 = arith.constant 2 : index
    %c0_20 = arith.constant 0 : index
    %c0_21 = arith.constant 0 : index
    %44 = vector.load %arg9[%c2, %c0_20, %c0_21] : memref<10x8x160xf32, #tpu.memory_space<vmem>>, vector<1x8x160xf32>
    %45 = vector.shape_cast %44 : vector<1x8x160xf32> to vector<8x160xf32>
    %46 = vector.shape_cast %43 : vector<8x160xf32> to vector<1x8x160xf32>
    tpu.vector_store %arg9[%c2, %c0_20, %c0_21], %46 {strides = array<i32>} : memref<10x8x160xf32, #tpu.memory_space<vmem>>, vector<1x8x160xf32>,
    %c0_22 = arith.constant 0 : index
    %c224 = arith.constant 224 : index
    %47 = vector.load %arg1[%c0_22, %c224] : memref<8x784xf32, #tpu.memory_space<vmem>>, vector<8x224xf32>
    %cst_23 = arith.constant dense<0.000000e+00> : vector<8x176xf32>
    %48 = tpu.matmul %47, %0, %cst_23 {dimension_numbers = #tpu.dot_dimension_numbers<[1], [0], [0], [1], [0, 0, 1, 1], [], []>} : vector<8x224xf32>, vector<224x176xf32>, vector<8x176xf32> -> vector<8x176xf32>
    %49 = vector.broadcast %1 : vector<1x176xf32> to vector<8x176xf32>
    %50 = arith.addf %48, %49 : vector<8x176xf32>
    %cst_24 = arith.constant 0.000000e+00 : f32
    %51 = vector.broadcast %cst_24 : f32 to vector<8x176xf32>
    %52 = arith.maximumf %50, %51 : vector<8x176xf32>
    %53 = arith.maximumf %39, %52 : vector<8x176xf32>
    %54 = vector.extract_strided_slice %53 {offsets = [0, 0], sizes = [8, 160], strides = [1, 1]} : vector<8x176xf32> to vector<8x160xf32>
    %55 = vector.extract_strided_slice %53 {offsets = [0, 16], sizes = [8, 160], strides = [1, 1]} : vector<8x176xf32> to vector<8x160xf32>
    %56 = arith.maximumf %54, %55 : vector<8x160xf32>
    %c3 = arith.constant 3 : index
    %c0_25 = arith.constant 0 : index
    %c0_26 = arith.constant 0 : index
    %57 = vector.load %arg9[%c3, %c0_25, %c0_26] : memref<10x8x160xf32, #tpu.memory_space<vmem>>, vector<1x8x160xf32>
    %58 = vector.shape_cast %57 : vector<1x8x160xf32> to vector<8x160xf32>
    %59 = vector.shape_cast %56 : vector<8x160xf32> to vector<1x8x160xf32>
    tpu.vector_store %arg9[%c3, %c0_25, %c0_26], %59 {strides = array<i32>} : memref<10x8x160xf32, #tpu.memory_space<vmem>>, vector<1x8x160xf32>,
    %c0_27 = arith.constant 0 : index
    %c280 = arith.constant 280 : index
    %60 = vector.load %arg1[%c0_27, %c280] : memref<8x784xf32, #tpu.memory_space<vmem>>, vector<8x224xf32>
    %cst_28 = arith.constant dense<0.000000e+00> : vector<8x176xf32>
    %61 = tpu.matmul %60, %0, %cst_28 {dimension_numbers = #tpu.dot_dimension_numbers<[1], [0], [0], [1], [0, 0, 1, 1], [], []>} : vector<8x224xf32>, vector<224x176xf32>, vector<8x176xf32> -> vector<8x176xf32>
    %62 = vector.broadcast %1 : vector<1x176xf32> to vector<8x176xf32>
    %63 = arith.addf %61, %62 : vector<8x176xf32>
    %cst_29 = arith.constant 0.000000e+00 : f32
    %64 = vector.broadcast %cst_29 : f32 to vector<8x176xf32>
    %65 = arith.maximumf %63, %64 : vector<8x176xf32>
    %66 = arith.maximumf %52, %65 : vector<8x176xf32>
    %67 = vector.extract_strided_slice %66 {offsets = [0, 0], sizes = [8, 160], strides = [1, 1]} : vector<8x176xf32> to vector<8x160xf32>
    %68 = vector.extract_strided_slice %66 {offsets = [0, 16], sizes = [8, 160], strides = [1, 1]} : vector<8x176xf32> to vector<8x160xf32>
    %69 = arith.maximumf %67, %68 : vector<8x160xf32>
    %c4 = arith.constant 4 : index
    %c0_30 = arith.constant 0 : index
    %c0_31 = arith.constant 0 : index
    %70 = vector.load %arg9[%c4, %c0_30, %c0_31] : memref<10x8x160xf32, #tpu.memory_space<vmem>>, vector<1x8x160xf32>
    %71 = vector.shape_cast %70 : vector<1x8x160xf32> to vector<8x160xf32>
    %72 = vector.shape_cast %69 : vector<8x160xf32> to vector<1x8x160xf32>
    tpu.vector_store %arg9[%c4, %c0_30, %c0_31], %72 {strides = array<i32>} : memref<10x8x160xf32, #tpu.memory_space<vmem>>, vector<1x8x160xf32>,
    %c0_32 = arith.constant 0 : index
    %c336 = arith.constant 336 : index
    %73 = vector.load %arg1[%c0_32, %c336] : memref<8x784xf32, #tpu.memory_space<vmem>>, vector<8x224xf32>
    %cst_33 = arith.constant dense<0.000000e+00> : vector<8x176xf32>
    %74 = tpu.matmul %73, %0, %cst_33 {dimension_numbers = #tpu.dot_dimension_numbers<[1], [0], [0], [1], [0, 0, 1, 1], [], []>} : vector<8x224xf32>, vector<224x176xf32>, vector<8x176xf32> -> vector<8x176xf32>
    %75 = vector.broadcast %1 : vector<1x176xf32> to vector<8x176xf32>
    %76 = arith.addf %74, %75 : vector<8x176xf32>
    %cst_34 = arith.constant 0.000000e+00 : f32
    %77 = vector.broadcast %cst_34 : f32 to vector<8x176xf32>
    %78 = arith.maximumf %76, %77 : vector<8x176xf32>
    %79 = arith.maximumf %65, %78 : vector<8x176xf32>
    %80 = vector.extract_strided_slice %79 {offsets = [0, 0], sizes = [8, 160], strides = [1, 1]} : vector<8x176xf32> to vector<8x160xf32>
    %81 = vector.extract_strided_slice %79 {offsets = [0, 16], sizes = [8, 160], strides = [1, 1]} : vector<8x176xf32> to vector<8x160xf32>
    %82 = arith.maximumf %80, %81 : vector<8x160xf32>
    %c5 = arith.constant 5 : index
    %c0_35 = arith.constant 0 : index
    %c0_36 = arith.constant 0 : index
    %83 = vector.load %arg9[%c5, %c0_35, %c0_36] : memref<10x8x160xf32, #tpu.memory_space<vmem>>, vector<1x8x160xf32>
    %84 = vector.shape_cast %83 : vector<1x8x160xf32> to vector<8x160xf32>
    %85 = vector.shape_cast %82 : vector<8x160xf32> to vector<1x8x160xf32>
    tpu.vector_store %arg9[%c5, %c0_35, %c0_36], %85 {strides = array<i32>} : memref<10x8x160xf32, #tpu.memory_space<vmem>>, vector<1x8x160xf32>,
    %c0_37 = arith.constant 0 : index
    %c392 = arith.constant 392 : index
    %86 = vector.load %arg1[%c0_37, %c392] : memref<8x784xf32, #tpu.memory_space<vmem>>, vector<8x224xf32>
    %cst_38 = arith.constant dense<0.000000e+00> : vector<8x176xf32>
    %87 = tpu.matmul %86, %0, %cst_38 {dimension_numbers = #tpu.dot_dimension_numbers<[1], [0], [0], [1], [0, 0, 1, 1], [], []>} : vector<8x224xf32>, vector<224x176xf32>, vector<8x176xf32> -> vector<8x176xf32>
    %88 = vector.broadcast %1 : vector<1x176xf32> to vector<8x176xf32>
    %89 = arith.addf %87, %88 : vector<8x176xf32>
    %cst_39 = arith.constant 0.000000e+00 : f32
    %90 = vector.broadcast %cst_39 : f32 to vector<8x176xf32>
    %91 = arith.maximumf %89, %90 : vector<8x176xf32>
    %92 = arith.maximumf %78, %91 : vector<8x176xf32>
    %93 = vector.extract_strided_slice %92 {offsets = [0, 0], sizes = [8, 160], strides = [1, 1]} : vector<8x176xf32> to vector<8x160xf32>
    %94 = vector.extract_strided_slice %92 {offsets = [0, 16], sizes = [8, 160], strides = [1, 1]} : vector<8x176xf32> to vector<8x160xf32>
    %95 = arith.maximumf %93, %94 : vector<8x160xf32>
    %c6 = arith.constant 6 : index
    %c0_40 = arith.constant 0 : index
    %c0_41 = arith.constant 0 : index
    %96 = vector.load %arg9[%c6, %c0_40, %c0_41] : memref<10x8x160xf32, #tpu.memory_space<vmem>>, vector<1x8x160xf32>
    %97 = vector.shape_cast %96 : vector<1x8x160xf32> to vector<8x160xf32>
    %98 = vector.shape_cast %95 : vector<8x160xf32> to vector<1x8x160xf32>
    tpu.vector_store %arg9[%c6, %c0_40, %c0_41], %98 {strides = array<i32>} : memref<10x8x160xf32, #tpu.memory_space<vmem>>, vector<1x8x160xf32>,
    %c0_42 = arith.constant 0 : index
    %c448 = arith.constant 448 : index
    %99 = vector.load %arg1[%c0_42, %c448] : memref<8x784xf32, #tpu.memory_space<vmem>>, vector<8x224xf32>
    %cst_43 = arith.constant dense<0.000000e+00> : vector<8x176xf32>
    %100 = tpu.matmul %99, %0, %cst_43 {dimension_numbers = #tpu.dot_dimension_numbers<[1], [0], [0], [1], [0, 0, 1, 1], [], []>} : vector<8x224xf32>, vector<224x176xf32>, vector<8x176xf32> -> vector<8x176xf32>
    %101 = vector.broadcast %1 : vector<1x176xf32> to vector<8x176xf32>
    %102 = arith.addf %100, %101 : vector<8x176xf32>
    %cst_44 = arith.constant 0.000000e+00 : f32
    %103 = vector.broadcast %cst_44 : f32 to vector<8x176xf32>
    %104 = arith.maximumf %102, %103 : vector<8x176xf32>
    %105 = arith.maximumf %91, %104 : vector<8x176xf32>
    %106 = vector.extract_strided_slice %105 {offsets = [0, 0], sizes = [8, 160], strides = [1, 1]} : vector<8x176xf32> to vector<8x160xf32>
    %107 = vector.extract_strided_slice %105 {offsets = [0, 16], sizes = [8, 160], strides = [1, 1]} : vector<8x176xf32> to vector<8x160xf32>
    %108 = arith.maximumf %106, %107 : vector<8x160xf32>
    %c7 = arith.constant 7 : index
    %c0_45 = arith.constant 0 : index
    %c0_46 = arith.constant 0 : index
    %109 = vector.load %arg9[%c7, %c0_45, %c0_46] : memref<10x8x160xf32, #tpu.memory_space<vmem>>, vector<1x8x160xf32>
    %110 = vector.shape_cast %109 : vector<1x8x160xf32> to vector<8x160xf32>
    %111 = vector.shape_cast %108 : vector<8x160xf32> to vector<1x8x160xf32>
    tpu.vector_store %arg9[%c7, %c0_45, %c0_46], %111 {strides = array<i32>} : memref<10x8x160xf32, #tpu.memory_space<vmem>>, vector<1x8x160xf32>,
    %c0_47 = arith.constant 0 : index
    %c504 = arith.constant 504 : index
    %112 = vector.load %arg1[%c0_47, %c504] : memref<8x784xf32, #tpu.memory_space<vmem>>, vector<8x224xf32>
    %cst_48 = arith.constant dense<0.000000e+00> : vector<8x176xf32>
    %113 = tpu.matmul %112, %0, %cst_48 {dimension_numbers = #tpu.dot_dimension_numbers<[1], [0], [0], [1], [0, 0, 1, 1], [], []>} : vector<8x224xf32>, vector<224x176xf32>, vector<8x176xf32> -> vector<8x176xf32>
    %114 = vector.broadcast %1 : vector<1x176xf32> to vector<8x176xf32>
    %115 = arith.addf %113, %114 : vector<8x176xf32>
    %cst_49 = arith.constant 0.000000e+00 : f32
    %116 = vector.broadcast %cst_49 : f32 to vector<8x176xf32>
    %117 = arith.maximumf %115, %116 : vector<8x176xf32>
    %118 = arith.maximumf %104, %117 : vector<8x176xf32>
    %119 = vector.extract_strided_slice %118 {offsets = [0, 0], sizes = [8, 160], strides = [1, 1]} : vector<8x176xf32> to vector<8x160xf32>
    %120 = vector.extract_strided_slice %118 {offsets = [0, 16], sizes = [8, 160], strides = [1, 1]} : vector<8x176xf32> to vector<8x160xf32>
    %121 = arith.maximumf %119, %120 : vector<8x160xf32>
    %c8 = arith.constant 8 : index
    %c0_50 = arith.constant 0 : index
    %c0_51 = arith.constant 0 : index
    %122 = vector.load %arg9[%c8, %c0_50, %c0_51] : memref<10x8x160xf32, #tpu.memory_space<vmem>>, vector<1x8x160xf32>
    %123 = vector.shape_cast %122 : vector<1x8x160xf32> to vector<8x160xf32>
    %124 = vector.shape_cast %121 : vector<8x160xf32> to vector<1x8x160xf32>
    tpu.vector_store %arg9[%c8, %c0_50, %c0_51], %124 {strides = array<i32>} : memref<10x8x160xf32, #tpu.memory_space<vmem>>, vector<1x8x160xf32>,
    %c0_52 = arith.constant 0 : index
    %c560 = arith.constant 560 : index
    %125 = vector.load %arg1[%c0_52, %c560] : memref<8x784xf32, #tpu.memory_space<vmem>>, vector<8x224xf32>
    %cst_53 = arith.constant dense<0.000000e+00> : vector<8x176xf32>
    %126 = tpu.matmul %125, %0, %cst_53 {dimension_numbers = #tpu.dot_dimension_numbers<[1], [0], [0], [1], [0, 0, 1, 1], [], []>} : vector<8x224xf32>, vector<224x176xf32>, vector<8x176xf32> -> vector<8x176xf32>
    %127 = vector.broadcast %1 : vector<1x176xf32> to vector<8x176xf32>
    %128 = arith.addf %126, %127 : vector<8x176xf32>
    %cst_54 = arith.constant 0.000000e+00 : f32
    %129 = vector.broadcast %cst_54 : f32 to vector<8x176xf32>
    %130 = arith.maximumf %128, %129 : vector<8x176xf32>
    %131 = arith.maximumf %117, %130 : vector<8x176xf32>
    %132 = vector.extract_strided_slice %131 {offsets = [0, 0], sizes = [8, 160], strides = [1, 1]} : vector<8x176xf32> to vector<8x160xf32>
    %133 = vector.extract_strided_slice %131 {offsets = [0, 16], sizes = [8, 160], strides = [1, 1]} : vector<8x176xf32> to vector<8x160xf32>
    %134 = arith.maximumf %132, %133 : vector<8x160xf32>
    %c9 = arith.constant 9 : index
    %c0_55 = arith.constant 0 : index
    %c0_56 = arith.constant 0 : index
    %135 = vector.load %arg9[%c9, %c0_55, %c0_56] : memref<10x8x160xf32, #tpu.memory_space<vmem>>, vector<1x8x160xf32>
    %136 = vector.shape_cast %135 : vector<1x8x160xf32> to vector<8x160xf32>
    %137 = vector.shape_cast %134 : vector<8x160xf32> to vector<1x8x160xf32>
    tpu.vector_store %arg9[%c9, %c0_55, %c0_56], %137 {strides = array<i32>} : memref<10x8x160xf32, #tpu.memory_space<vmem>>, vector<1x8x160xf32>,
    %c0_57 = arith.constant 0 : index
    %c0_58 = arith.constant 0 : index
    %138 = vector.load %arg4[%c0_57, %c0_58] : memref<640x128xf32, #tpu.memory_space<vmem>>, vector<640x128xf32>
    %c0_59 = arith.constant 0 : index
    %c0_60 = arith.constant 0 : index
    %139 = vector.load %arg5[%c0_59, %c0_60] : memref<1x128xf32, #tpu.memory_space<vmem>>, vector<1x128xf32>
    %c0_61 = arith.constant 0 : index
    %c0_62 = arith.constant 0 : index
    %c0_63 = arith.constant 0 : index
    %140 = vector.load %arg9[%c0_61, %c0_62, %c0_63] : memref<10x8x160xf32, #tpu.memory_space<vmem>>, vector<1x8x160xf32>
    %141 = vector.shape_cast %140 : vector<1x8x160xf32> to vector<8x160xf32>
    %c1_64 = arith.constant 1 : index
    %c0_65 = arith.constant 0 : index
    %c0_66 = arith.constant 0 : index
    %142 = vector.load %arg9[%c1_64, %c0_65, %c0_66] : memref<10x8x160xf32, #tpu.memory_space<vmem>>, vector<1x8x160xf32>
    %143 = vector.shape_cast %142 : vector<1x8x160xf32> to vector<8x160xf32>
    %c2_67 = arith.constant 2 : index
    %c0_68 = arith.constant 0 : index
    %c0_69 = arith.constant 0 : index
    %144 = vector.load %arg9[%c2_67, %c0_68, %c0_69] : memref<10x8x160xf32, #tpu.memory_space<vmem>>, vector<1x8x160xf32>
    %145 = vector.shape_cast %144 : vector<1x8x160xf32> to vector<8x160xf32>
    %c3_70 = arith.constant 3 : index
    %c0_71 = arith.constant 0 : index
    %c0_72 = arith.constant 0 : index
    %146 = vector.load %arg9[%c3_70, %c0_71, %c0_72] : memref<10x8x160xf32, #tpu.memory_space<vmem>>, vector<1x8x160xf32>
    %147 = vector.shape_cast %146 : vector<1x8x160xf32> to vector<8x160xf32>
    %148 = tpu.concatenate %141, %143, %145, %147 in 1 : vector<8x160xf32>, vector<8x160xf32>, vector<8x160xf32>, vector<8x160xf32> -> vector<8x640xf32>
    %cst_73 = arith.constant dense<0.000000e+00> : vector<8x128xf32>
    %149 = tpu.matmul %148, %138, %cst_73 {dimension_numbers = #tpu.dot_dimension_numbers<[1], [0], [0], [1], [0, 0, 1, 1], [], []>} : vector<8x640xf32>, vector<640x128xf32>, vector<8x128xf32> -> vector<8x128xf32>
    %150 = vector.broadcast %139 : vector<1x128xf32> to vector<8x128xf32>
    %151 = arith.addf %149, %150 : vector<8x128xf32>
    %cst_74 = arith.constant 0.000000e+00 : f32
    %152 = vector.broadcast %cst_74 : f32 to vector<8x128xf32>
    %153 = arith.maximumf %151, %152 : vector<8x128xf32>
    %c2_75 = arith.constant 2 : index
    %c0_76 = arith.constant 0 : index
    %c0_77 = arith.constant 0 : index
    %154 = vector.load %arg9[%c2_75, %c0_76, %c0_77] : memref<10x8x160xf32, #tpu.memory_space<vmem>>, vector<1x8x160xf32>
    %155 = vector.shape_cast %154 : vector<1x8x160xf32> to vector<8x160xf32>
    %c3_78 = arith.constant 3 : index
    %c0_79 = arith.constant 0 : index
    %c0_80 = arith.constant 0 : index
    %156 = vector.load %arg9[%c3_78, %c0_79, %c0_80] : memref<10x8x160xf32, #tpu.memory_space<vmem>>, vector<1x8x160xf32>
    %157 = vector.shape_cast %156 : vector<1x8x160xf32> to vector<8x160xf32>
    %c4_81 = arith.constant 4 : index
    %c0_82 = arith.constant 0 : index
    %c0_83 = arith.constant 0 : index
    %158 = vector.load %arg9[%c4_81, %c0_82, %c0_83] : memref<10x8x160xf32, #tpu.memory_space<vmem>>, vector<1x8x160xf32>
    %159 = vector.shape_cast %158 : vector<1x8x160xf32> to vector<8x160xf32>
    %c5_84 = arith.constant 5 : index
    %c0_85 = arith.constant 0 : index
    %c0_86 = arith.constant 0 : index
    %160 = vector.load %arg9[%c5_84, %c0_85, %c0_86] : memref<10x8x160xf32, #tpu.memory_space<vmem>>, vector<1x8x160xf32>
    %161 = vector.shape_cast %160 : vector<1x8x160xf32> to vector<8x160xf32>
    %162 = tpu.concatenate %155, %157, %159, %161 in 1 : vector<8x160xf32>, vector<8x160xf32>, vector<8x160xf32>, vector<8x160xf32> -> vector<8x640xf32>
    %cst_87 = arith.constant dense<0.000000e+00> : vector<8x128xf32>
    %163 = tpu.matmul %162, %138, %cst_87 {dimension_numbers = #tpu.dot_dimension_numbers<[1], [0], [0], [1], [0, 0, 1, 1], [], []>} : vector<8x640xf32>, vector<640x128xf32>, vector<8x128xf32> -> vector<8x128xf32>
    %164 = vector.broadcast %139 : vector<1x128xf32> to vector<8x128xf32>
    %165 = arith.addf %163, %164 : vector<8x128xf32>
    %cst_88 = arith.constant 0.000000e+00 : f32
    %166 = vector.broadcast %cst_88 : f32 to vector<8x128xf32>
    %167 = arith.maximumf %165, %166 : vector<8x128xf32>
    %c4_89 = arith.constant 4 : index
    %c0_90 = arith.constant 0 : index
    %c0_91 = arith.constant 0 : index
    %168 = vector.load %arg9[%c4_89, %c0_90, %c0_91] : memref<10x8x160xf32, #tpu.memory_space<vmem>>, vector<1x8x160xf32>
    %169 = vector.shape_cast %168 : vector<1x8x160xf32> to vector<8x160xf32>
    %c5_92 = arith.constant 5 : index
    %c0_93 = arith.constant 0 : index
    %c0_94 = arith.constant 0 : index
    %170 = vector.load %arg9[%c5_92, %c0_93, %c0_94] : memref<10x8x160xf32, #tpu.memory_space<vmem>>, vector<1x8x160xf32>
    %171 = vector.shape_cast %170 : vector<1x8x160xf32> to vector<8x160xf32>
    %c6_95 = arith.constant 6 : index
    %c0_96 = arith.constant 0 : index
    %c0_97 = arith.constant 0 : index
    %172 = vector.load %arg9[%c6_95, %c0_96, %c0_97] : memref<10x8x160xf32, #tpu.memory_space<vmem>>, vector<1x8x160xf32>
    %173 = vector.shape_cast %172 : vector<1x8x160xf32> to vector<8x160xf32>
    %c7_98 = arith.constant 7 : index
    %c0_99 = arith.constant 0 : index
    %c0_100 = arith.constant 0 : index
    %174 = vector.load %arg9[%c7_98, %c0_99, %c0_100] : memref<10x8x160xf32, #tpu.memory_space<vmem>>, vector<1x8x160xf32>
    %175 = vector.shape_cast %174 : vector<1x8x160xf32> to vector<8x160xf32>
    %176 = tpu.concatenate %169, %171, %173, %175 in 1 : vector<8x160xf32>, vector<8x160xf32>, vector<8x160xf32>, vector<8x160xf32> -> vector<8x640xf32>
    %cst_101 = arith.constant dense<0.000000e+00> : vector<8x128xf32>
    %177 = tpu.matmul %176, %138, %cst_101 {dimension_numbers = #tpu.dot_dimension_numbers<[1], [0], [0], [1], [0, 0, 1, 1], [], []>} : vector<8x640xf32>, vector<640x128xf32>, vector<8x128xf32> -> vector<8x128xf32>
    %178 = vector.broadcast %139 : vector<1x128xf32> to vector<8x128xf32>
    %179 = arith.addf %177, %178 : vector<8x128xf32>
    %cst_102 = arith.constant 0.000000e+00 : f32
    %180 = vector.broadcast %cst_102 : f32 to vector<8x128xf32>
    %181 = arith.maximumf %179, %180 : vector<8x128xf32>
    %c6_103 = arith.constant 6 : index
    %c0_104 = arith.constant 0 : index
    %c0_105 = arith.constant 0 : index
    %182 = vector.load %arg9[%c6_103, %c0_104, %c0_105] : memref<10x8x160xf32, #tpu.memory_space<vmem>>, vector<1x8x160xf32>
    %183 = vector.shape_cast %182 : vector<1x8x160xf32> to vector<8x160xf32>
    %c7_106 = arith.constant 7 : index
    %c0_107 = arith.constant 0 : index
    %c0_108 = arith.constant 0 : index
    %184 = vector.load %arg9[%c7_106, %c0_107, %c0_108] : memref<10x8x160xf32, #tpu.memory_space<vmem>>, vector<1x8x160xf32>
    %185 = vector.shape_cast %184 : vector<1x8x160xf32> to vector<8x160xf32>
    %c8_109 = arith.constant 8 : index
    %c0_110 = arith.constant 0 : index
    %c0_111 = arith.constant 0 : index
    %186 = vector.load %arg9[%c8_109, %c0_110, %c0_111] : memref<10x8x160xf32, #tpu.memory_space<vmem>>, vector<1x8x160xf32>
    %187 = vector.shape_cast %186 : vector<1x8x160xf32> to vector<8x160xf32>
    %c9_112 = arith.constant 9 : index
    %c0_113 = arith.constant 0 : index
    %c0_114 = arith.constant 0 : index
    %188 = vector.load %arg9[%c9_112, %c0_113, %c0_114] : memref<10x8x160xf32, #tpu.memory_space<vmem>>, vector<1x8x160xf32>
    %189 = vector.shape_cast %188 : vector<1x8x160xf32> to vector<8x160xf32>
    %190 = tpu.concatenate %183, %185, %187, %189 in 1 : vector<8x160xf32>, vector<8x160xf32>, vector<8x160xf32>, vector<8x160xf32> -> vector<8x640xf32>
    %cst_115 = arith.constant dense<0.000000e+00> : vector<8x128xf32>
    %191 = tpu.matmul %190, %138, %cst_115 {dimension_numbers = #tpu.dot_dimension_numbers<[1], [0], [0], [1], [0, 0, 1, 1], [], []>} : vector<8x640xf32>, vector<640x128xf32>, vector<8x128xf32> -> vector<8x128xf32>
    %192 = vector.broadcast %139 : vector<1x128xf32> to vector<8x128xf32>
    %193 = arith.addf %191, %192 : vector<8x128xf32>
    %cst_116 = arith.constant 0.000000e+00 : f32
    %194 = vector.broadcast %cst_116 : f32 to vector<8x128xf32>
    %195 = arith.maximumf %193, %194 : vector<8x128xf32>
    %196 = arith.maximumf %153, %167 : vector<8x128xf32>
    %197 = vector.extract_strided_slice %196 {offsets = [0, 0], sizes = [8, 96], strides = [1, 1]} : vector<8x128xf32> to vector<8x96xf32>
    %198 = vector.extract_strided_slice %196 {offsets = [0, 32], sizes = [8, 96], strides = [1, 1]} : vector<8x128xf32> to vector<8x96xf32>
    %199 = arith.maximumf %197, %198 : vector<8x96xf32>
    %200 = arith.maximumf %167, %181 : vector<8x128xf32>
    %201 = vector.extract_strided_slice %200 {offsets = [0, 0], sizes = [8, 96], strides = [1, 1]} : vector<8x128xf32> to vector<8x96xf32>
    %202 = vector.extract_strided_slice %200 {offsets = [0, 32], sizes = [8, 96], strides = [1, 1]} : vector<8x128xf32> to vector<8x96xf32>
    %203 = arith.maximumf %201, %202 : vector<8x96xf32>
    %204 = arith.maximumf %181, %195 : vector<8x128xf32>
    %205 = vector.extract_strided_slice %204 {offsets = [0, 0], sizes = [8, 96], strides = [1, 1]} : vector<8x128xf32> to vector<8x96xf32>
    %206 = vector.extract_strided_slice %204 {offsets = [0, 32], sizes = [8, 96], strides = [1, 1]} : vector<8x128xf32> to vector<8x96xf32>
    %207 = arith.maximumf %205, %206 : vector<8x96xf32>
    %208 = tpu.concatenate %199, %203, %207 in 1 : vector<8x96xf32>, vector<8x96xf32>, vector<8x96xf32> -> vector<8x288xf32>
    %c0_117 = arith.constant 0 : index
    %c0_118 = arith.constant 0 : index
    %209 = vector.load %arg6[%c0_117, %c0_118] : memref<288x128xf32, #tpu.memory_space<vmem>>, vector<288x128xf32>
    %cst_119 = arith.constant dense<0.000000e+00> : vector<8x128xf32>
    %210 = tpu.matmul %208, %209, %cst_119 {dimension_numbers = #tpu.dot_dimension_numbers<[1], [0], [0], [1], [0, 0, 1, 1], [], []>} : vector<8x288xf32>, vector<288x128xf32>, vector<8x128xf32> -> vector<8x128xf32>
    %c0_120 = arith.constant 0 : index
    %c0_121 = arith.constant 0 : index
    %211 = vector.load %arg7[%c0_120, %c0_121] : memref<1x128xf32, #tpu.memory_space<vmem>>, vector<1x128xf32>
    %212 = vector.broadcast %211 : vector<1x128xf32> to vector<8x128xf32>
    %213 = arith.addf %210, %212 : vector<8x128xf32>
    %cst_122 = arith.constant dense<0xFF800000> : vector<8xf32>
    %214 = vector.multi_reduction <maximumf>, %213, %cst_122 [1] : vector<8x128xf32> to vector<8xf32>
    %215 = vector.shape_cast %214 : vector<8xf32> to vector<8x1xf32>
    %216 = vector.broadcast %215 : vector<8x1xf32> to vector<8x128xf32>
    %217 = arith.subf %213, %216 : vector<8x128xf32>
    %218 = math.exp %217 : vector<8x128xf32>
    %cst_123 = arith.constant dense<0.000000e+00> : vector<8xf32>
    %219 = vector.multi_reduction <add>, %218, %cst_123 [1] : vector<8x128xf32> to vector<8xf32>
    %220 = vector.shape_cast %219 : vector<8xf32> to vector<8x1xf32>
    %221 = vector.broadcast %215 : vector<8x1xf32> to vector<8x128xf32>
    %222 = arith.subf %213, %221 : vector<8x128xf32>
    %223 = math.log %220 : vector<8x1xf32>
    %224 = vector.broadcast %223 : vector<8x1xf32> to vector<8x128xf32>
    %225 = arith.subf %222, %224 : vector<8x128xf32>
    %c0_124 = arith.constant 0 : index
    %c0_125 = arith.constant 0 : index
    %226 = vector.load %arg8[%c0_124, %c0_125] : memref<8x128xf32, #tpu.memory_space<vmem>>, vector<8x128xf32>
    tpu.vector_store %arg8[%c0_124, %c0_125], %225 {strides = array<i32>} : memref<8x128xf32, #tpu.memory_space<vmem>>, vector<8x128xf32>,
    return
  }
  func.func @transform_0(%arg0: i32) -> (i32, i32) {
    %c0_i32 = arith.constant 0 : i32
    %c0_i32_0 = arith.constant 0 : i32
    return %arg0, %c0_i32 : i32, i32
  }
  func.func @transform_1(%arg0: i32) -> (i32, i32) {
    %c0_i32 = arith.constant 0 : i32
    %c0_i32_0 = arith.constant 0 : i32
    %c0_i32_1 = arith.constant 0 : i32
    return %c0_i32, %c0_i32_0 : i32, i32
  }
  func.func @transform_2(%arg0: i32) -> (i32, i32) {
    %c0_i32 = arith.constant 0 : i32
    %c0_i32_0 = arith.constant 0 : i32
    %c0_i32_1 = arith.constant 0 : i32
    return %c0_i32, %c0_i32_0 : i32, i32
  }
  func.func @transform_3(%arg0: i32) -> (i32, i32) {
    %c0_i32 = arith.constant 0 : i32
    %c0_i32_0 = arith.constant 0 : i32
    %c0_i32_1 = arith.constant 0 : i32
    return %c0_i32, %c0_i32_0 : i32, i32
  }
  func.func @transform_4(%arg0: i32) -> (i32, i32) {
    %c0_i32 = arith.constant 0 : i32
    %c0_i32_0 = arith.constant 0 : i32
    %c0_i32_1 = arith.constant 0 : i32
    return %c0_i32, %c0_i32_0 : i32, i32
  }
  func.func @transform_5(%arg0: i32) -> (i32, i32) {
    %c0_i32 = arith.constant 0 : i32
    %c0_i32_0 = arith.constant 0 : i32
    %c0_i32_1 = arith.constant 0 : i32
    return %c0_i32, %c0_i32_0 : i32, i32
  }
  func.func @transform_6(%arg0: i32) -> (i32, i32) {
    %c0_i32 = arith.constant 0 : i32
    %c0_i32_0 = arith.constant 0 : i32
    %c0_i32_1 = arith.constant 0 : i32
    return %c0_i32, %c0_i32_0 : i32, i32
  }
  func.func @transform_7(%arg0: i32) -> (i32, i32) {
    %c0_i32 = arith.constant 0 : i32
    %c0_i32_0 = arith.constant 0 : i32
    return %arg0, %c0_i32 : i32, i32
  }
}

</mosaic_0001>

<bundles_post_ra>
// kernel: squeeze.1
= control target key start
LH: loop header
LB: loop body
LE: loop exit
PB: predicated region body
PF: predicated region fallthrough
CT: control target
= control target key end

     0   :  { %vm5_vm0 = vcmask 1041409   ;;  %vm21_vm1 = vcmask 31744   ;;  %vm65_vm2 = vcmask 97280   ;;  %vm43_vm3 = vcmask 64512   ;;  %s514_s24 = smov 124   ;;  %s515_s6 = smov 116   ;;  %s822_s0 = inlined_call_operand.vmem [shape: f32[2,28,28], index: 0, kind: input, shape index: {}]   ;;  %s823_s1 = inlined_call_operand.vmem [shape: f32[2,784], index: 1, kind: output, shape index: {}]  }
   0x1   :  { %v415_v0 = vld [vmem:[%s822_s0 + $0x9] sm:$0x1]   ;;  %v423_v6 = vld [vmem:[%s822_s0 + $0x1b] sm:$0x1]   ;;  %v419_v12 = vld [vmem:[%s822_s0 + $0x12] sm:$0x1]  }
   0x2   :  { %v416_v1 = vld [vmem:[%s822_s0 + $0x28] sm:$0x2]   ;;  %v424_v7 = vld [vmem:[%s822_s0 + $0x3a] sm:$0x2]   ;;  %v420_v14 = vld [vmem:[%s822_s0 + $0x31] sm:$0x2]  }
   0x3   :  { %v14_v2 = vsel %vm5_vm0, %v416_v1, %v415_v0  ;;  %v417_v3 = vld [vmem:[%s822_s0 + $0x9] sm:$0x1]   ;;  %v425_v8 = vld [vmem:[%s822_s0 + $0x1b] sm:$0x1]   ;;  %v58_v10 = vsel %vm5_vm0, %v424_v7, %v423_v6  ;;  %v421_v15 = vld [vmem:[%s822_s0 + $0x12] sm:$0x1]   ;;  %v36_v18 = vsel %vm5_vm0, %v420_v14, %v419_v12 }
   0x4   :  { %v418_v4 = vld [vmem:[%s822_s0 + $0x28] sm:$0x2]   ;;  %v426_v11 = vld [vmem:[%s822_s0 + $0x3a] sm:$0x2]   ;;  %v422_v16 = vld [vmem:[%s822_s0 + $0x31] sm:$0x2]  }
   0x5   :  { %v20_v5 = vsel %vm5_vm0, %v418_v4, %v417_v3  ;;  %v64_v13 = vsel %vm5_vm0, %v426_v11, %v425_v8  ;;  %v42_v19 = vsel %vm5_vm0, %v422_v16, %v421_v15  ;;  %vm69_vm4 = vcmask 130048   ;;  %v427_v20 = vld [vmem:[%s822_s0 + $0x4] sm:$0x1]   ;;  %v431_v27 = vld [vmem:[%s822_s0 + $0xd] sm:$0x1]   ;;  %s516_s17 = smov 120  }
   0x6   :  { %v22_v9 = vsel %vm21_vm1, %v20_v5, %v14_v2  ;;  %v66_v17 = vsel %vm65_vm2, %v64_v13, %v58_v10  ;;  %v428_v21 = vld [vmem:[%s822_s0 + $0x23] sm:$0x2]   ;;  %v44_v22 = vsel %vm43_vm3, %v42_v19, %v36_v18  ;;  %vm47_vm5 = vcmask 162816   ;;  %v432_v28 = vld [vmem:[%s822_s0 + $0x2c] sm:$0x2]   ;;  %s517_s28 = smov 112  }
   0x7   :  { %23 = vrot.lane.b32.xlu0 %v22_v9, %s514_s24  ;;  %67 = vrot.lane.b32.xlu1 %v66_v17, %s515_s6  ;;  %v80_v23 = vsel %vm5_vm0, %v428_v21, %v427_v20  ;;  %v429_v24 = vld [vmem:[%s822_s0 + $0x4] sm:$0x1]   ;;  %v433_v29 = vld [vmem:[%s822_s0 + $0xd] sm:$0x1]   ;;  %v101_v31 = vsel %vm5_vm0, %v432_v28, %v431_v27  ;;  %vm25_vm6 = vcmask 195584   ;;  %s518_s4 = smov 108  }
   0x8   :  { %v430_v25 = vld [vmem:[%s822_s0 + $0x23] sm:$0x2]   ;;  %v434_v32 = vld [vmem:[%s822_s0 + $0x2c] sm:$0x2]   ;;  %v435_v33 = vld [vmem:[%s822_s0 + $0x16] sm:$0x1]  }
   0x9   :  { %v86_v26 = vsel %vm5_vm0, %v430_v25, %v429_v24  ;;  %v107_v34 = vsel %vm5_vm0, %v434_v32, %v433_v29  ;;  %v436_v35 = vld [vmem:[%s822_s0 + $0x35] sm:$0x2]   ;;  %v439_v41 = vld [vmem:[%s822_s0 + $0x8] sm:$0x1]   ;;  %v441_v44 = vld [vmem:[%s822_s0 + $0x11] sm:$0x1]  }
   0xa   :  { %v88_v30 = vsel %vm69_vm4, %v86_v26, %v80_v23  ;;  %v437_v36 = vld [vmem:[%s822_s0 + $0x16] sm:$0x1]   ;;  %v109_v38 = vsel %vm47_vm5, %v107_v34, %v101_v31  ;;  %v123_v39 = vsel %vm5_vm0, %v436_v35, %v435_v33  ;;  %v440_v42 = vld [vmem:[%s822_s0 + $0x27] sm:$0x2]   ;;  %v442_v45 = vld [vmem:[%s822_s0 + $0x30] sm:$0x2]  }
   0xb   :  { %45 = vrot.lane.b32.xlu0 %v44_v22, %s516_s17  ;;  %v438_v37 = vld [vmem:[%s822_s0 + $0x35] sm:$0x2]   ;;  %89 = vrot.lane.b32.xlu1 %v88_v30, %s517_s28  ;;  %v145_v46 = vsel %vm5_vm0, %v440_v42, %v439_v41  ;;  %s519_s9 = smov 104   ;;  %v443_v47 = vld [vmem:[%s822_s0 + $0x1a] sm:$0x1]   ;;  %v156_v49 = vsel %vm5_vm0, %v442_v45, %v441_v44  ;;  %s520_s14 = smov 96  }
   0xc   :  { %v129_v40 = vsel %vm5_vm0, %v438_v37, %v437_v36  ;;  %v444_v48 = vld [vmem:[%s822_s0 + $0x39] sm:$0x2]   ;;  %v445_v50 = vld [vmem:[%s822_s0 + $0x3] sm:$0x1]   ;;  %s521_s19 = smov 92   ;;  %s522_s24 = smov 88  }
   0xd   :  { %v131_v43 = vsel %vm25_vm6, %v129_v40, %v123_v39  ;;  %v446_v51 = vld [vmem:[%s822_s0 + $0x22] sm:$0x2]   ;;  %v167_v52 = vsel %vm5_vm0, %v444_v48, %v443_v47  ;;  %v447_v53 = vld [vmem:[%s822_s0 + $0xc] sm:$0x1]   ;;  %v449_v56 = vld [vmem:[%s822_s0 + $0x15] sm:$0x1]  }
   0xe   :  { %v448_v54 = vld [vmem:[%s822_s0 + $0x2b] sm:$0x2]   ;;  %v178_v55 = vsel %vm5_vm0, %v446_v51, %v445_v50  ;;  %v450_v57 = vld [vmem:[%s822_s0 + $0x34] sm:$0x2]   ;;  %s523_s29 = smov 84   ;;  %s524_s5 = smov 80  }
   0xf   :  { %110 = vrot.lane.b32.xlu0 %v109_v38, %s518_s4  ;;  %132 = vrot.lane.b32.xlu1 %v131_v43, %s519_s9  ;;  %v188_v58 = vsel %vm5_vm0, %v448_v54, %v447_v53  ;;  %v451_v59 = vld [vmem:[%s822_s0 + $0x7] sm:$0x1]   ;;  %v199_v61 = vsel %vm5_vm0, %v450_v57, %v449_v56  ;;  %v453_v62 = vld [vmem:[%s822_s0 + $0x10] sm:$0x1]   ;;  %s525_s10 = smov 76   ;;  %s526_s17 = smov 68  }
  0x10   :  { %v452_v60 = vld [vmem:[%s822_s0 + $0x26] sm:$0x2]   ;;  %v454_v63 = vld [vmem:[%s822_s0 + $0x2f] sm:$0x2]   ;;  %v455_v1 = vld [vmem:[%s822_s0 + $0x19] sm:$0x1]  }
  0x11   :  { %v210_v0 = vsel %vm5_vm0, %v452_v60, %v451_v59  ;;  %v456_v2 = vld [vmem:[%s822_s0 + $0x38] sm:$0x2]   ;;  %v221_v3 = vsel %vm5_vm0, %v454_v63, %v453_v62  ;;  %v457_v4 = vld [vmem:[%s822_s0 + $0x2] sm:$0x1]   ;;  %vm7_vm7 = vcmask 228352   ;;  %s531_s15 = smov 48  }
  0x12   :  { %v458_v5 = vld [vmem:[%s822_s0 + $0x21] sm:$0x2]   ;;  %v2_v6 = vld [vmem:[%s822_s0] sm:$0x1]   ;;  %v232_v7 = vsel %vm5_vm0, %v456_v2, %v455_v1  ;;  %v459_v9 = vld [vmem:[%s822_s0 + $0xb] sm:$0x1]  }
  0x13   :  { %146 = vrot.lane.b32.xlu0 %v145_v46, %s520_s14  ;;  %157 = vrot.lane.b32.xlu1 %v156_v49, %s521_s19  ;;  %v414_v8 = vld [vmem:[%s822_s0 + $0x1f] sm:$0x2]   ;;  %v460_v10 = vld [vmem:[%s822_s0 + $0x2a] sm:$0x2]   ;;  %v243_v12 = vsel %vm5_vm0, %v458_v5, %v457_v4  ;;  %s532_s20 = smov 40   ;;  %s533_s25 = smov 36  }
  0x14   :  { %v6_v11 = vsel %vm5_vm0, %v414_v8, %v2_v6  ;;  %v461_v13 = vld [vmem:[%s822_s0 + $0x14] sm:$0x1]   ;;  %v253_v15 = vsel %vm5_vm0, %v460_v10, %v459_v9  ;;  %v463_v16 = vld [vmem:[%s822_s0 + $0x6] sm:$0x1]   ;;  %v465_v19 = vld [vmem:[%s822_s0 + $0xf] sm:$0x1]  }
  0x15   :  { %8 = vst.msk [vmem:[#allocation0] sm:$0x3] %vm7_vm7, %v6_v11   ;;  %v462_v14 = vld [vmem:[%s822_s0 + $0x33] sm:$0x2]   ;;  %v464_v17 = vld [vmem:[%s822_s0 + $0x25] sm:$0x2]  }
  0x16   :  { %v264_v18 = vsel %vm5_vm0, %v462_v14, %v461_v13  ;;  %v466_v20 = vld [vmem:[%s822_s0 + $0x2e] sm:$0x2]   ;;  %v275_v21 = vsel %vm5_vm0, %v464_v17, %v463_v16  ;;  %v467_v22 = vld [vmem:[%s822_s0 + $0x18] sm:$0x1]   ;;  %v469_v25 = vld [vmem:[%s822_s0 + $0x1] sm:$0x1]  }
  0x17   :  { %168 = vrot.lane.b32.xlu0 %v167_v52, %s522_s24  ;;  %179 = vrot.lane.b32.xlu1 %v178_v55, %s523_s29  ;;  %s527_s24 = smov 64   ;;  %s528_s29 = smov 60   ;;  %v468_v23 = vld [vmem:[%s822_s0 + $0x37] sm:$0x2]   ;;  %v286_v24 = vsel %vm5_vm0, %v466_v20, %v465_v19  ;;  %v470_v26 = vld [vmem:[%s822_s0 + $0x20] sm:$0x2]  }
  0x18   :  { %v297_v27 = vsel %vm5_vm0, %v468_v23, %v467_v22  ;;  %v471_v28 = vld [vmem:[%s822_s0 + $0xa] sm:$0x1]   ;;  %v308_v30 = vsel %vm5_vm0, %v470_v26, %v469_v25  ;;  %s534_s30 = smov 32   ;;  %v473_v31 = vld [vmem:[%s822_s0 + $0x13] sm:$0x1]   ;;  %s535_s6 = smov 28  }
  0x19   :  { %v472_v29 = vld [vmem:[%s822_s0 + $0x29] sm:$0x2]   ;;  %v474_v32 = vld [vmem:[%s822_s0 + $0x32] sm:$0x2]   ;;  %v475_v34 = vld [vmem:[%s822_s0 + $0x5] sm:$0x1]  }
  0x1a   :  { %v318_v33 = vsel %vm5_vm0, %v472_v29, %v471_v28  ;;  %v476_v35 = vld [vmem:[%s822_s0 + $0x24] sm:$0x2]   ;;  %v329_v36 = vsel %vm5_vm0, %v474_v32, %v473_v31  ;;  %s536_s11 = smov 24   ;;  %v477_v37 = vld [vmem:[%s822_s0 + $0xe] sm:$0x1]   ;;  %s537_s16 = smov 20  }
  0x1b   :  { %189 = vrot.lane.b32.xlu0 %v188_v58, %s524_s5  ;;  %200 = vrot.lane.b32.xlu1 %v199_v61, %s525_s10  ;;  %s529_s5 = smov 56   ;;  %s530_s10 = smov 52   ;;  %v478_v38 = vld [vmem:[%s822_s0 + $0x2d] sm:$0x2]   ;;  %v340_v39 = vsel %vm5_vm0, %v476_v35, %v475_v34  ;;  %v479_v40 = vld [vmem:[%s822_s0 + $0x17] sm:$0x1]  }
  0x1c   :  { %v480_v41 = vld [vmem:[%s822_s0 + $0x36] sm:$0x2]   ;;  %v351_v42 = vsel %vm5_vm0, %v478_v38, %v477_v37  ;;  %s538_s0 = smov 12   ;;  %s539_s21 = smov 8   ;;  %vm28_vm8 = vcmask 1048544   ;;  %vm72_vm9 = vcmask 1048480  }
  0x1d   :  { %v362_v43 = vsel %vm5_vm0, %v480_v41, %v479_v40  ;;  %s540_s22 = smov 4   ;;  %vm50_vm10 = vcmask 1048512   ;;  %vm94_vm11 = vcmask 1048448   ;;  %vm115_vm12 = vcmask 1048416  }
  0x1e   :  { %vm137_vm13 = vcmask 1048384   ;;  %vm148_vm14 = vcmask 1015552   ;;  %vm159_vm15 = vcmask 982752   ;;  %vm170_vm0 = vcmask 949952  }
  0x1f   :  { %211 = vrot.lane.b32.xlu0 %v210_v0, %s526_s17  ;;  %222 = vrot.lane.b32.xlu1 %v221_v3, %s527_s24  ;;  %vm246_vm7 = vcmask 687552  }
  0x23   :  { %233 = vrot.lane.b32.xlu0 %v232_v7, %s528_s29  ;;  %244 = vrot.lane.b32.xlu1 %v243_v12, %s529_s5 }
  0x27   :  { %254 = vrot.lane.b32.xlu0 %v253_v15, %s530_s10  ;;  %265 = vrot.lane.b32.xlu1 %v264_v18, %s531_s15 }
  0x2b   :  { %276 = vrot.lane.b32.xlu0 %v275_v21, %s532_s20  ;;  %287 = vrot.lane.b32.xlu1 %v286_v24, %s533_s25 }
  0x2f   :  { %298 = vrot.lane.b32.xlu0 %v297_v27, %s534_s30  ;;  %309 = vrot.lane.b32.xlu1 %v308_v30, %s535_s6 }
  0x33   :  { %319 = vrot.lane.b32.xlu0 %v318_v33, %s536_s11  ;;  %330 = vrot.lane.b32.xlu1 %v329_v36, %s537_s16 }
  0x37   :  { %341 = vrot.lane.b32.xlu0 %v340_v39, %s538_s0  ;;  %352 = vrot.lane.b32.xlu1 %v351_v42, %s539_s21 }
  0x3b   :  { %363 = vrot.lane.b32.xlu0 %v362_v43, %s540_s22 }
  0x79   :  { %v24_v44 = vpop.permute.xlu0 %23   ;;  %v68_v45 = vpop.permute.xlu1 %67  }
  0x7a   :  { %27 = vst.msk [vmem:[#allocation0 + $0x10] sm:$0x3] %vm25_vm6, %v24_v44   ;;  %vm235_vm6 = vcmask 720352  }
  0x7b   :  { %30 = vst.msk [vmem:[#allocation0 + $0x8] sm:$0x3] %vm28_vm8, %v24_v44   ;;  %vm256_vm8 = vcmask 654752  }
  0x7c   :  { %71 = vst.msk [vmem:[#allocation0 + $0x30] sm:$0x3] %vm69_vm4, %v68_v45   ;;  %vm213_vm4 = vcmask 785952  }
  0x7d   :  { %74 = vst.msk [vmem:[#allocation0 + $0x28] sm:$0x3] %vm72_vm9, %v68_v45   ;;  %v46_v46 = vpop.permute.xlu0 %45   ;;  %v90_v47 = vpop.permute.xlu1 %89   ;;  %vm267_vm9 = vcmask 621952  }
  0x7e   :  { %49 = vst.msk [vmem:[#allocation0 + $0x20] sm:$0x3] %vm47_vm5, %v46_v46   ;;  %vm224_vm5 = vcmask 753152  }
  0x7f   :  { %52 = vst.msk [vmem:[#allocation0 + $0x18] sm:$0x3] %vm50_vm10, %v46_v46   ;;  %vm278_vm10 = vcmask 556352  }
  0x80   :  { %93 = vst.msk [vmem:[#allocation0 + $0x8] sm:$0x3] %vm65_vm2, %v90_v47   ;;  %vm191_vm2 = vcmask 884352  }
  0x81   :  { %95 = vst.msk [vmem:[#allocation0] sm:$0x3] %vm94_vm11, %v90_v47   ;;  %v111_v48 = vpop.permute.xlu0 %110   ;;  %v133_v50 = vpop.permute.xlu1 %132   ;;  %vm289_vm11 = vcmask 523552  }
  0x82   :  { %114 = vst.msk [vmem:[#allocation0 + $0x18] sm:$0x3] %vm43_vm3, %v111_v48   ;;  %vm202_vm3 = vcmask 851552  }
  0x83   :  { %117 = vst.msk [vmem:[#allocation0 + $0x10] sm:$0x3] %vm115_vm12, %v111_v48   ;;  %v404_v49 = vld [vmem:[#allocation0 + $0x30] sm:$0x3]  ;;  %vm300_vm12 = vcmask 490752  }
  0x84   :  { %486 = vst [vmem:[%s823_s1 + $0xc] sm:$0x3] %v404_v49  ;;  %136 = vst.msk [vmem:[#allocation0 + $0x28] sm:$0x3] %vm21_vm1, %v133_v50   ;;  %vm181_vm1 = vcmask 917152  }
  0x85   :  { %139 = vst.msk [vmem:[#allocation0 + $0x20] sm:$0x3] %vm137_vm13, %v133_v50   ;;  %v147_v51 = vpop.permute.xlu0 %146   ;;  %v158_v52 = vpop.permute.xlu1 %157   ;;  %vm311_vm13 = vcmask 457952  }
  0x86   :  { %150 = vst.msk [vmem:[#allocation0 + $0x8] sm:$0x3] %vm148_vm14, %v147_v51   ;;  %vm321_vm14 = vcmask 425152  }
  0x87   :  { %161 = vst.msk [vmem:[#allocation0 + $0x18] sm:$0x3] %vm159_vm15, %v158_v52   ;;  %vm332_vm15 = vcmask 392352  }
  0x89   :  { %v169_v53 = vpop.permute.xlu0 %168   ;;  %v180_v54 = vpop.permute.xlu1 %179  }
  0x8a   :  { %172 = vst.msk [vmem:[#allocation0 + $0x28] sm:$0x3] %vm170_vm0, %v169_v53   ;;  %vm343_vm0 = vcmask 326752  }
  0x8b   :  { %182 = vst.msk [vmem:[#allocation0] sm:$0x3] %vm181_vm1, %v180_v54   ;;  %vm354_vm1 = vcmask 293952  }
  0x8d   :  { %v190_v55 = vpop.permute.xlu0 %189   ;;  %v201_v56 = vpop.permute.xlu1 %200  }
  0x8e   :  { %193 = vst.msk [vmem:[#allocation0 + $0x10] sm:$0x3] %vm191_vm2, %v190_v55   ;;  %vm365_vm2 = vcmask 261152  }
  0x8f   :  { %204 = vst.msk [vmem:[#allocation0 + $0x20] sm:$0x3] %vm202_vm3, %v201_v56  }
  0x91   :  { %v212_v57 = vpop.permute.xlu0 %211   ;;  %v223_v58 = vpop.permute.xlu1 %222  }
  0x92   :  { %215 = vst.msk [vmem:[#allocation0 + $0x8] sm:$0x3] %vm213_vm4, %v212_v57  }
  0x93   :  { %226 = vst.msk [vmem:[#allocation0 + $0x18] sm:$0x3] %vm224_vm5, %v223_v58  }
  0x95   :  { %v234_v59 = vpop.permute.xlu0 %233   ;;  %v245_v60 = vpop.permute.xlu1 %244  }
  0x96   :  { %237 = vst.msk [vmem:[#allocation0 + $0x28] sm:$0x3] %vm235_vm6, %v234_v59  }
  0x97   :  { %247 = vst.msk [vmem:[#allocation0] sm:$0x3] %vm246_vm7, %v245_v60  }
  0x99   :  { %v255_v61 = vpop.permute.xlu0 %254   ;;  %v266_v62 = vpop.permute.xlu1 %265  }
  0x9a   :  { %258 = vst.msk [vmem:[#allocation0 + $0x10] sm:$0x3] %vm256_vm8, %v255_v61  }
  0x9b   :  { %269 = vst.msk [vmem:[#allocation0 + $0x20] sm:$0x3] %vm267_vm9, %v266_v62  }
  0x9d   :  { %v277_v63 = vpop.permute.xlu0 %276   ;;  %v288_v0 = vpop.permute.xlu1 %287  }
  0x9e   :  { %280 = vst.msk [vmem:[#allocation0 + $0x8] sm:$0x3] %vm278_vm10, %v277_v63  }
  0x9f   :  { %291 = vst.msk [vmem:[#allocation0 + $0x18] sm:$0x3] %vm289_vm11, %v288_v0  }
  0xa1   :  { %v299_v1 = vpop.permute.xlu0 %298   ;;  %v310_v2 = vpop.permute.xlu1 %309  }
  0xa2   :  { %302 = vst.msk [vmem:[#allocation0 + $0x28] sm:$0x3] %vm300_vm12, %v299_v1  }
  0xa3   :  { %312 = vst.msk [vmem:[#allocation0] sm:$0x3] %vm311_vm13, %v310_v2  }
  0xa5   :  { %v320_v3 = vpop.permute.xlu0 %319   ;;  %v331_v4 = vpop.permute.xlu1 %330  }
  0xa6   :  { %323 = vst.msk [vmem:[#allocation0 + $0x10] sm:$0x3] %vm321_vm14, %v320_v3  }
  0xa7   :  { %334 = vst.msk [vmem:[#allocation0 + $0x20] sm:$0x3] %vm332_vm15, %v331_v4  }
  0xa9   :  { %v342_v5 = vpop.permute.xlu0 %341   ;;  %v353_v7 = vpop.permute.xlu1 %352  }
  0xaa   :  { %345 = vst.msk [vmem:[#allocation0 + $0x8] sm:$0x3] %vm343_vm0, %v342_v5   ;;  %v371_v6 = vld [vmem:[#allocation0] sm:$0x3] }
  0xab   :  { %373 = vst [vmem:[%s823_s1] sm:$0x3] %v371_v6  ;;  %356 = vst.msk [vmem:[#allocation0 + $0x18] sm:$0x3] %vm354_vm1, %v353_v7  }
  0xad   :  { %v380_v8 = vld [vmem:[#allocation0 + $0x10] sm:$0x3]  ;;  %v364_v9 = vpop.permute.xlu0 %363  }
  0xae   :  { %482 = vst [vmem:[%s823_s1 + $0x4] sm:$0x3] %v380_v8  ;;  %367 = vst.msk [vmem:[#allocation0 + $0x28] sm:$0x3] %vm365_vm2, %v364_v9   ;;  %v392_v10 = vld [vmem:[#allocation0 + $0x20] sm:$0x3] }
  0xaf   :  { %484 = vst [vmem:[%s823_s1 + $0x8] sm:$0x3] %v392_v10 }
  0xb1   :  { %v375_v11 = vld [vmem:[#allocation0 + $0x8] sm:$0x3] }
  0xb2   :  { %481 = vst [vmem:[%s823_s1 + $0x2] sm:$0x3] %v375_v11  ;;  %v386_v12 = vld [vmem:[#allocation0 + $0x18] sm:$0x3] }
  0xb3   :  { %483 = vst [vmem:[%s823_s1 + $0x6] sm:$0x3] %v386_v12 }
  0xb5   :  { %v398_v13 = vld [vmem:[#allocation0 + $0x28] sm:$0x3] }
  0xb6   :  { %485 = vst [vmem:[%s823_s1 + $0xa] sm:$0x3] %v398_v13 }

// kernel: tile.13
= control target key start
LH: loop header
LB: loop body
LE: loop exit
PB: predicated region body
PF: predicated region fallthrough
CT: control target
= control target key end

     0   :  { %s28_s0 = inlined_call_operand.vmem [shape: f32[16], index: 0, kind: input, shape index: {}]   ;;  %s29_s1 = inlined_call_operand.vmem [shape: f32[11,16], index: 1, kind: output, shape index: {}]  }
   0x1   :  { %v4_v0 = vld [vmem:[%s28_s0] ss:$0 sm:$0xff] }
   0x2   :  { %5 = vst [vmem:[%s29_s1] sm:$0xff] %v4_v0  ;;  %8 = vst [vmem:[%s29_s1 + $0x8] sm:$0xff] %v4_v0 }

// kernel: tile.14
= control target key start
LH: loop header
LB: loop body
LE: loop exit
PB: predicated region body
PF: predicated region fallthrough
CT: control target
= control target key end

     0   :  { %s76_s10 = smov 112   ;;  %s77_s11 = smov 80   ;;  %vm4_vm0 = vcmask 130048   ;;  %vm10_vm1 = vcmask 1048448   ;;  %vm16_vm2 = vcmask 917248   ;;  %vm22_vm3 = vcmask 786048   ;;  %s123_s0 = inlined_call_operand.vmem [shape: f32[11,16], index: 0, kind: input, shape index: {}]   ;;  %s124_s1 = inlined_call_operand.vmem [shape: f32[1,176], index: 1, kind: output, shape index: {}]  }
   0x1   :  { %v61_v0 = vld [vmem:[%s123_s0 + $0x7] sm:$0x1]   ;;  %v63_v1 = vld [vmem:[%s123_s0 + $0x5] sm:$0x1]   ;;  %v62_v2 = vld [vmem:[%s123_s0 + $0x6] sm:$0x1]  }
   0x2   :  { %8 = vrot.lane.b32.xlu0 %v61_v0, %s76_s10  ;;  %20 = vrot.lane.b32.xlu1 %v63_v1, %s77_s11  ;;  %v64_v3 = vld [vmem:[%s123_s0 + $0x4] sm:$0x1]   ;;  %s37_s16 = smov 3  ;;  %s2_s17 = smov 3  ;;  %v65_v5 = vld [vmem:[%s123_s0 + $0x3] sm:$0x1]  }
   0x3   :  { %s78_s18 = smov 96   ;;  %s79_s19 = smov 64   ;;  %v3_v4 = vld [vmem:[%s123_s0] ss:$8 sm:%s2_s17]   ;;  %v66_v6 = vld [vmem:[%s123_s0 + $0x2] ss:$8 sm:%s37_s16]  }
   0x4   :  { %5 = vst.msk [vmem:[#allocation0] ss:$8 sm:$0x3] %vm4_vm0, %v3_v4   ;;  %s44_s26 = smov 3  ;;  %s80_s27 = smov 48   ;;  %vm28_vm4 = vcmask 654848  }
   0x5   :  { %s81_s28 = smov 32   ;;  %v67_v7 = vld [vmem:[%s123_s0 + $0x1] ss:$8 sm:%s44_s26]   ;;  %s82_s0 = smov 16   ;;  %vm34_vm5 = vcmask 523648   ;;  %vm41_vm6 = vcmask 392448  }
   0x6   :  { %14 = vrot.lane.b32.xlu0 %v62_v2, %s78_s18  ;;  %26 = vrot.lane.b32.xlu1 %v64_v3, %s79_s19  ;;  %vm48_vm7 = vcmask 261248  }
   0xa   :  { %32 = vrot.lane.b32.xlu0 %v65_v5, %s80_s27  ;;  %39 = vrot.lane.b32.xlu1 %v66_v6, %s81_s28 }
   0xe   :  { %46 = vrot.lane.b32.xlu0 %v67_v7, %s82_s0 }
  0x74   :  { %v9_v8 = vpop.permute.xlu0 %8   ;;  %v21_v9 = vpop.permute.xlu1 %20  }
  0x75   :  { %11 = vst.msk [vmem:[#allocation0] sm:$0x1] %vm10_vm1, %v9_v8  }
  0x78   :  { %v15_v10 = vpop.permute.xlu0 %14   ;;  %v27_v11 = vpop.permute.xlu1 %26  }
  0x79   :  { %17 = vst.msk [vmem:[#allocation0] sm:$0x1] %vm16_vm2, %v15_v10  }
  0x7a   :  { %23 = vst.msk [vmem:[#allocation0] sm:$0x1] %vm22_vm3, %v21_v9  }
  0x7b   :  { %29 = vst.msk [vmem:[#allocation0] sm:$0x1] %vm28_vm4, %v27_v11  }
  0x7c   :  { %v33_v12 = vpop.permute.xlu0 %32   ;;  %v40_v13 = vpop.permute.xlu1 %39  }
  0x7d   :  { %35 = vst.msk [vmem:[#allocation0] sm:$0x1] %vm34_vm5, %v33_v12  }
  0x7e   :  { %42 = vst.msk [vmem:[#allocation0] ss:$8 sm:$0x3] %vm41_vm6, %v40_v13  }
  0x80   :  { %v47_v14 = vpop.permute.xlu0 %46  }
  0x81   :  { %49 = vst.msk [vmem:[#allocation0] ss:$8 sm:$0x3] %vm48_vm7, %v47_v14  }
  0x88   :  { %v53_v15 = vld [vmem:[#allocation0] sm:$0x1]  ;;  %v57_v16 = vld [vmem:[#allocation0 + $0x8] sm:$0x1] }
  0x89   :  { %55 = vst [vmem:[%s124_s1] sm:$0x1] %v53_v15  ;;  %68 = vst [vmem:[%s124_s1 + $0x1] sm:$0x1] %v57_v16 }

// kernel: tile.18
= control target key start
LH: loop header
LB: loop body
LE: loop exit
PB: predicated region body
PF: predicated region fallthrough
CT: control target
= control target key end

     0   :  { %s22_s0 = inlined_call_operand.vmem [shape: f32[32], index: 0, kind: input, shape index: {}]   ;;  %s23_s1 = inlined_call_operand.vmem [shape: f32[4,32], index: 1, kind: output, shape index: {}]  }
   0x1   :  { %v4_v0 = vld [vmem:[%s22_s0] ss:$0 sm:$0xff] }
   0x2   :  { %5 = vst [vmem:[%s23_s1] sm:$0xf] %v4_v0 }

// kernel: tile.19
= control target key start
LH: loop header
LB: loop body
LE: loop exit
PB: predicated region body
PF: predicated region fallthrough
CT: control target
= control target key end

     0   :  { %vm7_vm0 = vcmask 261120   ;;  %s37_s8 = smov 32   ;;  %s38_s9 = smov 64   ;;  %vm13_vm1 = vcmask 1048320   ;;  %vm19_vm2 = vcmask 785920   ;;  %vm25_vm3 = vcmask 523520   ;;  %s55_s0 = inlined_call_operand.vmem [shape: f32[4,32], index: 0, kind: input, shape index: {}]   ;;  %s56_s1 = inlined_call_operand.vmem [shape: f32[1,128], index: 1, kind: output, shape index: {}]  }
   0x1   :  { %v4_v0 = vld [vmem:[%s55_s0] sm:$0xf]  ;;  %s36_s0 = smov 96  }
   0x2   :  { %5 = vst [vmem:[#allocation1] sm:$0xf] %v4_v0 }
   0x9   :  { %v10_v1 = vld [vmem:[#allocation1 + $0x3] sm:$0x1]   ;;  %v22_v2 = vld [vmem:[#allocation1 + $0x1] sm:$0x1]   ;;  %v6_v3 = vld [vmem:[#allocation1] sm:$0x1]  }
   0xa   :  { %11 = vrot.lane.b32.xlu0 %v10_v1, %s36_s0  ;;  %23 = vrot.lane.b32.xlu1 %v22_v2, %s37_s8  ;;  %v16_v4 = vld [vmem:[#allocation1 + $0x2] sm:$0x1]   ;;  %8 = vst.msk [vmem:[#allocation0] sm:$0x1] %vm7_vm0, %v6_v3  }
   0xe   :  { %17 = vrot.lane.b32.xlu0 %v16_v4, %s38_s9 }
  0x7c   :  { %v12_v5 = vpop.permute.xlu0 %11   ;;  %v24_v6 = vpop.permute.xlu1 %23  }
  0x7d   :  { %14 = vst.msk [vmem:[#allocation0] sm:$0x1] %vm13_vm1, %v12_v5  }
  0x80   :  { %v18_v7 = vpop.permute.xlu0 %17  }
  0x81   :  { %20 = vst.msk [vmem:[#allocation0] sm:$0x1] %vm19_vm2, %v18_v7  }
  0x82   :  { %26 = vst.msk [vmem:[#allocation0] sm:$0x1] %vm25_vm3, %v24_v6  }
  0x89   :  { %v30_v8 = vld [vmem:[#allocation0] sm:$0x1] }
  0x8a   :  { %32 = vst [vmem:[%s56_s1] sm:$0x1] %v30_v8 }

// kernel: classifier_forward.1
= control target key start
LH: loop header
LB: loop body
LE: loop exit
PB: predicated region body
PF: predicated region fallthrough
CT: control target
= control target key end

     0   :  { %vm96_vm0 = vcmask 785408   ;;  %s4129_s30 = smov 72   ;;  %s4130_s28 = smov 16   ;;  %vm185_vm1 = vcmask 588800   ;;  %vm293_vm2 = vcmask 130048   ;;  %vm400_vm3 = vcmask 719872   ;;  %s5750_s0 = inlined_call_operand.vmem [shape: f32[8,784], index: 0, kind: input, shape index: {}]   ;;  %s5751_s1 = inlined_call_operand.vmem [shape: f32[224,176], index: 1, kind: input, shape index: {}]   ;;  %s5752_s2 = inlined_call_operand.vmem [shape: f32[1,176], index: 2, kind: input, shape index: {}]   ;;  %s5753_s3 = inlined_call_operand.vmem [shape: f32[640,128], index: 3, kind: input, shape index: {}]   ;;  %s5754_s4 = inlined_call_operand.vmem [shape: f32[1,128], index: 4, kind: input, shape index: {}]   ;;  %s5755_s5 = inlined_call_operand.vmem [shape: f32[288,128], index: 5, kind: input, shape index: {}]   ;;  %s5756_s6 = inlined_call_operand.vmem [shape: f32[1,128], index: 6, kind: input, shape index: {}]   ;;  %s5757_s7 = inlined_call_operand.vmem [shape: f32[8,128], index: 7, kind: output, shape index: {}]  }
   0x1   :  { %v4187_v0 = vld [vmem:[%s5750_s0 + $0x8] sm:$0xff]  ;;  %v4192_v1 = vld [vmem:[%s5750_s0] sm:$0xff]  ;;  %v4197_v2 = vld [vmem:[%s5750_s0 + $0x10] sm:$0xff]  ;;  %s4131_s22 = smov 88   ;;  %s4132_s18 = smov 32   ;;  %vm279_vm4 = vcmask 261120  }
   0x2   :  { %181 = vrot.lane.b32.xlu0 %v4187_v0, %s4129_s30  ;;  %179 = vrot.lane.b32.xlu1 %v4192_v1, %s4129_s30  ;;  %v27_v3 = vld [vmem:[%s5751_s1 + $0x8] sm:$0xff]  ;;  %v29_v4 = vld [vmem:[%s5751_s1 + $0x18] sm:$0xff]  ;;  %s4133_s27 = smov 104   ;;  %s4134_s13 = smov 48   ;;  %vm715_vm5 = vcmask 392192   ;;  %vm609_vm6 = vcmask 850944  }
   0x3   :  { %v4207_v5 = vpack.c.bf16 %v29_v4, %v27_v3  ;;  %v26_v6 = vld [vmem:[%s5751_s1] sm:$0xff]  ;;  %v28_v7 = vld [vmem:[%s5751_s1 + $0x10] sm:$0xff]  ;;  %v31_v8 = vld [vmem:[%s5751_s1 + $0x28] sm:$0xff]  ;;  %2526 = vmatprep.mubr.msk.f32.mxu0 %vm96_vm0, %v4187_v0  ;;  %s4136_s17 = smov 64   ;;  %s4137_s20 = smov 8   ;;  %vm924_vm7 = vcmask 523264  }
   0x4   :  { %v4220_v9 = vpack.c.bf16 %v28_v7, %v26_v6  ;;  %v33_v10 = vld [vmem:[%s5751_s1 + $0x38] sm:$0xff]  ;;  %v30_v11 = vld [vmem:[%s5751_s1 + $0x20] sm:$0xff]  ;;  %v32_v12 = vld [vmem:[%s5751_s1 + $0x30] sm:$0xff]  ;;  %s4138_s21 = smov 80   ;;  %vm818_vm8 = vcmask 982016   ;;  %vm1031_vm9 = vcmask 64512  }
   0x5   :  { %3080 = vmatprep.subr.bf16.mxu0 %v4207_v5  ;;  %v4232_v13 = vpack.c.bf16 %v33_v10, %v31_v8  ;;  %v35_v14 = vld [vmem:[%s5751_s1 + $0x48] sm:$0xff]  ;;  %v37_v15 = vld [vmem:[%s5751_s1 + $0x58] sm:$0xff]  ;;  %3136 = vmatprep.subr.bf16.mxu1 %v4207_v5  ;;  %v4244_v16 = vpack.c.bf16 %v32_v12, %v30_v11  ;;  %v34_v18 = vld [vmem:[%s5751_s1 + $0x40] sm:$0xff]  ;;  %vm1138_vm10 = vcmask 654336   ;;  %vm272_vm11 = vcmask 916480  }
   0x6   :  { %183 = vrot.lane.b32.xlu0 %v4197_v2, %s4129_s30  ;;  %289 = vrot.lane.b32.xlu1 %v4187_v0, %s4130_s28  ;;  %v4248_v17 = vpack.c.bf16 %v37_v15, %v35_v14  ;;  %v36_v19 = vld [vmem:[%s5751_s1 + $0x50] sm:$0xff]  ;;  %v39_v20 = vld [vmem:[%s5751_s1 + $0x68] sm:$0xff]  ;;  %vm4141_vm12 = vmmov 0   ;;  %s4143_s30 = smov 96  }
   0x7   :  { %3082 = vmatpush1.bf16.msra.mxu0 %v4220_v9  ;;  %3138 = vmatpush1.bf16.msra.mxu1 %v4220_v9  ;;  %v41_v21 = vld [vmem:[%s5751_s1 + $0x78] sm:$0xff]  ;;  %v4266_v22 = vpack.c.bf16 %v36_v19, %v34_v18  ;;  %v38_v24 = vld [vmem:[%s5751_s1 + $0x60] sm:$0xff]  ;;  %v40_v25 = vld [vmem:[%s5751_s1 + $0x70] sm:$0xff] }
   0x8   :  { %3084 = vmatprep.subr.bf16.mxu0 %v4232_v13  ;;  %3140 = vmatprep.subr.bf16.mxu1 %v4232_v13  ;;  %v4270_v23 = vpack.c.bf16 %v41_v21, %v39_v20  ;;  %v43_v26 = vld [vmem:[%s5751_s1 + $0x88] sm:$0xff]  ;;  %v45_v27 = vld [vmem:[%s5751_s1 + $0x98] sm:$0xff]  ;;  %v4287_v28 = vpack.c.bf16 %v40_v25, %v38_v24  ;;  %v42_v30 = vld [vmem:[%s5751_s1 + $0x80] sm:$0xff] }
   0x9   :  { %v4291_v29 = vpack.c.bf16 %v45_v27, %v43_v26  ;;  %v44_v31 = vld [vmem:[%s5751_s1 + $0x90] sm:$0xff]  ;;  %v47_v32 = vld [vmem:[%s5751_s1 + $0xa8] sm:$0xff]  ;;  %v49_v33 = vld [vmem:[%s5751_s1 + $0xb8] sm:$0xff] }
   0xa   :  { %291 = vrot.lane.b32.xlu0 %v4197_v2, %s4130_s28  ;;  %287 = vrot.lane.b32.xlu1 %v4192_v1, %s4130_s28  ;;  %v4309_v34 = vld [vmem:[%s5750_s0 + $0x18] sm:$0xff]  ;;  %v4313_v35 = vpack.c.bf16 %v44_v31, %v42_v30  ;;  %v4317_v36 = vpack.c.bf16 %v49_v33, %v47_v32  ;;  %v46_v37 = vld [vmem:[%s5751_s1 + $0xa0] sm:$0xff] }
   0xb   :  { %3086 = vmatpush1.bf16.msra.mxu0 %v4244_v16  ;;  %3142 = vmatpush1.bf16.msra.mxu1 %v4244_v16  ;;  %v48_v38 = vld [vmem:[%s5751_s1 + $0xb0] sm:$0xff]  ;;  %v51_v39 = vld [vmem:[%s5751_s1 + $0xc8] sm:$0xff]  ;;  %v53_v40 = vld [vmem:[%s5751_s1 + $0xd8] sm:$0xff] }
   0xc   :  { %3088 = vmatprep.subr.bf16.mxu0 %v4248_v17  ;;  %3144 = vmatprep.subr.bf16.mxu1 %v4248_v17  ;;  %v4336_v41 = vpack.c.bf16 %v48_v38, %v46_v37  ;;  %v4341_v42 = vpack.c.bf16 %v53_v40, %v51_v39  ;;  %v50_v43 = vld [vmem:[%s5751_s1 + $0xc0] sm:$0xff]  ;;  %v52_v44 = vld [vmem:[%s5751_s1 + $0xd0] sm:$0xff]  ;;  %v55_v45 = vld [vmem:[%s5751_s1 + $0xe8] sm:$0xff] }
   0xd   :  { %v57_v46 = vld [vmem:[%s5751_s1 + $0xf8] sm:$0xff]  ;;  %v4359_v47 = vpack.c.bf16 %v52_v44, %v50_v43  ;;  %v54_v49 = vld [vmem:[%s5751_s1 + $0xe0] sm:$0xff]  ;;  %v56_v50 = vld [vmem:[%s5751_s1 + $0xf0] sm:$0xff] }
   0xe   :  { %396 = vrot.lane.b32.xlu0 %v4197_v2, %s4131_s22  ;;  %398 = vrot.lane.b32.xlu1 %v4309_v34, %s4131_s22  ;;  %v4364_v48 = vpack.c.bf16 %v57_v46, %v55_v45  ;;  %v59_v51 = vld [vmem:[%s5751_s1 + $0x108] sm:$0xff]  ;;  %v61_v52 = vld [vmem:[%s5751_s1 + $0x118] sm:$0xff]  ;;  %v4382_v53 = vpack.c.bf16 %v56_v50, %v54_v49 }
   0xf   :  { %3090 = vmatpush1.bf16.msra.mxu0 %v4266_v22  ;;  %3146 = vmatpush1.bf16.msra.mxu1 %v4266_v22  ;;  %v4386_v54 = vpack.c.bf16 %v61_v52, %v59_v51  ;;  %v58_v55 = vld [vmem:[%s5751_s1 + $0x100] sm:$0xff]  ;;  %v60_v56 = vld [vmem:[%s5751_s1 + $0x110] sm:$0xff]  ;;  %v63_v58 = vld [vmem:[%s5751_s1 + $0x128] sm:$0xff] }
  0x10   :  { %3092 = vmatprep.subr.bf16.mxu0 %v4270_v23  ;;  %3148 = vmatprep.subr.bf16.mxu1 %v4270_v23  ;;  %v4398_v57 = vld [vmem:[%s5750_s0 + $0x20] sm:$0xff]  ;;  %v65_v59 = vld [vmem:[%s5751_s1 + $0x138] sm:$0xff]  ;;  %v4409_v60 = vpack.c.bf16 %v60_v56, %v58_v55  ;;  %v64_v63 = vld [vmem:[%s5751_s1 + $0x130] sm:$0xff] }
  0x11   :  { %v4413_v61 = vpack.c.bf16 %v65_v59, %v63_v58  ;;  %v62_v62 = vld [vmem:[%s5751_s1 + $0x120] sm:$0xff]  ;;  %v68_v7 = vld [vmem:[%s5751_s1 + $0x150] sm:$0xff]  ;;  %v71_v8 = vld [vmem:[%s5751_s1 + $0x168] sm:$0xff] }
  0x12   :  { %394 = vrot.lane.b32.xlu0 %v4187_v0, %s4131_s22  ;;  %503 = vrot.lane.b32.xlu1 %v4197_v2, %s4132_s18  ;;  %v4430_v3 = vpack.c.bf16 %v64_v63, %v62_v62  ;;  %v66_v6 = vld [vmem:[%s5751_s1 + $0x140] sm:$0xff]  ;;  %v73_v10 = vld [vmem:[%s5751_s1 + $0x178] sm:$0xff] }
  0x13   :  { %3094 = vmatpush1.bf16.msra.mxu0 %v4287_v28  ;;  %3150 = vmatpush1.bf16.msra.mxu1 %v4287_v28  ;;  %v4450_v11 = vpack.c.bf16 %v68_v7, %v66_v6  ;;  %v4453_v12 = vpack.c.bf16 %v73_v10, %v71_v8  ;;  %v70_v14 = vld [vmem:[%s5751_s1 + $0x160] sm:$0xff]  ;;  %v72_v15 = vld [vmem:[%s5751_s1 + $0x170] sm:$0xff]  ;;  %v75_v18 = vld [vmem:[%s5751_s1 + $0x188] sm:$0xff] }
  0x14   :  { %3096 = vmatprep.subr.bf16.mxu0 %v4291_v29  ;;  %3152 = vmatprep.subr.bf16.mxu1 %v4291_v29  ;;  %v77_v19 = vld [vmem:[%s5751_s1 + $0x198] sm:$0xff]  ;;  %v4472_v20 = vpack.c.bf16 %v72_v15, %v70_v14  ;;  %v74_v24 = vld [vmem:[%s5751_s1 + $0x180] sm:$0xff]  ;;  %v76_v25 = vld [vmem:[%s5751_s1 + $0x190] sm:$0xff] }
  0x15   :  { %v4475_v21 = vpack.c.bf16 %v77_v19, %v75_v18  ;;  %v79_v26 = vld [vmem:[%s5751_s1 + $0x1a8] sm:$0xff]  ;;  %v81_v27 = vld [vmem:[%s5751_s1 + $0x1b8] sm:$0xff]  ;;  %v4492_v30 = vpack.c.bf16 %v76_v25, %v74_v24  ;;  %v78_v32 = vld [vmem:[%s5751_s1 + $0x1a0] sm:$0xff] }
  0x16   :  { %505 = vrot.lane.b32.xlu0 %v4309_v34, %s4132_s18  ;;  %501 = vrot.lane.b32.xlu1 %v4187_v0, %s4132_s18  ;;  %v67_v0 = vld [vmem:[%s5751_s1 + $0x148] sm:$0xff]  ;;  %v4495_v31 = vpack.c.bf16 %v81_v27, %v79_v26  ;;  %v80_v33 = vld [vmem:[%s5751_s1 + $0x1b0] sm:$0xff] }
  0x17   :  { %3098 = vmatpush1.bf16.msra.mxu0 %v4313_v35  ;;  %3154 = vmatpush1.bf16.msra.mxu1 %v4313_v35  ;;  %v4506_v37 = vpack.c.bf16 %v80_v33, %v78_v32  ;;  %v4516_v38 = vld [vmem:[%s5750_s0 + $0x28] sm:$0xff]  ;;  %v1128_v55 = vld [vmem:[%s5750_s0 + $0x30] sm:$0xff] }
  0x18   :  { %3100 = vmatprep.subr.bf16.mxu0 %v4317_v36  ;;  %3156 = vmatprep.subr.bf16.mxu1 %v4317_v36 }
  0x1a   :  { %605 = vrot.lane.b32.xlu0 %v4197_v2, %s4133_s27  ;;  %607 = vrot.lane.b32.xlu1 %v4309_v34, %s4133_s27  ;;  %s4135_s27 = smov 120  }
  0x1b   :  { %3102 = vmatpush1.bf16.msra.mxu0 %v4336_v41  ;;  %3158 = vmatpush1.bf16.msra.mxu1 %v4336_v41 }
  0x1c   :  { %3104 = vmatprep.subr.bf16.mxu0 %v4341_v42  ;;  %3160 = vmatprep.subr.bf16.mxu1 %v4341_v42 }
  0x1e   :  { %711 = vrot.lane.b32.xlu0 %v4309_v34, %s4134_s13  ;;  %713 = vrot.lane.b32.xlu1 %v4398_v57, %s4134_s13 }
  0x1f   :  { %3106 = vmatpush1.bf16.msra.mxu0 %v4359_v47  ;;  %3162 = vmatpush1.bf16.msra.mxu1 %v4359_v47 }
  0x20   :  { %3108 = vmatprep.subr.bf16.mxu0 %v4364_v48  ;;  %3164 = vmatprep.subr.bf16.mxu1 %v4364_v48 }
  0x22   :  { %709 = vrot.lane.b32.xlu0 %v4197_v2, %s4134_s13  ;;  %v69_v2 = vld [vmem:[%s5751_s1 + $0x158] sm:$0xff]  ;;  %814 = vrot.lane.b32.xlu1 %v4309_v34, %s4135_s27 }
  0x23   :  { %3110 = vmatpush1.bf16.msra.mxu0 %v4382_v53  ;;  %3166 = vmatpush1.bf16.msra.mxu1 %v4382_v53  ;;  %v4433_v4 = vpack.c.bf16 %v69_v2, %v67_v0 }
  0x24   :  { %3112 = vmatprep.subr.bf16.mxu0 %v4386_v54  ;;  %3168 = vmatprep.subr.bf16.mxu1 %v4386_v54 }
  0x26   :  { %816 = vrot.lane.b32.xlu0 %v4398_v57, %s4135_s27  ;;  %920 = vrot.lane.b32.xlu1 %v4398_v57, %s4136_s17 }
  0x27   :  { %3114 = vmatpush1.bf16.msra.mxu0 %v4409_v60  ;;  %3170 = vmatpush1.bf16.msra.mxu1 %v4409_v60 }
  0x28   :  { %3116 = vmatprep.subr.bf16.mxu0 %v4413_v61  ;;  %3172 = vmatprep.subr.bf16.mxu1 %v4413_v61 }
  0x2a   :  { %922 = vrot.lane.b32.xlu0 %v4516_v38, %s4136_s17  ;;  %918 = vrot.lane.b32.xlu1 %v4309_v34, %s4136_s17 }
  0x2b   :  { %3118 = vmatpush1.bf16.msra.mxu0 %v4430_v3  ;;  %3174 = vmatpush1.bf16.msra.mxu1 %v4430_v3 }
  0x2c   :  { %3120 = vmatprep.subr.bf16.mxu0 %v4433_v4  ;;  %3176 = vmatprep.subr.bf16.mxu1 %v4433_v4 }
  0x2e   :  { %1027 = vrot.lane.b32.xlu0 %v4398_v57, %s4137_s20  ;;  %1029 = vrot.lane.b32.xlu1 %v4516_v38, %s4137_s20 }
  0x2f   :  { %3122 = vmatpush1.bf16.msra.mxu0 %v4450_v11  ;;  %3178 = vmatpush1.bf16.msra.mxu1 %v4450_v11 }
  0x30   :  { %3124 = vmatprep.subr.bf16.mxu0 %v4453_v12  ;;  %3180 = vmatprep.subr.bf16.mxu1 %v4453_v12 }
  0x32   :  { %1025 = vrot.lane.b32.xlu0 %v4309_v34, %s4137_s20  ;;  %1134 = vrot.lane.b32.xlu1 %v4516_v38, %s4138_s21 }
  0x33   :  { %3126 = vmatpush1.bf16.msra.mxu0 %v4472_v20  ;;  %3182 = vmatpush1.bf16.msra.mxu1 %v4472_v20 }
  0x34   :  { %3128 = vmatprep.subr.bf16.mxu0 %v4475_v21  ;;  %3184 = vmatprep.subr.bf16.mxu1 %v4475_v21 }
  0x36   :  { %1136 = vrot.lane.b32.xlu0 %v1128_v55, %s4138_s21  ;;  %1132 = vrot.lane.b32.xlu1 %v4398_v57, %s4138_s21 }
  0x37   :  { %3130 = vmatpush1.bf16.msra.mxu0 %v4492_v30  ;;  %3186 = vmatpush1.bf16.msra.mxu1 %v4492_v30 }
  0x38   :  { %3132 = vmatprep.subr.bf16.mxu0 %v4495_v31  ;;  %3188 = vmatprep.subr.bf16.mxu1 %v4495_v31 }
  0x3b   :  { %3134 = vmatpush1.bf16.msra.mxu0 %v4506_v37  ;;  %3190 = vmatpush1.bf16.msra.mxu1 %v4506_v37 }
  0x3c   :  { %3192 = vmatprep.subr.bf16.mxu0 %v4207_v5  ;;  %3248 = vmatprep.subr.bf16.mxu1 %v4207_v5 }
  0x3e   :  { %165 = vmatmul.mubr.f32.vlgmr.msra.gmra.mrb[0].mxu0 %v4192_v1 }
  0x3f   :  { %3194 = vmatpush1.bf16.msra.mxu0 %v4220_v9 }
  0x40   :  { %3196 = vmatprep.subr.bf16.mxu0 %v4232_v13 }
  0x43   :  { %3198 = vmatpush1.bf16.msra.mxu0 %v4244_v16 }
  0x44   :  { %3200 = vmatprep.subr.bf16.mxu0 %v4248_v17 }
  0x47   :  { %3202 = vmatpush1.bf16.msra.mxu0 %v4266_v22 }
  0x48   :  { %3204 = vmatprep.subr.bf16.mxu0 %v4270_v23 }
  0x4b   :  { %3206 = vmatpush1.bf16.msra.mxu0 %v4287_v28 }
  0x4c   :  { %3208 = vmatprep.subr.bf16.mxu0 %v4291_v29 }
  0x4f   :  { %3210 = vmatpush1.bf16.msra.mxu0 %v4313_v35 }
  0x50   :  { %3212 = vmatprep.subr.bf16.mxu0 %v4317_v36 }
  0x53   :  { %3214 = vmatpush1.bf16.msra.mxu0 %v4336_v41 }
  0x54   :  { %3216 = vmatprep.subr.bf16.mxu0 %v4341_v42 }
  0x57   :  { %3218 = vmatpush1.bf16.msra.mxu0 %v4359_v47 }
  0x58   :  { %3220 = vmatprep.subr.bf16.mxu0 %v4364_v48 }
  0x5b   :  { %3222 = vmatpush1.bf16.msra.mxu0 %v4382_v53 }
  0x5c   :  { %3224 = vmatprep.subr.bf16.mxu0 %v4386_v54 }
  0x5f   :  { %3226 = vmatpush1.bf16.msra.mxu0 %v4409_v60 }
  0x60   :  { %3228 = vmatprep.subr.bf16.mxu0 %v4413_v61 }
  0x63   :  { %3230 = vmatpush1.bf16.msra.mxu0 %v4430_v3 }
  0x64   :  { %3232 = vmatprep.subr.bf16.mxu0 %v4433_v4 }
  0x67   :  { %3234 = vmatpush1.bf16.msra.mxu0 %v4450_v11 }
  0x68   :  { %3236 = vmatprep.subr.bf16.mxu0 %v4453_v12 }
  0x6b   :  { %3238 = vmatpush1.bf16.msra.mxu0 %v4472_v20 }
  0x6c   :  { %3240 = vmatprep.subr.bf16.mxu0 %v4475_v21 }
  0x6f   :  { %3242 = vmatpush1.bf16.msra.mxu0 %v4492_v30 }
  0x70   :  { %3244 = vmatprep.subr.bf16.mxu0 %v4495_v31 }
  0x73   :  { %3246 = vmatpush1.bf16.msra.mxu0 %v4506_v37 }
  0x74   :  { %v182_v1 = vpop.permute.xlu0 %181  ;;  %v180_v39 = vpop.permute.xlu1 %179  ;;  %3304 = vmatprep.subr.bf16.mxu0 %v4207_v5 }
  0x75   :  { %v186_v44 = vsel %vm185_vm1, %v180_v39, %v182_v1 }
  0x78   :  { %v184_v34 = vpop.permute.xlu0 %183  ;;  %v290_v40 = vpop.permute.xlu1 %289 }
  0x79   :  { %v187_v43 = vsel %vm185_vm1, %v182_v1, %v184_v34 }
  0x7a   :  { %2527 = vmatprep.mubr.msk.f32.mxu1 %vm96_vm0, %v187_v43 }
  0x7b   :  { %256 = vmatmul.mubr.f32.vlgmr.msra.gmra.mrb[0].mxu1 %v186_v44 }
  0x7c   :  { %3250 = vmatpush1.bf16.msra.mxu1 %v4220_v9  ;;  %v292_v45 = vpop.permute.xlu0 %291  ;;  %v288_v46 = vpop.permute.xlu1 %287 }
  0x7d   :  { %v295_v49 = vsel %vm293_vm2, %v290_v40, %v292_v45  ;;  %v294_v50 = vsel %vm293_vm2, %v288_v46, %v290_v40  ;;  %3252 = vmatprep.subr.bf16.mxu1 %v4232_v13 }
  0x7e   :  { %2528 = vmatprep.mubr.msk.f32.mxu0 %vm96_vm0, %v295_v49 }
  0x7f   :  { %364 = vmatmul.mubr.f32.vlgmr.msra.gmra.mrb[2].mxu0 %v294_v50 }
  0x80   :  { %3254 = vmatpush1.bf16.msra.mxu1 %v4244_v16  ;;  %3306 = vmatpush1.bf16.msra.mxu0 %v4220_v9  ;;  %v4564_v51 = vpop.permute.xlu0 %396  ;;  %v399_v56 = vpop.permute.xlu1 %398 }
  0x81   :  { %3256 = vmatprep.subr.bf16.mxu1 %v4248_v17  ;;  %3308 = vmatprep.subr.bf16.mxu0 %v4232_v13  ;;  %v402_v58 = vsel %vm400_vm3, %v4564_v51, %v399_v56 }
  0x82   :  { %2529 = vmatprep.mubr.msk.f32.mxu1 %vm96_vm0, %v402_v58 }
  0x84   :  { %3258 = vmatpush1.bf16.msra.mxu1 %v4266_v22  ;;  %3310 = vmatpush1.bf16.msra.mxu0 %v4244_v16  ;;  %v395_v52 = vpop.permute.xlu0 %394  ;;  %v504_v62 = vpop.permute.xlu1 %503 }
  0x85   :  { %3260 = vmatprep.subr.bf16.mxu1 %v4270_v23  ;;  %3312 = vmatprep.subr.bf16.mxu0 %v4248_v17  ;;  %v401_v0 = vsel %vm400_vm3, %v395_v52, %v4564_v51 }
  0x88   :  { %3262 = vmatpush1.bf16.msra.mxu1 %v4287_v28  ;;  %3314 = vmatpush1.bf16.msra.mxu0 %v4266_v22  ;;  %v506_v59 = vpop.permute.xlu0 %505  ;;  %v502_v57 = vpop.permute.xlu1 %501 }
  0x89   :  { %3264 = vmatprep.subr.bf16.mxu1 %v4291_v29  ;;  %3316 = vmatprep.subr.bf16.mxu0 %v4270_v23  ;;  %v508_v63 = vsel %vm279_vm4, %v504_v62, %v506_v59  ;;  %v507_v7 = vsel %vm279_vm4, %v502_v57, %v504_v62 }
  0x8a   :  { %2530 = vmatprep.mubr.msk.f32.mxu0 %vm96_vm0, %v508_v63 }
  0x8c   :  { %3266 = vmatpush1.bf16.msra.mxu1 %v4313_v35  ;;  %3318 = vmatpush1.bf16.msra.mxu0 %v4287_v28  ;;  %v4626_v2 = vpop.permute.xlu1 %607  ;;  %v4630_v6 = vpop.permute.xlu0 %605 }
  0x8d   :  { %3268 = vmatprep.subr.bf16.mxu1 %v4317_v36  ;;  %3320 = vmatprep.subr.bf16.mxu0 %v4291_v29  ;;  %v610_v18 = vsel %vm609_vm6, %v4630_v6, %v4626_v2 }
  0x90   :  { %3270 = vmatpush1.bf16.msra.mxu1 %v4336_v41  ;;  %3322 = vmatpush1.bf16.msra.mxu0 %v4313_v35  ;;  %v714_v8 = vpop.permute.xlu1 %713  ;;  %v4639_v10 = vpop.permute.xlu0 %711 }
  0x91   :  { %3272 = vmatprep.subr.bf16.mxu1 %v4341_v42  ;;  %3324 = vmatprep.subr.bf16.mxu0 %v4317_v36  ;;  %v717_v14 = vsel %vm715_vm5, %v4639_v10, %v714_v8 }
  0x94   :  { %3274 = vmatpush1.bf16.msra.mxu1 %v4359_v47  ;;  %3326 = vmatpush1.bf16.msra.mxu0 %v4336_v41  ;;  %v710_v15 = vpop.permute.xlu0 %709  ;;  %v4700_v24 = vpop.permute.xlu1 %814 }
  0x95   :  { %3276 = vmatprep.subr.bf16.mxu1 %v4364_v48  ;;  %3328 = vmatprep.subr.bf16.mxu0 %v4341_v42  ;;  %v716_v25 = vsel %vm715_vm5, %v710_v15, %v4639_v10 }
  0x98   :  { %3278 = vmatpush1.bf16.msra.mxu1 %v4382_v53  ;;  %3330 = vmatpush1.bf16.msra.mxu0 %v4359_v47  ;;  %v4696_v19 = vpop.permute.xlu0 %816  ;;  %v4710_v27 = vpop.permute.xlu1 %920 }
  0x99   :  { %3280 = vmatprep.subr.bf16.mxu1 %v4386_v54  ;;  %3332 = vmatprep.subr.bf16.mxu0 %v4364_v48  ;;  %v819_v34 = vsel %vm818_vm8, %v4700_v24, %v4696_v19  ;;  %v1250_v24 = vld [vmem:[%s5753_s3 + $0x88] sm:$0xff] }
  0x9c   :  { %3282 = vmatpush1.bf16.msra.mxu1 %v4409_v60  ;;  %3334 = vmatpush1.bf16.msra.mxu0 %v4382_v53  ;;  %v923_v26 = vpop.permute.xlu0 %922  ;;  %v919_v39 = vpop.permute.xlu1 %918 }
  0x9d   :  { %3284 = vmatprep.subr.bf16.mxu1 %v4413_v61  ;;  %3336 = vmatprep.subr.bf16.mxu0 %v4386_v54  ;;  %v926_v32 = vsel %vm924_vm7, %v4710_v27, %v923_v26  ;;  %v925_v45 = vsel %vm924_vm7, %v919_v39, %v4710_v27  ;;  %v1233_v26 = vld [vmem:[%s5753_s3] sm:$0xff]  ;;  %v1234_v27 = vld [vmem:[%s5753_s3 + $0x8] sm:$0xff]  ;;  %v1235_v39 = vld [vmem:[%s5753_s3 + $0x10] sm:$0xff] }
  0xa0   :  { %3286 = vmatpush1.bf16.msra.mxu1 %v4430_v3  ;;  %3338 = vmatpush1.bf16.msra.mxu0 %v4409_v60  ;;  %v4763_v1 = vpop.permute.xlu0 %1027  ;;  %v1030_v40 = vpop.permute.xlu1 %1029 }
  0xa1   :  { %3288 = vmatprep.subr.bf16.mxu1 %v4433_v4  ;;  %3340 = vmatprep.subr.bf16.mxu0 %v4413_v61  ;;  %v1033_v44 = vsel %vm1031_vm9, %v4763_v1, %v1030_v40 }
  0xa4   :  { %3290 = vmatpush1.bf16.msra.mxu1 %v4450_v11  ;;  %3342 = vmatpush1.bf16.msra.mxu0 %v4430_v3  ;;  %v4773_v43 = vpop.permute.xlu0 %1025  ;;  %v4786_v49 = vpop.permute.xlu1 %1134 }
  0xa5   :  { %3292 = vmatprep.subr.bf16.mxu1 %v4453_v12  ;;  %3344 = vmatprep.subr.bf16.mxu0 %v4433_v4  ;;  %v1032_v58 = vsel %vm1031_vm9, %v4773_v43, %v4763_v1  ;;  %v1253_v43 = vld [vmem:[%s5753_s3 + $0xa0] sm:$0xff] }
  0xa8   :  { %3294 = vmatpush1.bf16.msra.mxu1 %v4472_v20  ;;  %3346 = vmatpush1.bf16.msra.mxu0 %v4450_v11  ;;  %v1137_v46 = vpop.permute.xlu0 %1136 }
  0xa9   :  { %3296 = vmatprep.subr.bf16.mxu1 %v4475_v21  ;;  %3348 = vmatprep.subr.bf16.mxu0 %v4453_v12  ;;  %v1140_v50 = vsel %vm1138_vm10, %v4786_v49, %v1137_v46  ;;  %v1237_v46 = vld [vmem:[%s5753_s3 + $0x20] sm:$0xff] }
  0xac   :  { %3298 = vmatpush1.bf16.msra.mxu1 %v4492_v30  ;;  %3350 = vmatpush1.bf16.msra.mxu0 %v4472_v20 }
  0xad   :  { %3300 = vmatprep.subr.bf16.mxu1 %v4495_v31  ;;  %3352 = vmatprep.subr.bf16.mxu0 %v4475_v21 }
  0xb0   :  { %3302 = vmatpush1.bf16.msra.mxu1 %v4506_v37  ;;  %3354 = vmatpush1.bf16.msra.mxu0 %v4492_v30 }
  0xb1   :  { %3356 = vmatprep.subr.bf16.mxu0 %v4495_v31  ;;  %3360 = vmatprep.subr.bf16.mxu1 %v4207_v5 }
  0xb3   :  { %471 = vmatmul.mubr.f32.vlgmr.msra.gmra.mrb[2].mxu1 %v401_v0 }
  0xb4   :  { %3358 = vmatpush1.bf16.msra.mxu0 %v4506_v37  ;;  %3362 = vmatpush1.bf16.msra.mxu1 %v4220_v9 }
  0xb5   :  { %3364 = vmatprep.subr.bf16.mxu1 %v4232_v13  ;;  %3416 = vmatprep.subr.bf16.mxu0 %v4207_v5 }
  0xb6   :  { %2531 = vmatprep.mubr.msk.f32.mxu1 %vm96_vm0, %v4626_v2 }
  0xb7   :  { %577 = vmatmul.mubr.f32.vlgmr.msra.gmra.mrb[4].mxu0 %v507_v7 }
  0xb8   :  { %3366 = vmatpush1.bf16.msra.mxu1 %v4244_v16  ;;  %3418 = vmatpush1.bf16.msra.mxu0 %v4220_v9 }
  0xb9   :  { %3368 = vmatprep.subr.bf16.mxu1 %v4248_v17  ;;  %3420 = vmatprep.subr.bf16.mxu0 %v4232_v13 }
  0xba   :  { %2532 = vmatprep.mubr.msk.f32.mxu0 %vm96_vm0, %v717_v14 }
  0xbc   :  { %3370 = vmatpush1.bf16.msra.mxu1 %v4266_v22  ;;  %3422 = vmatpush1.bf16.msra.mxu0 %v4244_v16 }
  0xbd   :  { %3372 = vmatprep.subr.bf16.mxu1 %v4270_v23  ;;  %3424 = vmatprep.subr.bf16.mxu0 %v4248_v17 }
  0xc0   :  { %3374 = vmatpush1.bf16.msra.mxu1 %v4287_v28  ;;  %3426 = vmatpush1.bf16.msra.mxu0 %v4266_v22 }
  0xc1   :  { %3376 = vmatprep.subr.bf16.mxu1 %v4291_v29  ;;  %3428 = vmatprep.subr.bf16.mxu0 %v4270_v23 }
  0xc4   :  { %3378 = vmatpush1.bf16.msra.mxu1 %v4313_v35  ;;  %3430 = vmatpush1.bf16.msra.mxu0 %v4287_v28 }
  0xc5   :  { %3380 = vmatprep.subr.bf16.mxu1 %v4317_v36  ;;  %3432 = vmatprep.subr.bf16.mxu0 %v4291_v29 }
  0xc8   :  { %3382 = vmatpush1.bf16.msra.mxu1 %v4336_v41  ;;  %3434 = vmatpush1.bf16.msra.mxu0 %v4313_v35 }
  0xc9   :  { %3384 = vmatprep.subr.bf16.mxu1 %v4341_v42  ;;  %3436 = vmatprep.subr.bf16.mxu0 %v4317_v36 }
  0xcc   :  { %3386 = vmatpush1.bf16.msra.mxu1 %v4359_v47  ;;  %3438 = vmatpush1.bf16.msra.mxu0 %v4336_v41 }
  0xcd   :  { %3388 = vmatprep.subr.bf16.mxu1 %v4364_v48  ;;  %3440 = vmatprep.subr.bf16.mxu0 %v4341_v42 }
  0xd0   :  { %3390 = vmatpush1.bf16.msra.mxu1 %v4382_v53  ;;  %3442 = vmatpush1.bf16.msra.mxu0 %v4359_v47 }
  0xd1   :  { %3392 = vmatprep.subr.bf16.mxu1 %v4386_v54  ;;  %3444 = vmatprep.subr.bf16.mxu0 %v4364_v48 }
  0xd4   :  { %3394 = vmatpush1.bf16.msra.mxu1 %v4409_v60  ;;  %3446 = vmatpush1.bf16.msra.mxu0 %v4382_v53 }
  0xd5   :  { %3396 = vmatprep.subr.bf16.mxu1 %v4413_v61  ;;  %3448 = vmatprep.subr.bf16.mxu0 %v4386_v54 }
  0xd8   :  { %3398 = vmatpush1.bf16.msra.mxu1 %v4430_v3  ;;  %3450 = vmatpush1.bf16.msra.mxu0 %v4409_v60 }
  0xd9   :  { %3400 = vmatprep.subr.bf16.mxu1 %v4433_v4  ;;  %3452 = vmatprep.subr.bf16.mxu0 %v4413_v61 }
  0xdc   :  { %3402 = vmatpush1.bf16.msra.mxu1 %v4450_v11  ;;  %3454 = vmatpush1.bf16.msra.mxu0 %v4430_v3 }
  0xdd   :  { %3404 = vmatprep.subr.bf16.mxu1 %v4453_v12  ;;  %3456 = vmatprep.subr.bf16.mxu0 %v4433_v4 }
  0xe0   :  { %3406 = vmatpush1.bf16.msra.mxu1 %v4472_v20  ;;  %3458 = vmatpush1.bf16.msra.mxu0 %v4450_v11 }
  0xe1   :  { %3408 = vmatprep.subr.bf16.mxu1 %v4475_v21  ;;  %3460 = vmatprep.subr.bf16.mxu0 %v4453_v12 }
  0xe4   :  { %3410 = vmatpush1.bf16.msra.mxu1 %v4492_v30  ;;  %3462 = vmatpush1.bf16.msra.mxu0 %v4472_v20 }
  0xe5   :  { %3412 = vmatprep.subr.bf16.mxu1 %v4495_v31  ;;  %3464 = vmatprep.subr.bf16.mxu0 %v4475_v21 }
  0xe8   :  { %3414 = vmatpush1.bf16.msra.mxu1 %v4506_v37  ;;  %3466 = vmatpush1.bf16.msra.mxu0 %v4492_v30 }
  0xe9   :  { %3472 = vmatprep.subr.bf16.mxu1 %v4207_v5  ;;  %3468 = vmatprep.subr.bf16.mxu0 %v4495_v31 }
  0xeb   :  { %679 = vmatmul.mubr.f32.vlgmr.msra.gmra.mrb[4].mxu1 %v610_v18 }
  0xec   :  { %3474 = vmatpush1.bf16.msra.mxu1 %v4220_v9  ;;  %3470 = vmatpush1.bf16.msra.mxu0 %v4506_v37 }
  0xed   :  { %3476 = vmatprep.subr.bf16.mxu1 %v4232_v13  ;;  %3528 = vmatprep.subr.bf16.mxu0 %v4207_v5 }
  0xee   :  { %2533 = vmatprep.mubr.msk.f32.mxu1 %vm96_vm0, %v4696_v19  ;;  %v1249_v19 = vld [vmem:[%s5753_s3 + $0x80] sm:$0xff] }
  0xef   :  { %786 = vmatmul.mubr.f32.vlgmr.msra.gmra.mrb[6].mxu0 %v716_v25  ;;  %v4915_v25 = vpack.c.bf16 %v1250_v24, %v1249_v19 }
  0xf0   :  { %3478 = vmatpush1.bf16.msra.mxu1 %v4244_v16  ;;  %3530 = vmatpush1.bf16.msra.mxu0 %v4220_v9 }
  0xf1   :  { %3480 = vmatprep.subr.bf16.mxu1 %v4248_v17  ;;  %3532 = vmatprep.subr.bf16.mxu0 %v4232_v13 }
  0xf2   :  { %2534 = vmatprep.mubr.msk.f32.mxu0 %vm96_vm0, %v926_v32  ;;  %v4923_v32 = vpack.c.bf16 %v1234_v27, %v1233_v26 }
  0xf4   :  { %3482 = vmatpush1.bf16.msra.mxu1 %v4266_v22  ;;  %3534 = vmatpush1.bf16.msra.mxu0 %v4244_v16 }
  0xf5   :  { %3484 = vmatprep.subr.bf16.mxu1 %v4270_v23  ;;  %3536 = vmatprep.subr.bf16.mxu0 %v4248_v17 }
  0xf8   :  { %3486 = vmatpush1.bf16.msra.mxu1 %v4287_v28  ;;  %3538 = vmatpush1.bf16.msra.mxu0 %v4266_v22 }
  0xf9   :  { %3488 = vmatprep.subr.bf16.mxu1 %v4291_v29  ;;  %3540 = vmatprep.subr.bf16.mxu0 %v4270_v23 }
  0xfc   :  { %3490 = vmatpush1.bf16.msra.mxu1 %v4313_v35  ;;  %3542 = vmatpush1.bf16.msra.mxu0 %v4287_v28 }
  0xfd   :  { %3492 = vmatprep.subr.bf16.mxu1 %v4317_v36  ;;  %3544 = vmatprep.subr.bf16.mxu0 %v4291_v29 }
 0x100   :  { %3494 = vmatpush1.bf16.msra.mxu1 %v4336_v41  ;;  %3546 = vmatpush1.bf16.msra.mxu0 %v4313_v35 }
 0x101   :  { %3496 = vmatprep.subr.bf16.mxu1 %v4341_v42  ;;  %3548 = vmatprep.subr.bf16.mxu0 %v4317_v36 }
 0x104   :  { %3498 = vmatpush1.bf16.msra.mxu1 %v4359_v47  ;;  %3550 = vmatpush1.bf16.msra.mxu0 %v4336_v41 }
 0x105   :  { %3500 = vmatprep.subr.bf16.mxu1 %v4364_v48  ;;  %3552 = vmatprep.subr.bf16.mxu0 %v4341_v42 }
 0x108   :  { %3502 = vmatpush1.bf16.msra.mxu1 %v4382_v53  ;;  %3554 = vmatpush1.bf16.msra.mxu0 %v4359_v47 }
 0x109   :  { %3504 = vmatprep.subr.bf16.mxu1 %v4386_v54  ;;  %3556 = vmatprep.subr.bf16.mxu0 %v4364_v48 }
 0x10c   :  { %3506 = vmatpush1.bf16.msra.mxu1 %v4409_v60  ;;  %3558 = vmatpush1.bf16.msra.mxu0 %v4382_v53 }
 0x10d   :  { %3508 = vmatprep.subr.bf16.mxu1 %v4413_v61  ;;  %3560 = vmatprep.subr.bf16.mxu0 %v4386_v54 }
 0x110   :  { %3510 = vmatpush1.bf16.msra.mxu1 %v4430_v3  ;;  %3562 = vmatpush1.bf16.msra.mxu0 %v4409_v60 }
 0x111   :  { %3512 = vmatprep.subr.bf16.mxu1 %v4433_v4  ;;  %v4750_v33 = vpop.f32.mrb[0].mxu0  ;;  %3564 = vmatprep.subr.bf16.mxu0 %v4413_v61 }
 0x112   :  { %v4753_v38 = vpop.f32.mrb[1].mxu0 }
 0x114   :  { %3514 = vmatpush1.bf16.msra.mxu1 %v4450_v11  ;;  %3566 = vmatpush1.bf16.msra.mxu0 %v4430_v3 }
 0x115   :  { %3516 = vmatprep.subr.bf16.mxu1 %v4453_v12  ;;  %3568 = vmatprep.subr.bf16.mxu0 %v4433_v4 }
 0x118   :  { %3518 = vmatpush1.bf16.msra.mxu1 %v4472_v20  ;;  %3570 = vmatpush1.bf16.msra.mxu0 %v4450_v11 }
 0x119   :  { %3520 = vmatprep.subr.bf16.mxu1 %v4475_v21  ;;  %3572 = vmatprep.subr.bf16.mxu0 %v4453_v12 }
 0x11c   :  { %3522 = vmatpush1.bf16.msra.mxu1 %v4492_v30  ;;  %3574 = vmatpush1.bf16.msra.mxu0 %v4472_v20 }
 0x11d   :  { %3524 = vmatprep.subr.bf16.mxu1 %v4495_v31  ;;  %3576 = vmatprep.subr.bf16.mxu0 %v4475_v21 }
 0x120   :  { %3526 = vmatpush1.bf16.msra.mxu1 %v4506_v37  ;;  %3578 = vmatpush1.bf16.msra.mxu0 %v4492_v30 }
 0x121   :  { %3584 = vmatprep.subr.bf16.mxu1 %v4207_v5  ;;  %3580 = vmatprep.subr.bf16.mxu0 %v4495_v31 }
 0x123   :  { %888 = vmatmul.mubr.f32.vlgmr.msra.gmra.mrb[6].mxu1 %v819_v34  ;;  %v1236_v34 = vld [vmem:[%s5753_s3 + $0x18] sm:$0xff] }
 0x124   :  { %3586 = vmatpush1.bf16.msra.mxu1 %v4220_v9  ;;  %3582 = vmatpush1.bf16.msra.mxu0 %v4506_v37  ;;  %v4941_v40 = vpack.c.bf16 %v1236_v34, %v1235_v39 }
 0x125   :  { %3588 = vmatprep.subr.bf16.mxu1 %v4232_v13  ;;  %3640 = vmatprep.subr.bf16.mxu0 %v4207_v5  ;;  %v86_v5 = vlaneseq }
 0x126   :  { %2535 = vmatprep.mubr.msk.f32.mxu1 %vm96_vm0, %v1033_v44  ;;  %v1254_v44 = vld [vmem:[%s5753_s3 + $0xa8] sm:$0xff] }
 0x127   :  { %995 = vmatmul.mubr.f32.vlgmr.msra.gmra.mrb[8].mxu0 %v925_v45  ;;  %v4951_v45 = vpack.c.bf16 %v1254_v44, %v1253_v43 }
 0x128   :  { %3590 = vmatpush1.bf16.msra.mxu1 %v4244_v16  ;;  %3642 = vmatpush1.bf16.msra.mxu0 %v4220_v9  ;;  %v87_v9 = vshrl.u32 %v86_v5, 7  ;;  %v1255_v5 = vld [vmem:[%s5753_s3 + $0xb0] sm:$0xff] }
 0x129   :  { %3592 = vmatprep.subr.bf16.mxu1 %v4248_v17  ;;  %3644 = vmatprep.subr.bf16.mxu0 %v4232_v13 }
 0x12a   :  { %2536 = vmatprep.mubr.msk.f32.mxu0 %vm96_vm0, %v1140_v50  ;;  %v88_v13 = vsub.s32 0, %v87_v9 }
 0x12c   :  { %3594 = vmatpush1.bf16.msra.mxu1 %v4266_v22  ;;  %3646 = vmatpush1.bf16.msra.mxu0 %v4244_v16  ;;  %v82_v16 = vld [vmem:[%s5752_s2] sm:$0x3]  ;;  %s4139_s2 = smov 112  }
 0x12d   :  { %3596 = vmatprep.subr.bf16.mxu1 %v4270_v23  ;;  %3648 = vmatprep.subr.bf16.mxu0 %v4248_v17  ;;  %v92_v17 = vsub.s32 1, %v87_v9  ;;  %v1256_v9 = vld [vmem:[%s5753_s3 + $0xb8] sm:$0xff] }
 0x130   :  { %3598 = vmatpush1.bf16.msra.mxu1 %v4287_v28  ;;  %3650 = vmatpush1.bf16.msra.mxu0 %v4266_v22  ;;  %v4828_v22 = vrot.slane %v82_v16, %v88_v13  ;;  %v4969_v13 = vpack.c.bf16 %v1256_v9, %v1255_v5 }
 0x131   :  { %3600 = vmatprep.subr.bf16.mxu1 %v4291_v29  ;;  %3652 = vmatprep.subr.bf16.mxu0 %v4270_v23  ;;  %v4832_v23 = vrot.slane %v82_v16, %v92_v17  ;;  %v1239_v16 = vld [vmem:[%s5753_s3 + $0x30] sm:$0xff]  ;;  %v1240_v17 = vld [vmem:[%s5753_s3 + $0x38] sm:$0xff] }
 0x134   :  { %3602 = vmatpush1.bf16.msra.mxu1 %v4313_v35  ;;  %3654 = vmatpush1.bf16.msra.mxu0 %v4287_v28  ;;  %v167_v28 = vadd.f32 %v4750_v33, %v4828_v22  ;;  %v1251_v33 = vld [vmem:[%s5753_s3 + $0x90] sm:$0xff] }
 0x135   :  { %3604 = vmatprep.subr.bf16.mxu1 %v4317_v36  ;;  %3656 = vmatprep.subr.bf16.mxu0 %v4291_v29  ;;  %v169_v29 = vadd.f32 %v4753_v38, %v4832_v23  ;;  %v1252_v38 = vld [vmem:[%s5753_s3 + $0x98] sm:$0xff] }
 0x136   :  { %v4933_v1 = vpack.c.bf16 %v1252_v38, %v1251_v33 }
 0x138   :  { %3606 = vmatpush1.bf16.msra.mxu1 %v4336_v41  ;;  %3658 = vmatpush1.bf16.msra.mxu0 %v4313_v35 }
 0x139   :  { %3608 = vmatprep.subr.bf16.mxu1 %v4341_v42  ;;  %3660 = vmatprep.subr.bf16.mxu0 %v4317_v36 }
 0x13c   :  { %3610 = vmatpush1.bf16.msra.mxu1 %v4359_v47  ;;  %3662 = vmatpush1.bf16.msra.mxu0 %v4336_v41 }
 0x13d   :  { %3612 = vmatprep.subr.bf16.mxu1 %v4364_v48  ;;  %3664 = vmatprep.subr.bf16.mxu0 %v4341_v42 }
 0x140   :  { %3614 = vmatpush1.bf16.msra.mxu1 %v4382_v53  ;;  %3666 = vmatpush1.bf16.msra.mxu0 %v4359_v47  ;;  %v171_v47 = vmax.f32 %v167_v28, 0.0  ;;  %v4977_v28 = vpack.c.bf16 %v1240_v17, %v1239_v16 }
 0x141   :  { %3616 = vmatprep.subr.bf16.mxu1 %v4386_v54  ;;  %3668 = vmatprep.subr.bf16.mxu0 %v4364_v48 }
 0x144   :  { %3618 = vmatpush1.bf16.msra.mxu1 %v4409_v60  ;;  %3670 = vmatpush1.bf16.msra.mxu0 %v4382_v53  ;;  %v172_v53 = vmax.f32 %v169_v29, 0.0  ;;  %v1257_v29 = vld [vmem:[%s5753_s3 + $0xc0] sm:$0xff] }
 0x145   :  { %3620 = vmatprep.subr.bf16.mxu1 %v4413_v61  ;;  %3672 = vmatprep.subr.bf16.mxu0 %v4386_v54 }
 0x148   :  { %3622 = vmatpush1.bf16.msra.mxu1 %v4430_v3  ;;  %3674 = vmatpush1.bf16.msra.mxu0 %v4409_v60 }
 0x149   :  { %3624 = vmatprep.subr.bf16.mxu1 %v4433_v4  ;;  %3676 = vmatprep.subr.bf16.mxu0 %v4413_v61 }
 0x14c   :  { %3626 = vmatpush1.bf16.msra.mxu1 %v4450_v11  ;;  %3678 = vmatpush1.bf16.msra.mxu0 %v4430_v3 }
 0x14d   :  { %3628 = vmatprep.subr.bf16.mxu1 %v4453_v12  ;;  %3680 = vmatprep.subr.bf16.mxu0 %v4433_v4 }
 0x14e   :  { %v257_v35 = vpop.f32.mrb[0].mxu1 }
 0x14f   :  { %v258_v36 = vadd.f32 %v257_v35, %v4828_v22  ;;  %v259_v41 = vpop.f32.mrb[1].mxu1  ;;  %v1258_v35 = vld [vmem:[%s5753_s3 + $0xc8] sm:$0xff] }
 0x150   :  { %v260_v42 = vadd.f32 %v259_v41, %v4832_v23  ;;  %3630 = vmatpush1.bf16.msra.mxu1 %v4472_v20  ;;  %3682 = vmatpush1.bf16.msra.mxu0 %v4450_v11  ;;  %v1241_v41 = vld [vmem:[%s5753_s3 + $0x40] sm:$0xff] }
 0x151   :  { %v262_v48 = vmax.f32 %v258_v36, 0.0  ;;  %3632 = vmatprep.subr.bf16.mxu1 %v4475_v21  ;;  %3684 = vmatprep.subr.bf16.mxu0 %v4453_v12  ;;  %v4987_v36 = vpack.c.bf16 %v1258_v35, %v1257_v29  ;;  %v1281_v29 = vld [vmem:[%s5753_s3 + $0x180] sm:$0xff]  ;;  %v5760_v35 = vmov 0.0|0.0  }
 0x152   :  { %v263_v54 = vmax.f32 %v260_v42, 0.0  ;;  %v365_v60 = vpop.f32.mrb[2].mxu0  ;;  %v1242_v42 = vld [vmem:[%s5753_s3 + $0x48] sm:$0xff] }
 0x153   :  { %v4848_v61 = vmax.f32 %v171_v47, %v262_v48  ;;  %v366_v3 = vadd.f32 %v365_v60, %v4828_v22  ;;  %v367_v4 = vpop.f32.mrb[3].mxu0  ;;  %v4995_v47 = vpack.c.bf16 %v1242_v42, %v1241_v41  ;;  %v1297_v41 = vld [vmem:[%s5753_s3 + $0x200] sm:$0xff]  ;;  %v1298_v42 = vld [vmem:[%s5753_s3 + $0x208] sm:$0xff] }
 0x154   :  { %v4851_v51 = vmax.f32 %v172_v53, %v263_v54  ;;  %v368_v52 = vadd.f32 %v367_v4, %v4832_v23  ;;  %3634 = vmatpush1.bf16.msra.mxu1 %v4492_v30  ;;  %3686 = vmatpush1.bf16.msra.mxu0 %v4472_v20  ;;  %v1133_v20 = vpop.permute.xlu1 %1132  ;;  %v1260_v53 = vld [vmem:[%s5753_s3 + $0xd8] sm:$0xff]  ;;  %v1261_v4 = vld [vmem:[%s5753_s3 + $0xe0] sm:$0xff] }
 0x155   :  { %v370_v11 = vmax.f32 %v366_v3, 0.0  ;;  %3636 = vmatprep.subr.bf16.mxu1 %v4495_v31  ;;  %3688 = vmatprep.subr.bf16.mxu0 %v4475_v21  ;;  %v1139_v21 = vsel %vm1138_vm10, %v1133_v20, %v4786_v49  ;;  %v1238_v49 = vld [vmem:[%s5753_s3 + $0x28] sm:$0xff]  ;;  %v1244_v3 = vld [vmem:[%s5753_s3 + $0x58] sm:$0xff] }
 0x156   :  { %v371_v12 = vmax.f32 %v368_v52, 0.0  ;;  %v4959_v50 = vpack.c.bf16 %v1238_v49, %v1237_v46  ;;  %v1262_v52 = vld [vmem:[%s5753_s3 + $0xe8] sm:$0xff] }
 0x157   :  { %v4858_v55 = vmax.f32 %v262_v48, %v370_v11  ;;  %v1259_v48 = vld [vmem:[%s5753_s3 + $0xd0] sm:$0xff]  ;;  %v1246_v20 = vld [vmem:[%s5753_s3 + $0x68] sm:$0xff] }
 0x158   :  { %v4860_v56 = vmax.f32 %v263_v54, %v371_v12  ;;  %3638 = vmatpush1.bf16.msra.mxu1 %v4506_v37  ;;  %3690 = vmatpush1.bf16.msra.mxu0 %v4492_v30  ;;  %v1243_v54 = vld [vmem:[%s5753_s3 + $0x50] sm:$0xff]  ;;  %v5008_v60 = vpack.c.bf16 %v1260_v53, %v1259_v48  ;;  %v5107_v48 = vpack.c.bf16 %v1298_v42, %v1297_v41 }
 0x159   :  { %376 = vrot.lane.b32.xlu0 %v4858_v55, %s4139_s2  ;;  %3692 = vmatprep.subr.bf16.mxu0 %v4495_v31  ;;  %v1299_v53 = vld [vmem:[%s5753_s3 + $0x210] sm:$0xff] }
 0x15a   :  { %378 = vrot.lane.b32.xlu1 %v4860_v56, %s4139_s2  ;;  %3696 = vmatprep.subr.bf16.mxu1 %v4915_v25 }
 0x15b   :  { %1102 = vmatmul.mubr.f32.vlgmr.msra.gmra.mrb[8].mxu1 %v1032_v58  ;;  %v1245_v58 = vld [vmem:[%s5753_s3 + $0x60] sm:$0xff] }
 0x15c   :  { %3694 = vmatpush1.bf16.msra.mxu0 %v4506_v37  ;;  %3698 = vmatpush3.bf16.msra.mxu1 %v4923_v32 }
 0x15d   :  { %3700 = vmatprep.subr.bf16.mxu1 %v4933_v1  ;;  %3759 = vmatprep.subr.bf16.mxu0 %v5760_v35 }
 0x15f   :  { %1209 = vmatmul.mubr.f32.vlgmr.msra.gmra.mrb[10].mxu0 %v1139_v21  ;;  %v1263_v21 = vld [vmem:[%s5753_s3 + $0xf0] sm:$0xff] }
 0x160   :  { %3702 = vmatpush3.bf16.msra.mxu1 %v4941_v40  ;;  %3761 = vmatpush3.bf16.msra.mxu0 %v5107_v48 }
 0x161   :  { %3704 = vmatprep.subr.bf16.mxu1 %v4951_v45  ;;  %3762 = vmatprep.subr.bf16.mxu0 %v5760_v35 }
 0x164   :  { %3706 = vmatpush3.bf16.msra.mxu1 %v4959_v50 }
 0x165   :  { %3708 = vmatprep.subr.bf16.mxu1 %v4969_v13 }
 0x168   :  { %3710 = vmatpush3.bf16.msra.mxu1 %v4977_v28 }
 0x169   :  { %3712 = vmatprep.subr.bf16.mxu1 %v4987_v36 }
 0x16c   :  { %3714 = vmatpush3.bf16.msra.mxu1 %v4995_v47 }
 0x16d   :  { %3716 = vmatprep.subr.bf16.mxu1 %v5008_v60 }
 0x186   :  { %v472_v59 = vpop.f32.mrb[2].mxu1 }
 0x187   :  { %v473_v30 = vadd.f32 %v472_v59, %v4828_v22  ;;  %v474_v62 = vpop.f32.mrb[3].mxu1  ;;  %v1264_v59 = vld [vmem:[%s5753_s3 + $0xf8] sm:$0xff] }
 0x188   :  { %v475_v63 = vadd.f32 %v474_v62, %v4832_v23  ;;  %v5040_v62 = vpack.c.bf16 %v1264_v59, %v1263_v21  ;;  %v1304_v21 = vld [vmem:[%s5753_s3 + $0x238] sm:$0xff] }
 0x189   :  { %v477_v57 = vmax.f32 %v473_v30, 0.0  ;;  %v5037_v30 = vpack.c.bf16 %v1246_v20, %v1245_v58  ;;  %v1303_v20 = vld [vmem:[%s5753_s3 + $0x230] sm:$0xff] }
 0x18a   :  { %v478_v0 = vmax.f32 %v475_v63, 0.0  ;;  %v578_v31 = vpop.f32.mrb[4].mxu0  ;;  %v1247_v63 = vld [vmem:[%s5753_s3 + $0x70] sm:$0xff]  ;;  %v5137_v59 = vpack.c.bf16 %v1304_v21, %v1303_v20  ;;  %v1312_v20 = vld [vmem:[%s5753_s3 + $0x278] sm:$0xff] }
 0x18b   :  { %v4877_v2 = vmax.f32 %v370_v11, %v477_v57  ;;  %v4880_v6 = vadd.f32 %v578_v31, %v4828_v22  ;;  %v580_v7 = vpop.f32.mrb[5].mxu0  ;;  %v5019_v11 = vpack.c.bf16 %v1244_v3, %v1243_v54  ;;  %v1300_v54 = vld [vmem:[%s5753_s3 + $0x218] sm:$0xff] }
 0x18c   :  { %v4882_v37 = vmax.f32 %v371_v12, %v478_v0  ;;  %v4885_v8 = vadd.f32 %v580_v7, %v4832_v23  ;;  %v5021_v12 = vpack.c.bf16 %v1262_v52, %v1261_v4  ;;  %v5116_v3 = vpack.c.bf16 %v1300_v54, %v1299_v53  ;;  %v1301_v4 = vld [vmem:[%s5753_s3 + $0x220] sm:$0xff]  ;;  %v1302_v52 = vld [vmem:[%s5753_s3 + $0x228] sm:$0xff] }
 0x18d   :  { %v583_v10 = vmax.f32 %v4880_v6, 0.0  ;;  %483 = vrot.lane.b32.xlu0 %v4877_v2, %s4139_s2  ;;  %3718 = vmatpush3.bf16.msra.mxu1 %v5019_v11  ;;  %v5126_v58 = vpack.c.bf16 %v1302_v52, %v1301_v4 }
 0x18e   :  { %v584_v14 = vmax.f32 %v4885_v8, 0.0  ;;  %485 = vrot.lane.b32.xlu1 %v4882_v37, %s4139_s2  ;;  %3720 = vmatprep.subr.bf16.mxu1 %v5021_v12 }
 0x18f   :  { %v4895_v15 = vmax.f32 %v477_v57, %v583_v10  ;;  %v1248_v57 = vld [vmem:[%s5753_s3 + $0x78] sm:$0xff]  ;;  %3764 = vmatpush3.bf16.msra.mxu0 %v5116_v3 }
 0x190   :  { %v4899_v18 = vmax.f32 %v478_v0, %v584_v14  ;;  %v5050_v19 = vpack.c.bf16 %v1248_v57, %v1247_v63  ;;  %3765 = vmatprep.subr.bf16.mxu0 %v5760_v35  ;;  %v1305_v63 = vld [vmem:[%s5753_s3 + $0x240] sm:$0xff]  ;;  %v1306_v57 = vld [vmem:[%s5753_s3 + $0x248] sm:$0xff] }
 0x191   :  { %589 = vrot.lane.b32.xlu0 %v4895_v15, %s4139_s2  ;;  %3722 = vmatpush3.bf16.msra.mxu1 %v5037_v30 }
 0x192   :  { %591 = vrot.lane.b32.xlu1 %v4899_v18, %s4139_s2  ;;  %3724 = vmatprep.subr.bf16.mxu1 %v5040_v62 }
 0x193   :  { %3767 = vmatpush3.bf16.msra.mxu0 %v5126_v58 }
 0x194   :  { %3768 = vmatprep.subr.bf16.mxu0 %v5760_v35 }
 0x195   :  { %270 = vrot.lane.b32.xlu0 %v4851_v51, %s4139_s2  ;;  %3726 = vmatpush3.bf16.msra.mxu1 %v5050_v19 }
 0x196   :  { %268 = vrot.lane.b32.xlu1 %v4848_v61, %s4139_s2 }
 0x197   :  { %3770 = vmatpush3.bf16.msra.mxu0 %v5137_v59 }
 0x198   :  { %3771 = vmatprep.subr.bf16.mxu0 %v5760_v35 }
 0x1be   :  { %v680_v0 = vpop.f32.mrb[4].mxu1 }
 0x1bf   :  { %v681_v31 = vadd.f32 %v680_v0, %v4828_v22  ;;  %v682_v7 = vpop.f32.mrb[5].mxu1  ;;  %v5146_v0 = vpack.c.bf16 %v1306_v57, %v1305_v63 }
 0x1c0   :  { %v683_v24 = vadd.f32 %v682_v7, %v4832_v23  ;;  %v1308_v7 = vld [vmem:[%s5753_s3 + $0x258] sm:$0xff] }
 0x1c1   :  { %v685_v26 = vmax.f32 %v681_v31, 0.0  ;;  %v1307_v31 = vld [vmem:[%s5753_s3 + $0x250] sm:$0xff]  ;;  %3773 = vmatpush3.bf16.msra.mxu0 %v5146_v0 }
 0x1c2   :  { %v686_v27 = vmax.f32 %v683_v24, 0.0  ;;  %v787_v33 = vpop.f32.mrb[6].mxu0  ;;  %3774 = vmatprep.subr.bf16.mxu0 %v5760_v35 }
 0x1c3   :  { %v5056_v38 = vmax.f32 %v583_v10, %v685_v26  ;;  %v5059_v39 = vadd.f32 %v787_v33, %v4828_v22  ;;  %v789_v34 = vpop.f32.mrb[7].mxu0  ;;  %v5157_v33 = vpack.c.bf16 %v1308_v7, %v1307_v31 }
 0x1c4   :  { %v5064_v43 = vmax.f32 %v584_v14, %v686_v27  ;;  %v5067_v44 = vadd.f32 %v789_v34, %v4832_v23  ;;  %v1309_v34 = vld [vmem:[%s5753_s3 + $0x260] sm:$0xff] }
 0x1c5   :  { %691 = vrot.lane.b32.xlu1 %v5056_v38, %s4139_s2  ;;  %v792_v6 = vmax.f32 %v5059_v39, 0.0  ;;  %3776 = vmatpush3.bf16.msra.mxu0 %v5157_v33 }
 0x1c6   :  { %v793_v10 = vmax.f32 %v5067_v44, 0.0  ;;  %3777 = vmatprep.subr.bf16.mxu0 %v5760_v35  ;;  %v1311_v44 = vld [vmem:[%s5753_s3 + $0x270] sm:$0xff] }
 0x1c7   :  { %v5073_v46 = vmax.f32 %v685_v26, %v792_v6  ;;  %v5197_v57 = vpack.c.bf16 %v1312_v20, %v1311_v44 }
 0x1c8   :  { %v5077_v49 = vmax.f32 %v686_v27, %v793_v10 }
 0x1c9   :  { %798 = vrot.lane.b32.xlu1 %v5073_v46, %s4139_s2 }
 0x1cb   :  { %v377_v8 = vpop.permute.xlu0 %376 }
 0x1cc   :  { %v379_v14 = vpop.permute.xlu1 %378 }
 0x1cd   :  { %v380_v5 = vsel %vm272_vm11, %v377_v8, %v379_v14  ;;  %v384_v9 = vmax.f32 %v4860_v56, %v379_v14  ;;  %v1282_v56 = vld [vmem:[%s5753_s3 + $0x188] sm:$0xff] }
 0x1ce   :  { %v383_v16 = vmax.f32 %v4858_v55, %v380_v5  ;;  %v5097_v55 = vpack.c.bf16 %v1282_v56, %v1281_v29  ;;  %v1310_v8 = vld [vmem:[%s5753_s3 + $0x268] sm:$0xff] }
 0x1cf   :  { %387 = vst.msk [vmem:[#allocation2 + $0x18] sm:$0xff] %vm279_vm4, %v384_v9  ;;  %v5171_v56 = vpack.c.bf16 %v1310_v8, %v1309_v34 }
 0x1d0   :  { %1324 = vrot.lane.b32.xlu0 %v383_v16, %s4132_s18  ;;  %3728 = vmatprep.subr.bf16.mxu1 %v5097_v55 }
 0x1d1   :  { %3779 = vmatpush3.bf16.msra.mxu0 %v5171_v56 }
 0x1d2   :  { %3780 = vmatprep.subr.bf16.mxu0 %v5760_v35 }
 0x1d4   :  { %693 = vrot.lane.b32.xlu0 %v5064_v43, %s4139_s2 }
 0x1d5   :  { %3782 = vmatpush3.bf16.msra.mxu0 %v5197_v57 }
 0x1d6   :  { %v1317_v17 = vld [vmem:[#allocation2 + $0x18] sm:$0xff]  ;;  %3816 = vmatprep.subr.bf16.mxu0 %v5097_v55 }
 0x1d8   :  { %800 = vrot.lane.b32.xlu0 %v5077_v49, %s4139_s2 }
 0x1dc   :  { %1326 = vrot.lane.b32.xlu0 %v1317_v17, %s4132_s18 }
 0x1f6   :  { %v889_v24 = vpop.f32.mrb[6].mxu1 }
 0x1f7   :  { %v890_v26 = vadd.f32 %v889_v24, %v4828_v22  ;;  %v891_v27 = vpop.f32.mrb[7].mxu1 }
 0x1f8   :  { %v892_v39 = vadd.f32 %v891_v27, %v4832_v23 }
 0x1f9   :  { %v894_v14 = vmax.f32 %v890_v26, 0.0  ;;  %v5758_v26 = vmov 0.0  }
 0x1fa   :  { %v895_v5 = vmax.f32 %v892_v39, 0.0  ;;  %v996_v9 = vpop.f32.mrb[8].mxu0  ;;  %2960 = vmatprep.mubr.msk.f32.mxu0 %vm4141_vm12, %v5758_v26 }
 0x1fb   :  { %v5167_v16 = vmax.f32 %v792_v6, %v894_v14  ;;  %v997_v17 = vadd.f32 %v996_v9, %v4828_v22  ;;  %v998_v29 = vpop.f32.mrb[9].mxu0 }
 0x1fc   :  { %v5175_v41 = vmax.f32 %v793_v10, %v895_v5  ;;  %v999_v42 = vadd.f32 %v998_v29, %v4832_v23 }
 0x1fd   :  { %900 = vrot.lane.b32.xlu0 %v5167_v16, %s4139_s2  ;;  %v1001_v6 = vmax.f32 %v997_v17, 0.0 }
 0x1fe   :  { %v1002_v53 = vmax.f32 %v999_v42, 0.0 }
 0x1ff   :  { %v484_v54 = vpop.permute.xlu0 %483  ;;  %v5181_v4 = vmax.f32 %v894_v14, %v1001_v6 }
 0x200   :  { %v486_v10 = vpop.permute.xlu1 %485  ;;  %v5187_v52 = vmax.f32 %v895_v5, %v1002_v53 }
 0x201   :  { %v487_v21 = vsel %vm272_vm11, %v484_v54, %v486_v10  ;;  %v491_v63 = vmax.f32 %v4882_v37, %v486_v10  ;;  %1007 = vrot.lane.b32.xlu0 %v5181_v4, %s4139_s2 }
 0x202   :  { %v5200_v31 = vmax.f32 %v4877_v2, %v487_v21 }
 0x203   :  { %494 = vst.msk [vmem:[#allocation2 + $0x28] sm:$0xff] %vm279_vm4, %v491_v63  ;;  %v590_v7 = vpop.permute.xlu0 %589 }
 0x204   :  { %v592_v24 = vpop.permute.xlu1 %591 }
 0x205   :  { %v593_v37 = vsel %vm272_vm11, %v590_v7, %v592_v24  ;;  %v597_v27 = vmax.f32 %v4899_v18, %v592_v24 }
 0x206   :  { %v596_v2 = vmax.f32 %v4895_v15, %v593_v37 }
 0x207   :  { %600 = vst.msk [vmem:[#allocation2 + $0x38] sm:$0xff] %vm279_vm4, %v597_v27  ;;  %v271_v39 = vpop.permute.xlu0 %270 }
 0x208   :  { %v277_v34 = vmax.f32 %v4851_v51, %v271_v39  ;;  %v269_v8 = vpop.permute.xlu1 %268 }
 0x209   :  { %v273_v14 = vsel %vm272_vm11, %v269_v8, %v271_v39  ;;  %v1265_v39 = vld [vmem:[%s5753_s3 + $0x100] sm:$0xff] }
 0x20a   :  { %280 = vst.msk [vmem:[#allocation2 + $0x8] sm:$0xff] %vm279_vm4, %v277_v34  ;;  %v276_v5 = vmax.f32 %v4848_v61, %v273_v14  ;;  %v5215_v9 = vld [vmem:[#allocation2 + $0x28] sm:$0xff] }
 0x20b   :  { %v4100_v17 = vpack.i.bf16 %v5215_v9, %v5200_v31 }
 0x20d   :  { %4101 = vrot.lane.b32.xlu1 %v4100_v17, %s4136_s17 }
 0x20e   :  { %v1321_v15 = vld [vmem:[#allocation2 + $0x38] sm:$0xff] }
 0x20f   :  { %1344 = vrot.lane.b32.xlu0 %v1321_v15, %s4143_s30 }
 0x211   :  { %1342 = vrot.lane.b32.xlu1 %v596_v2, %s4143_s30  ;;  %v1315_v34 = vld [vmem:[#allocation2 + $0x8] sm:$0xff] }
 0x215   :  { %902 = vrot.lane.b32.xlu1 %v5175_v41, %s4139_s2 }
 0x219   :  { %1009 = vrot.lane.b32.xlu1 %v5187_v52, %s4139_s2 }
 0x21d   :  { %1573 = vrot.lane.b32.xlu1 %v596_v2, %s4132_s18 }
 0x221   :  { %1575 = vrot.lane.b32.xlu1 %v1321_v15, %s4132_s18  ;;  %v1267_v15 = vld [vmem:[%s5753_s3 + $0x110] sm:$0xff] }
 0x22e   :  { %v1103_v61 = vpop.f32.mrb[8].mxu1 }
 0x22f   :  { %v1104_v51 = vadd.f32 %v1103_v61, %v4828_v22  ;;  %v1105_v18 = vpop.f32.mrb[9].mxu1  ;;  %v1268_v61 = vld [vmem:[%s5753_s3 + $0x118] sm:$0xff] }
 0x230   :  { %v1106_v29 = vadd.f32 %v1105_v18, %v4832_v23  ;;  %v1286_v18 = vld [vmem:[%s5753_s3 + $0x1a8] sm:$0xff] }
 0x231   :  { %v1108_v42 = vmax.f32 %v1104_v51, 0.0  ;;  %v1285_v51 = vld [vmem:[%s5753_s3 + $0x1a0] sm:$0xff] }
 0x232   :  { %v1109_v54 = vmax.f32 %v1106_v29, 0.0  ;;  %v1210_v44 = vpop.f32.mrb[10].mxu0 }
 0x233   :  { %v5230_v10 = vmax.f32 %v1001_v6, %v1108_v42  ;;  %v1211_v20 = vadd.f32 %v1210_v44, %v4828_v22  ;;  %v1212_v21 = vpop.f32.mrb[11].mxu0  ;;  %v1266_v6 = vld [vmem:[%s5753_s3 + $0x108] sm:$0xff]  ;;  %v1283_v22 = vld [vmem:[%s5753_s3 + $0x190] sm:$0xff] }
 0x234   :  { %v5233_v63 = vmax.f32 %v1002_v53, %v1109_v54  ;;  %v1213_v7 = vadd.f32 %v1212_v21, %v4832_v23  ;;  %v1284_v23 = vld [vmem:[%s5753_s3 + $0x198] sm:$0xff]  ;;  %v5254_v8 = vpack.c.bf16 %v1266_v6, %v1265_v39  ;;  %v5278_v21 = vpack.c.bf16 %v1286_v18, %v1285_v51  ;;  %v1289_v51 = vld [vmem:[%s5753_s3 + $0x1c0] sm:$0xff] }
 0x235   :  { %v1215_v24 = vmax.f32 %v1211_v20, 0.0  ;;  %v5258_v17 = vpack.c.bf16 %v1284_v23, %v1283_v22 }
 0x236   :  { %v1216_v37 = vmax.f32 %v1213_v7, 0.0  ;;  %v1269_v7 = vld [vmem:[%s5753_s3 + $0x120] sm:$0xff] }
 0x237   :  { %v5236_v27 = vmax.f32 %v1108_v42, %v1215_v24  ;;  %v692_v29 = vpop.permute.xlu1 %691 }
 0x238   :  { %v5238_v2 = vmax.f32 %v1109_v54, %v1216_v37  ;;  %v5273_v54 = vpack.c.bf16 %v1268_v61, %v1267_v15  ;;  %v1287_v37 = vld [vmem:[%s5753_s3 + $0x1b0] sm:$0xff]  ;;  %v1272_v15 = vld [vmem:[%s5753_s3 + $0x138] sm:$0xff] }
 0x23b   :  { %v799_v39 = vpop.permute.xlu1 %798 }
 0x242   :  { %v5252_v53 = vpop.permute.xlu0 %1324 }
 0x243   :  { %v1349_v14 = vsel %vm279_vm4, %v1315_v34, %v5252_v53 }
 0x244   :  { %1422 = vmatprep.mubr.f32.mxu1 %v1349_v14  ;;  %v1271_v14 = vld [vmem:[%s5753_s3 + $0x130] sm:$0xff] }
 0x245   :  { %1423 = vmatmul.mubr.f32.vlgmr.msra.gmra.mrb[10].mxu1 %v276_v5  ;;  %v1270_v5 = vld [vmem:[%s5753_s3 + $0x128] sm:$0xff]  ;;  %v5319_v18 = vpack.c.bf16 %v1272_v15, %v1271_v14 }
 0x246   :  { %v694_v42 = vpop.permute.xlu0 %693  ;;  %3730 = vmatpush3.bf16.msra.mxu1 %v5254_v8  ;;  %v5297_v22 = vpack.c.bf16 %v1270_v5, %v1269_v7  ;;  %v1292_v7 = vld [vmem:[%s5753_s3 + $0x1d8] sm:$0xff]  ;;  %v1294_v14 = vld [vmem:[%s5753_s3 + $0x1e8] sm:$0xff] }
 0x247   :  { %v695_v44 = vsel %vm272_vm11, %v692_v29, %v694_v42  ;;  %v699_v20 = vmax.f32 %v5064_v43, %v694_v42  ;;  %3732 = vmatprep.subr.bf16.mxu1 %v5258_v17  ;;  %v1288_v43 = vld [vmem:[%s5753_s3 + $0x1b8] sm:$0xff]  ;;  %v1274_v42 = vld [vmem:[%s5753_s3 + $0x148] sm:$0xff] }
 0x248   :  { %v5287_v24 = vmax.f32 %v5056_v38, %v695_v44  ;;  %v5302_v34 = vpack.c.bf16 %v1288_v43, %v1287_v37 }
 0x249   :  { %702 = vst.msk [vmem:[#allocation2 + $0x48] sm:$0xff] %vm279_vm4, %v699_v20  ;;  %v1291_v20 = vld [vmem:[%s5753_s3 + $0x1d0] sm:$0xff] }
 0x24a   :  { %5764 = vst [vmem:[#allocation3_spill] sm:$0xff] %v5287_v24  ;;  %v801_v6 = vpop.permute.xlu0 %800  ;;  %3734 = vmatpush3.bf16.msra.mxu1 %v5273_v54  ;;  %v5345_v43 = vpack.c.bf16 %v1292_v7, %v1291_v20  ;;  %v1296_v20 = vld [vmem:[%s5753_s3 + $0x1f8] sm:$0xff] }
 0x24b   :  { %v802_v23 = vsel %vm272_vm11, %v799_v39, %v801_v6  ;;  %v806_v38 = vmax.f32 %v5077_v49, %v801_v6  ;;  %3736 = vmatprep.subr.bf16.mxu1 %v5278_v21  ;;  %v1290_v49 = vld [vmem:[%s5753_s3 + $0x1c8] sm:$0xff]  ;;  %v1275_v39 = vld [vmem:[%s5753_s3 + $0x150] sm:$0xff]  ;;  %v1276_v6 = vld [vmem:[%s5753_s3 + $0x158] sm:$0xff] }
 0x24c   :  { %v805_v61 = vmax.f32 %v5073_v46, %v802_v23  ;;  %v5322_v29 = vpack.c.bf16 %v1290_v49, %v1289_v51  ;;  %v1273_v46 = vld [vmem:[%s5753_s3 + $0x140] sm:$0xff]  ;;  %v5361_v15 = vpack.c.bf16 %v1276_v6, %v1275_v39  ;;  %v1279_v39 = vld [vmem:[%s5753_s3 + $0x170] sm:$0xff]  ;;  %v1280_v6 = vld [vmem:[%s5753_s3 + $0x178] sm:$0xff] }
 0x24d   :  { %809 = vst.msk [vmem:[#allocation2 + $0x58] sm:$0xff] %vm279_vm4, %v806_v38  ;;  %v5341_v37 = vpack.c.bf16 %v1274_v42, %v1273_v46  ;;  %v1293_v38 = vld [vmem:[%s5753_s3 + $0x1e0] sm:$0xff]  ;;  %v1278_v46 = vld [vmem:[%s5753_s3 + $0x168] sm:$0xff]  ;;  %v1295_v42 = vld [vmem:[%s5753_s3 + $0x1f0] sm:$0xff] }
 0x24e   :  { %3738 = vmatpush3.bf16.msra.mxu1 %v5297_v22  ;;  %v5365_v51 = vpack.c.bf16 %v1294_v14, %v1293_v38  ;;  %v1277_v49 = vld [vmem:[%s5753_s3 + $0x160] sm:$0xff]  ;;  %v5398_v38 = vpack.c.bf16 %v1280_v6, %v1279_v39  ;;  %v1327_v14 = vpop.permute.xlu0 %1326 }
 0x24f   :  { %3740 = vmatprep.subr.bf16.mxu1 %v5302_v34  ;;  %v5382_v7 = vpack.c.bf16 %v1278_v46, %v1277_v49 }
 0x250   :  { %v5330_v44 = vld [vmem:[#allocation2 + $0x48] sm:$0xff] }
 0x251   :  { %5765 = vst [vmem:[#allocation4_spill] sm:$0xff] %v5330_v44  ;;  %v4105_v5 = vpack.i.bf16 %v5330_v44, %v5287_v24  ;;  %v1328_v24 = vsel %vm279_vm4, %v5252_v53, %v1327_v14 }
 0x252   :  { %3742 = vmatpush3.bf16.msra.mxu1 %v5319_v18 }
 0x253   :  { %4106 = vrot.lane.b32.xlu0 %v4105_v5, %s4136_s17  ;;  %3744 = vmatprep.subr.bf16.mxu1 %v5322_v29  ;;  %v5387_v5 = vpack.c.bf16 %v1296_v20, %v1295_v42 }
 0x254   :  { %v1572_v23 = vld [vmem:[#allocation2 + $0x58] sm:$0xff] }
 0x255   :  { %1593 = vrot.lane.b32.xlu1 %v1572_v23, %s4143_s30 }
 0x256   :  { %3746 = vmatpush3.bf16.msra.mxu1 %v5341_v37 }
 0x257   :  { %1591 = vrot.lane.b32.xlu0 %v805_v61, %s4143_s30  ;;  %3748 = vmatprep.subr.bf16.mxu1 %v5345_v43 }
 0x259   :  { %1116 = vrot.lane.b32.xlu1 %v5233_v63, %s4139_s2 }
 0x25a   :  { %3750 = vmatpush3.bf16.msra.mxu1 %v5361_v15 }
 0x25b   :  { %1114 = vrot.lane.b32.xlu0 %v5230_v10, %s4139_s2  ;;  %3752 = vmatprep.subr.bf16.mxu1 %v5365_v51 }
 0x25d   :  { %1223 = vrot.lane.b32.xlu1 %v5238_v2, %s4139_s2 }
 0x25e   :  { %3754 = vmatpush3.bf16.msra.mxu1 %v5382_v7 }
 0x25f   :  { %1221 = vrot.lane.b32.xlu0 %v5236_v27, %s4139_s2  ;;  %3756 = vmatprep.subr.bf16.mxu1 %v5387_v5 }
 0x262   :  { %3758 = vmatpush3.bf16.msra.mxu1 %v5398_v38 }
 0x263   :  { %1816 = vrot.lane.b32.xlu0 %v805_v61, %s4132_s18  ;;  %3784 = vmatprep.subr.bf16.mxu1 %v4915_v25 }
 0x267   :  { %1818 = vrot.lane.b32.xlu0 %v1572_v23, %s4132_s18 }
 0x26f   :  { %v901_v49 = vpop.permute.xlu0 %900 }
 0x273   :  { %v1008_v46 = vpop.permute.xlu0 %1007 }
 0x27f   :  { %v4102_v42 = vpop.permute.xlu1 %4101 }
 0x280   :  { %v4104_v20 = vunpack.i.h.bf16 %v4102_v42  ;;  %v4103_v39 = vunpack.i.l.bf16 %v4102_v42 }
 0x281   :  { %v1345_v26 = vpop.permute.xlu0 %1344 }
 0x282   :  { %v1337_v6 = vsel %vm924_vm7, %v4103_v39, %v4104_v20  ;;  %v1350_v23 = vsel %vm924_vm7, %v1328_v24, %v4103_v39 }
 0x283   :  { %v1343_v35 = vpop.permute.xlu1 %1342 }
 0x284   :  { %v1346_v44 = vsel %vm96_vm0, %v1343_v35, %v1345_v26  ;;  %v1351_v61 = vsel %vm96_vm0, %v1337_v6, %v1343_v35 }
 0x285   :  { %1492 = vmatprep.mubr.f32.mxu1 %v1351_v61  ;;  %2961 = vmatmul.mubr.f32.vlgmr.msra.gmra.mrb[12].mxu0 %v1346_v44 }
 0x286   :  { %1493 = vmatmul.mubr.f32.vlgmr.msra.gmra.mrb[12].mxu1 %v1350_v23  ;;  %3818 = vmatpush3.bf16.msra.mxu0 %v5254_v8 }
 0x287   :  { %3786 = vmatpush3.bf16.msra.mxu1 %v4923_v32  ;;  %v903_v42 = vpop.permute.xlu1 %902  ;;  %3820 = vmatprep.subr.bf16.mxu0 %v5258_v17 }
 0x288   :  { %v904_v20 = vsel %vm272_vm11, %v901_v49, %v903_v42  ;;  %v908_v53 = vmax.f32 %v5175_v41, %v903_v42  ;;  %3788 = vmatprep.subr.bf16.mxu1 %v4933_v1 }
 0x289   :  { %v5420_v35 = vmax.f32 %v5167_v16, %v904_v20 }
 0x28a   :  { %911 = vst.msk [vmem:[#allocation2 + $0x68] sm:$0xff] %vm279_vm4, %v908_v53  ;;  %3822 = vmatpush3.bf16.msra.mxu0 %v5273_v54 }
 0x28b   :  { %3790 = vmatpush3.bf16.msra.mxu1 %v4941_v40  ;;  %v1010_v26 = vpop.permute.xlu1 %1009  ;;  %3824 = vmatprep.subr.bf16.mxu0 %v5278_v21 }
 0x28c   :  { %v1011_v24 = vsel %vm272_vm11, %v1008_v46, %v1010_v26  ;;  %v1015_v44 = vmax.f32 %v5187_v52, %v1010_v26  ;;  %3792 = vmatprep.subr.bf16.mxu1 %v4951_v45  ;;  %v5767_v46 = vmov 0.0  }
 0x28d   :  { %v1014_v41 = vmax.f32 %v5181_v4, %v1011_v24 }
 0x28e   :  { %1018 = vst.msk [vmem:[#allocation2 + $0x78] sm:$0xff] %vm279_vm4, %v1015_v44  ;;  %3826 = vmatpush3.bf16.msra.mxu0 %v5297_v22 }
 0x28f   :  { %3794 = vmatpush3.bf16.msra.mxu1 %v4959_v50  ;;  %v1574_v16 = vpop.permute.xlu1 %1573  ;;  %3828 = vmatprep.subr.bf16.mxu0 %v5302_v34 }
 0x290   :  { %3796 = vmatprep.subr.bf16.mxu1 %v4969_v13  ;;  %v1598_v14 = vsel %vm279_vm4, %v5215_v9, %v1574_v16  ;;  %v5766_v9 = vmov 0.0|0.0  }
 0x291   :  { %1665 = vmatprep.mubr.f32.mxu1 %v1598_v14  ;;  %v5437_v52 = vld [vmem:[#allocation2 + $0x68] sm:$0xff] }
 0x292   :  { %v4110_v4 = vpack.i.bf16 %v5437_v52, %v5420_v35  ;;  %3830 = vmatpush3.bf16.msra.mxu0 %v5319_v18 }
 0x293   :  { %3798 = vmatpush3.bf16.msra.mxu1 %v4977_v28  ;;  %3832 = vmatprep.subr.bf16.mxu0 %v5322_v29 }
 0x294   :  { %4111 = vrot.lane.b32.xlu1 %v4110_v4, %s4136_s17  ;;  %3800 = vmatprep.subr.bf16.mxu1 %v4987_v36 }
 0x295   :  { %v1815_v49 = vld [vmem:[#allocation2 + $0x78] sm:$0xff] }
 0x296   :  { %1836 = vrot.lane.b32.xlu0 %v1815_v49, %s4143_s30  ;;  %3834 = vmatpush3.bf16.msra.mxu0 %v5341_v37 }
 0x297   :  { %3802 = vmatpush3.bf16.msra.mxu1 %v4995_v47  ;;  %3836 = vmatprep.subr.bf16.mxu0 %v5345_v43 }
 0x298   :  { %1834 = vrot.lane.b32.xlu1 %v1014_v41, %s4143_s30  ;;  %3804 = vmatprep.subr.bf16.mxu1 %v5008_v60 }
 0x29a   :  { %3838 = vmatpush3.bf16.msra.mxu0 %v5361_v15 }
 0x29b   :  { %3806 = vmatpush3.bf16.msra.mxu1 %v5019_v11  ;;  %3840 = vmatprep.subr.bf16.mxu0 %v5365_v51 }
 0x29c   :  { %2059 = vrot.lane.b32.xlu1 %v1014_v41, %s4132_s18  ;;  %3808 = vmatprep.subr.bf16.mxu1 %v5021_v12 }
 0x29e   :  { %3842 = vmatpush3.bf16.msra.mxu0 %v5382_v7 }
 0x29f   :  { %3810 = vmatpush3.bf16.msra.mxu1 %v5037_v30  ;;  %3844 = vmatprep.subr.bf16.mxu0 %v5387_v5 }
 0x2a0   :  { %2061 = vrot.lane.b32.xlu1 %v1815_v49, %s4132_s18  ;;  %3812 = vmatprep.subr.bf16.mxu1 %v5040_v62 }
 0x2a2   :  { %3846 = vmatpush3.bf16.msra.mxu0 %v5398_v38 }
 0x2a3   :  { %3814 = vmatpush3.bf16.msra.mxu1 %v5050_v19  ;;  %3872 = vmatprep.subr.bf16.mxu0 %v4915_v25 }
 0x2a4   :  { %3847 = vmatprep.subr.bf16.mxu1 %v5766_v9 }
 0x2a6   :  { %1666 = vmatmul.mubr.f32.vlgmr.msra.gmra.mrb[14].mxu1 %v5200_v31  ;;  %v1576_v31 = vpop.permute.xlu1 %1575 }
 0x2a7   :  { %3849 = vmatpush3.bf16.msra.mxu1 %v5107_v48  ;;  %2995 = vmatprep.mubr.msk.f32.mxu1 %vm4141_vm12, %v5767_v46  ;;  %v1577_v53 = vsel %vm279_vm4, %v1574_v16, %v1576_v31 }
 0x2a8   :  { %3850 = vmatprep.subr.bf16.mxu1 %v5766_v9 }
 0x2ab   :  { %3852 = vmatpush3.bf16.msra.mxu1 %v5116_v3 }
 0x2ac   :  { %3853 = vmatprep.subr.bf16.mxu1 %v5766_v9 }
 0x2af   :  { %3855 = vmatpush3.bf16.msra.mxu1 %v5126_v58 }
 0x2b0   :  { %3856 = vmatprep.subr.bf16.mxu1 %v5766_v9 }
 0x2b3   :  { %3858 = vmatpush3.bf16.msra.mxu1 %v5137_v59 }
 0x2b4   :  { %3859 = vmatprep.subr.bf16.mxu1 %v5766_v9 }
 0x2b7   :  { %3861 = vmatpush3.bf16.msra.mxu1 %v5146_v0 }
 0x2b8   :  { %3862 = vmatprep.subr.bf16.mxu1 %v5766_v9 }
 0x2bb   :  { %3864 = vmatpush3.bf16.msra.mxu1 %v5157_v33 }
 0x2bc   :  { %3865 = vmatprep.subr.bf16.mxu1 %v5766_v9 }
 0x2bf   :  { %3867 = vmatpush3.bf16.msra.mxu1 %v5171_v56 }
 0x2c0   :  { %3868 = vmatprep.subr.bf16.mxu1 %v5766_v9 }
 0x2c3   :  { %3870 = vmatpush3.bf16.msra.mxu1 %v5197_v57 }
 0x2c4   :  { %3904 = vmatprep.subr.bf16.mxu1 %v5097_v55 }
 0x2c5   :  { %v4107_v39 = vpop.permute.xlu0 %4106 }
 0x2c6   :  { %v4109_v6 = vunpack.i.h.bf16 %v4107_v39  ;;  %v4108_v61 = vunpack.i.l.bf16 %v4107_v39 }
 0x2c7   :  { %v1594_v23 = vpop.permute.xlu1 %1593 }
 0x2c8   :  { %v1586_v42 = vsel %vm924_vm7, %v4108_v61, %v4109_v6  ;;  %v1599_v41 = vsel %vm924_vm7, %v1577_v53, %v4108_v61  ;;  %v5769_v53 = vld [vmem:[#allocation3_spill] sm:$0xff] }
 0x2c9   :  { %v1592_v20 = vpop.permute.xlu0 %1591 }
 0x2ca   :  { %v1595_v26 = vsel %vm96_vm0, %v1592_v20, %v1594_v23  ;;  %v1600_v24 = vsel %vm96_vm0, %v1586_v42, %v1592_v20  ;;  %v5768_v23 = vld [vmem:[#allocation4_spill] sm:$0xff] }
 0x2cb   :  { %v1117_v44 = vpop.permute.xlu1 %1116  ;;  %1735 = vmatprep.mubr.f32.mxu0 %v1600_v24  ;;  %2996 = vmatmul.mubr.f32.vlgmr.msra.gmra.mrb[16].mxu1 %v1595_v26 }
 0x2cc   :  { %v1122_v14 = vmax.f32 %v5233_v63, %v1117_v44  ;;  %1736 = vmatmul.mubr.f32.vlgmr.msra.gmra.mrb[14].mxu0 %v1599_v41  ;;  %3906 = vmatpush3.bf16.msra.mxu1 %v5254_v8 }
 0x2cd   :  { %3874 = vmatpush3.bf16.msra.mxu0 %v4923_v32  ;;  %v1115_v4 = vpop.permute.xlu0 %1114  ;;  %3908 = vmatprep.subr.bf16.mxu1 %v5258_v17 }
 0x2ce   :  { %1125 = vst.msk [vmem:[#allocation2 + $0x88] sm:$0xff] %vm279_vm4, %v1122_v14  ;;  %v1118_v16 = vsel %vm272_vm11, %v1115_v4, %v1117_v44  ;;  %3876 = vmatprep.subr.bf16.mxu0 %v4933_v1 }
 0x2cf   :  { %v1121_v49 = vmax.f32 %v5230_v10, %v1118_v16  ;;  %v1224_v31 = vpop.permute.xlu1 %1223 }
 0x2d0   :  { %v1229_v39 = vmax.f32 %v5238_v2, %v1224_v31  ;;  %3910 = vmatpush3.bf16.msra.mxu1 %v5273_v54 }
 0x2d1   :  { %3878 = vmatpush3.bf16.msra.mxu0 %v4941_v40  ;;  %v1222_v63 = vpop.permute.xlu0 %1221  ;;  %3912 = vmatprep.subr.bf16.mxu1 %v5278_v21 }
 0x2d2   :  { %1232 = vst.msk [vmem:[#allocation2 + $0x98] sm:$0xff] %vm279_vm4, %v1229_v39  ;;  %v1225_v6 = vsel %vm272_vm11, %v1222_v63, %v1224_v31  ;;  %3880 = vmatprep.subr.bf16.mxu0 %v4951_v45 }
 0x2d3   :  { %v1228_v61 = vmax.f32 %v5236_v27, %v1225_v6 }
 0x2d4   :  { %3914 = vmatpush3.bf16.msra.mxu1 %v5297_v22 }
 0x2d5   :  { %3882 = vmatpush3.bf16.msra.mxu0 %v4959_v50  ;;  %v1817_v10 = vpop.permute.xlu0 %1816  ;;  %v2056_v2 = vld [vmem:[#allocation2 + $0x88] sm:$0xff]  ;;  %3916 = vmatprep.subr.bf16.mxu1 %v5302_v34 }
 0x2d6   :  { %3884 = vmatprep.subr.bf16.mxu0 %v4969_v13  ;;  %v1841_v42 = vsel %vm279_vm4, %v5768_v23, %v1817_v10  ;;  %v4115_v20 = vpack.i.bf16 %v2056_v2, %v1121_v49 }
 0x2d7   :  { %1908 = vmatprep.mubr.f32.mxu0 %v1841_v42 }
 0x2d8   :  { %4116 = vrot.lane.b32.xlu0 %v4115_v20, %s4136_s17  ;;  %3918 = vmatpush3.bf16.msra.mxu1 %v5319_v18 }
 0x2d9   :  { %3886 = vmatpush3.bf16.msra.mxu0 %v4977_v28  ;;  %v2058_v27 = vld [vmem:[#allocation2 + $0x98] sm:$0xff]  ;;  %3920 = vmatprep.subr.bf16.mxu1 %v5322_v29 }
 0x2da   :  { %2079 = vrot.lane.b32.xlu1 %v2058_v27, %s4143_s30  ;;  %3888 = vmatprep.subr.bf16.mxu0 %v4987_v36 }
 0x2dc   :  { %2077 = vrot.lane.b32.xlu0 %v1228_v61, %s4143_s30  ;;  %3922 = vmatpush3.bf16.msra.mxu1 %v5341_v37 }
 0x2dd   :  { %3890 = vmatpush3.bf16.msra.mxu0 %v4995_v47  ;;  %3924 = vmatprep.subr.bf16.mxu1 %v5345_v43 }
 0x2de   :  { %3892 = vmatprep.subr.bf16.mxu0 %v5008_v60 }
 0x2e0   :  { %3926 = vmatpush3.bf16.msra.mxu1 %v5361_v15 }
 0x2e1   :  { %3894 = vmatpush3.bf16.msra.mxu0 %v5019_v11  ;;  %3928 = vmatprep.subr.bf16.mxu1 %v5365_v51 }
 0x2e2   :  { %3896 = vmatprep.subr.bf16.mxu0 %v5021_v12 }
 0x2e4   :  { %3930 = vmatpush3.bf16.msra.mxu1 %v5382_v7 }
 0x2e5   :  { %3898 = vmatpush3.bf16.msra.mxu0 %v5037_v30  ;;  %3932 = vmatprep.subr.bf16.mxu1 %v5387_v5 }
 0x2e6   :  { %3900 = vmatprep.subr.bf16.mxu0 %v5040_v62 }
 0x2e8   :  { %3934 = vmatpush3.bf16.msra.mxu1 %v5398_v38 }
 0x2e9   :  { %3902 = vmatpush3.bf16.msra.mxu0 %v5050_v19  ;;  %3960 = vmatprep.subr.bf16.mxu1 %v4915_v25  ;;  %v1819_v25 = vpop.permute.xlu0 %1818 }
 0x2ea   :  { %3935 = vmatprep.subr.bf16.mxu0 %v5766_v9  ;;  %v1820_v16 = vsel %vm279_vm4, %v1817_v10, %v1819_v25 }
 0x2ec   :  { %1909 = vmatmul.mubr.f32.vlgmr.msra.gmra.mrb[16].mxu0 %v5769_v53 }
 0x2ed   :  { %3937 = vmatpush3.bf16.msra.mxu0 %v5107_v48  ;;  %3030 = vmatprep.mubr.msk.f32.mxu0 %vm4141_vm12, %v5767_v46 }
 0x2ee   :  { %3938 = vmatprep.subr.bf16.mxu0 %v5766_v9 }
 0x2f1   :  { %3940 = vmatpush3.bf16.msra.mxu0 %v5116_v3 }
 0x2f2   :  { %3941 = vmatprep.subr.bf16.mxu0 %v5766_v9 }
 0x2f5   :  { %3943 = vmatpush3.bf16.msra.mxu0 %v5126_v58 }
 0x2f6   :  { %3944 = vmatprep.subr.bf16.mxu0 %v5766_v9 }
 0x2f9   :  { %3946 = vmatpush3.bf16.msra.mxu0 %v5137_v59 }
 0x2fa   :  { %3947 = vmatprep.subr.bf16.mxu0 %v5766_v9 }
 0x2fd   :  { %3949 = vmatpush3.bf16.msra.mxu0 %v5146_v0 }
 0x2fe   :  { %3950 = vmatprep.subr.bf16.mxu0 %v5766_v9 }
 0x301   :  { %3952 = vmatpush3.bf16.msra.mxu0 %v5157_v33 }
 0x302   :  { %3953 = vmatprep.subr.bf16.mxu0 %v5766_v9 }
 0x305   :  { %3955 = vmatpush3.bf16.msra.mxu0 %v5171_v56 }
 0x306   :  { %v4112_v26 = vpop.permute.xlu1 %4111  ;;  %3956 = vmatprep.subr.bf16.mxu0 %v5766_v9 }
 0x307   :  { %v4114_v24 = vunpack.i.h.bf16 %v4112_v26  ;;  %v4113_v44 = vunpack.i.l.bf16 %v4112_v26 }
 0x308   :  { %v1837_v14 = vpop.permute.xlu0 %1836 }
 0x309   :  { %v1829_v41 = vsel %vm924_vm7, %v4113_v44, %v4114_v24  ;;  %3958 = vmatpush3.bf16.msra.mxu0 %v5197_v57  ;;  %v1842_v39 = vsel %vm924_vm7, %v1820_v16, %v4113_v44 }
 0x30a   :  { %v1835_v4 = vpop.permute.xlu1 %1834  ;;  %3992 = vmatprep.subr.bf16.mxu0 %v5097_v55 }
 0x30b   :  { %v1838_v49 = vsel %vm96_vm0, %v1835_v4, %v1837_v14  ;;  %v1843_v31 = vsel %vm96_vm0, %v1829_v41, %v1835_v4 }
 0x30c   :  { %1978 = vmatprep.mubr.f32.mxu1 %v1843_v31  ;;  %3031 = vmatmul.mubr.f32.vlgmr.msra.gmra.mrb[18].mxu0 %v1838_v49 }
 0x30d   :  { %1979 = vmatmul.mubr.f32.vlgmr.msra.gmra.mrb[18].mxu1 %v1842_v39  ;;  %3994 = vmatpush3.bf16.msra.mxu0 %v5254_v8 }
 0x30e   :  { %3962 = vmatpush3.bf16.msra.mxu1 %v4923_v32  ;;  %v2060_v63 = vpop.permute.xlu1 %2059  ;;  %3996 = vmatprep.subr.bf16.mxu0 %v5258_v17 }
 0x30f   :  { %3964 = vmatprep.subr.bf16.mxu1 %v4933_v1  ;;  %v2084_v55 = vsel %vm279_vm4, %v5437_v52, %v2060_v63 }
 0x310   :  { %2151 = vmatprep.mubr.f32.mxu1 %v2084_v55  ;;  %v2343_v55 = vld [vmem:[%s5755_s5 + $0x88] sm:$0xff] }
 0x311   :  { %3998 = vmatpush3.bf16.msra.mxu0 %v5273_v54 }
 0x312   :  { %3966 = vmatpush3.bf16.msra.mxu1 %v4941_v40  ;;  %4000 = vmatprep.subr.bf16.mxu0 %v5278_v21  ;;  %v2062_v40 = vpop.permute.xlu1 %2061 }
 0x313   :  { %3968 = vmatprep.subr.bf16.mxu1 %v4951_v45 }
 0x315   :  { %4002 = vmatpush3.bf16.msra.mxu0 %v5297_v22 }
 0x316   :  { %3970 = vmatpush3.bf16.msra.mxu1 %v4959_v50  ;;  %4004 = vmatprep.subr.bf16.mxu0 %v5302_v34 }
 0x317   :  { %3972 = vmatprep.subr.bf16.mxu1 %v4969_v13 }
 0x318   :  { %v2572_v32 = vpop.f32.mrb[10].mxu1 }
 0x319   :  { %v2573_v1 = vpop.f32.mrb[11].mxu1  ;;  %4006 = vmatpush3.bf16.msra.mxu0 %v5319_v18 }
 0x31a   :  { %3974 = vmatpush3.bf16.msra.mxu1 %v4977_v28  ;;  %v2574_v8 = vadd.f32 %v2573_v1, %v2572_v32  ;;  %4008 = vmatprep.subr.bf16.mxu0 %v5322_v29  ;;  %v2326_v32 = vld [vmem:[%s5755_s5] sm:$0xff] }
 0x31b   :  { %3976 = vmatprep.subr.bf16.mxu1 %v4987_v36 }
 0x31d   :  { %4010 = vmatpush3.bf16.msra.mxu0 %v5341_v37 }
 0x31e   :  { %3978 = vmatpush3.bf16.msra.mxu1 %v4995_v47  ;;  %4012 = vmatprep.subr.bf16.mxu0 %v5345_v43 }
 0x31f   :  { %3980 = vmatprep.subr.bf16.mxu1 %v5008_v60  ;;  %v2063_v60 = vsel %vm279_vm4, %v2060_v63, %v2062_v40  ;;  %v2342_v63 = vld [vmem:[%s5755_s5 + $0x80] sm:$0xff]  ;;  %v2344_v40 = vld [vmem:[%s5755_s5 + $0x90] sm:$0xff] }
 0x320   :  { %v4047_v1 = vpack.c.bf16 %v2343_v55, %v2342_v63 }
 0x321   :  { %4014 = vmatpush3.bf16.msra.mxu0 %v5361_v15 }
 0x322   :  { %3982 = vmatpush3.bf16.msra.mxu1 %v5019_v11  ;;  %4016 = vmatprep.subr.bf16.mxu0 %v5365_v51 }
 0x323   :  { %3984 = vmatprep.subr.bf16.mxu1 %v5021_v12 }
 0x325   :  { %4018 = vmatpush3.bf16.msra.mxu0 %v5382_v7 }
 0x326   :  { %3986 = vmatpush3.bf16.msra.mxu1 %v5037_v30  ;;  %4020 = vmatprep.subr.bf16.mxu0 %v5387_v5 }
 0x327   :  { %3988 = vmatprep.subr.bf16.mxu1 %v5040_v62  ;;  %v2537_v62 = vld [vmem:[%s5754_s4] ss:$0 sm:$0xff] }
 0x329   :  { %4022 = vmatpush3.bf16.msra.mxu0 %v5398_v38 }
 0x32a   :  { %3990 = vmatpush3.bf16.msra.mxu1 %v5050_v19  ;;  %4048 = vmatprep.subr.bf16.mxu0 %v4047_v1 }
 0x32b   :  { %4023 = vmatprep.subr.bf16.mxu1 %v5766_v9 }
 0x32d   :  { %2152 = vmatmul.mubr.f32.vlgmr.msra.gmra.mrb[20].mxu1 %v5420_v35 }
 0x32e   :  { %4025 = vmatpush3.bf16.msra.mxu1 %v5107_v48  ;;  %3065 = vmatprep.mubr.msk.f32.mxu1 %vm4141_vm12, %v5767_v46 }
 0x32f   :  { %4026 = vmatprep.subr.bf16.mxu1 %v5766_v9 }
 0x332   :  { %4028 = vmatpush3.bf16.msra.mxu1 %v5116_v3 }
 0x333   :  { %4029 = vmatprep.subr.bf16.mxu1 %v5766_v9 }
 0x336   :  { %4031 = vmatpush3.bf16.msra.mxu1 %v5126_v58 }
 0x337   :  { %4032 = vmatprep.subr.bf16.mxu1 %v5766_v9 }
 0x33a   :  { %4034 = vmatpush3.bf16.msra.mxu1 %v5137_v59  ;;  %v1425_v59 = vadd.f32 %v2574_v8, %v2537_v62  ;;  %v2327_v8 = vld [vmem:[%s5755_s5 + $0x8] sm:$0xff] }
 0x33b   :  { %4035 = vmatprep.subr.bf16.mxu1 %v5766_v9 }
 0x33e   :  { %4037 = vmatpush3.bf16.msra.mxu1 %v5146_v0 }
 0x33f   :  { %4038 = vmatprep.subr.bf16.mxu1 %v5766_v9 }
 0x342   :  { %4040 = vmatpush3.bf16.msra.mxu1 %v5157_v33 }
 0x343   :  { %4041 = vmatprep.subr.bf16.mxu1 %v5766_v9 }
 0x346   :  { %4043 = vmatpush3.bf16.msra.mxu1 %v5171_v56 }
 0x347   :  { %4044 = vmatprep.subr.bf16.mxu1 %v5766_v9 }
 0x34a   :  { %v4117_v45 = vpop.permute.xlu0 %4116  ;;  %4046 = vmatpush3.bf16.msra.mxu1 %v5197_v57 }
 0x34b   :  { %v4119_v50 = vunpack.i.h.bf16 %v4117_v45  ;;  %v4118_v13 = vunpack.i.l.bf16 %v4117_v45  ;;  %4079 = vmatprep.subr.bf16.mxu1 %v5766_v9  ;;  %v2345_v45 = vld [vmem:[%s5755_s5 + $0x98] sm:$0xff] }
 0x34c   :  { %v2080_v36 = vpop.permute.xlu1 %2079 }
 0x34d   :  { %v2072_v28 = vsel %vm924_vm7, %v4118_v13, %v4119_v50  ;;  %v2085_v30 = vsel %vm924_vm7, %v2063_v60, %v4118_v13  ;;  %v4049_v50 = vpack.c.bf16 %v2327_v8, %v2326_v32  ;;  %v4051_v13 = vpack.c.bf16 %v2345_v45, %v2344_v40  ;;  %v2347_v60 = vld [vmem:[%s5755_s5 + $0xa8] sm:$0xff] }
 0x34e   :  { %v2078_v47 = vpop.permute.xlu0 %2077 }
 0x34f   :  { %v2081_v11 = vsel %vm96_vm0, %v2078_v47, %v2080_v36  ;;  %v2086_v12 = vsel %vm96_vm0, %v2072_v28, %v2078_v47  ;;  %v2328_v28 = vld [vmem:[%s5755_s5 + $0x10] sm:$0xff]  ;;  %v2329_v36 = vld [vmem:[%s5755_s5 + $0x18] sm:$0xff]  ;;  %v2346_v47 = vld [vmem:[%s5755_s5 + $0xa0] sm:$0xff] }
 0x350   :  { %2221 = vmatprep.mubr.f32.mxu0 %v2086_v12  ;;  %3066 = vmatmul.mubr.f32.vlgmr.msra.gmra.mrb[22].mxu1 %v2081_v11  ;;  %v4053_v12 = vpack.c.bf16 %v2329_v36, %v2328_v28 }
 0x351   :  { %2222 = vmatmul.mubr.f32.vlgmr.msra.gmra.mrb[20].mxu0 %v2085_v30  ;;  %3076 = vmatprep.mubr.msk.f32.mxu1 %vm4141_vm12, %v5767_v46 }
 0x352   :  { %4050 = vmatpush3.bf16.msra.mxu0 %v4049_v50 }
 0x353   :  { %4052 = vmatprep.subr.bf16.mxu0 %v4051_v13 }
 0x356   :  { %4054 = vmatpush3.bf16.msra.mxu0 %v4053_v12 }
 0x358   :  { %v1564_v19 = vpop.f32.mrb[12].mxu0 }
 0x359   :  { %v2607_v48 = vpop.f32.mrb[12].mxu1  ;;  %v2962_v3 = vpop.f32.mrb[13].mxu0 }
 0x35a   :  { %v2608_v58 = vpop.f32.mrb[13].mxu1 }
 0x35b   :  { %v2609_v0 = vadd.f32 %v2608_v58, %v2607_v48  ;;  %v2331_v48 = vld [vmem:[%s5755_s5 + $0x28] sm:$0xff] }
 0x35d   :  { %v1495_v33 = vadd.f32 %v2609_v0, %v1425_v59  ;;  %v2348_v59 = vld [vmem:[%s5755_s5 + $0xb0] sm:$0xff]  ;;  %v2349_v0 = vld [vmem:[%s5755_s5 + $0xb8] sm:$0xff] }
 0x35f   :  { %v5621_v56 = vadd.f32 %v1564_v19, %v1495_v33  ;;  %v2330_v19 = vld [vmem:[%s5755_s5 + $0x20] sm:$0xff] }
 0x361   :  { %v1568_v11 = vmax.f32 %v5621_v56, 0.0  ;;  %v4057_v56 = vpack.c.bf16 %v2331_v48, %v2330_v19 }
 0x379   :  { %v2659_v57 = vpop.f32.mrb[14].mxu1 }
 0x37a   :  { %v2660_v17 = vpop.f32.mrb[15].mxu1 }
 0x37b   :  { %v2661_v54 = vadd.f32 %v2660_v17, %v2659_v57  ;;  %v2358_v57 = vld [vmem:[%s5755_s5 + $0x100] sm:$0xff]  ;;  %v2359_v17 = vld [vmem:[%s5755_s5 + $0x108] sm:$0xff] }
 0x37d   :  { %v1668_v29 = vadd.f32 %v2661_v54, %v2537_v62  ;;  %v4059_v54 = vpack.c.bf16 %v2349_v0, %v2348_v59 }
 0x39e   :  { %v1807_v21 = vpop.f32.mrb[16].mxu1 }
 0x39f   :  { %v2694_v22 = vpop.f32.mrb[14].mxu0  ;;  %v2997_v34 = vpop.f32.mrb[17].mxu1 }
 0x3a0   :  { %v2695_v18 = vpop.f32.mrb[15].mxu0  ;;  %v2350_v34 = vld [vmem:[%s5755_s5 + $0xc0] sm:$0xff] }
 0x3a1   :  { %v2696_v37 = vadd.f32 %v2695_v18, %v2694_v22  ;;  %v2333_v22 = vld [vmem:[%s5755_s5 + $0x38] sm:$0xff]  ;;  %v4080_v18 = vpack.c.bf16 %v2359_v17, %v2358_v57 }
 0x3a3   :  { %v1738_v43 = vadd.f32 %v2696_v37, %v1668_v29  ;;  %v2351_v29 = vld [vmem:[%s5755_s5 + $0xc8] sm:$0xff]  ;;  %v2360_v37 = vld [vmem:[%s5755_s5 + $0x110] sm:$0xff]  ;;  %4081 = vmatpush3.bf16.msra.mxu1 %v4080_v18 }
 0x3a4   :  { %4082 = vmatprep.subr.bf16.mxu1 %v5766_v9 }
 0x3a5   :  { %v1808_v15 = vadd.f32 %v1807_v21, %v1738_v43  ;;  %v2332_v21 = vld [vmem:[%s5755_s5 + $0x30] sm:$0xff]  ;;  %v2361_v43 = vld [vmem:[%s5755_s5 + $0x118] sm:$0xff] }
 0x3a7   :  { %v1811_v23 = vmax.f32 %v1808_v15, 0.0  ;;  %v4083_v15 = vpack.c.bf16 %v2361_v43, %v2360_v37 }
 0x3a9   :  { %v2298_v3 = vmax.f32 %v1568_v11, %v1811_v23  ;;  %4084 = vmatpush3.bf16.msra.mxu1 %v4083_v15 }
 0x3bf   :  { %v2746_v51 = vpop.f32.mrb[16].mxu0 }
 0x3c0   :  { %v2747_v7 = vpop.f32.mrb[17].mxu0 }
 0x3c1   :  { %v2748_v5 = vadd.f32 %v2747_v7, %v2746_v51  ;;  %v4061_v51 = vpack.c.bf16 %v2333_v22, %v2332_v21  ;;  %v4063_v7 = vpack.c.bf16 %v2351_v29, %v2350_v34 }
 0x3c3   :  { %v1911_v6 = vadd.f32 %v2748_v5, %v2537_v62  ;;  %v2334_v5 = vld [vmem:[%s5755_s5 + $0x40] sm:$0xff] }
 0x3df   :  { %v2050_v38 = vpop.f32.mrb[18].mxu0 }
 0x3e0   :  { %v2781_v35 = vpop.f32.mrb[18].mxu1  ;;  %v3032_v52 = vpop.f32.mrb[19].mxu0 }
 0x3e1   :  { %v2782_v46 = vpop.f32.mrb[19].mxu1  ;;  %v2353_v52 = vld [vmem:[%s5755_s5 + $0xd8] sm:$0xff] }
 0x3e2   :  { %v2783_v61 = vadd.f32 %v2782_v46, %v2781_v35  ;;  %v2352_v35 = vld [vmem:[%s5755_s5 + $0xd0] sm:$0xff] }
 0x3e3   :  { %v4067_v46 = vpack.c.bf16 %v2353_v52, %v2352_v35 }
 0x3e4   :  { %v1981_v10 = vadd.f32 %v2783_v61, %v1911_v6  ;;  %v2336_v6 = vld [vmem:[%s5755_s5 + $0x50] sm:$0xff]  ;;  %v2337_v61 = vld [vmem:[%s5755_s5 + $0x58] sm:$0xff] }
 0x3e6   :  { %v2051_v2 = vadd.f32 %v2050_v38, %v1981_v10  ;;  %v2335_v38 = vld [vmem:[%s5755_s5 + $0x48] sm:$0xff]  ;;  %v2354_v10 = vld [vmem:[%s5755_s5 + $0xe0] sm:$0xff] }
 0x3e7   :  { %v4065_v9 = vpack.c.bf16 %v2335_v38, %v2334_v5 }
 0x3e8   :  { %v2054_v42 = vmax.f32 %v2051_v2, 0.0  ;;  %v2355_v2 = vld [vmem:[%s5755_s5 + $0xe8] sm:$0xff] }
 0x3ea   :  { %v2304_v20 = vmax.f32 %v1811_v23, %v2054_v42  ;;  %v4069_v23 = vpack.c.bf16 %v2337_v61, %v2336_v6 }
 0x3ec   :  { %2306 = vrot.lane.b32.xlu0 %v2304_v20, %s4143_s30 }
 0x400   :  { %v2833_v27 = vpop.f32.mrb[20].mxu1 }
 0x401   :  { %v2834_v53 = vpop.f32.mrb[21].mxu1 }
 0x402   :  { %v2835_v25 = vadd.f32 %v2834_v53, %v2833_v27  ;;  %v2339_v27 = vld [vmem:[%s5755_s5 + $0x68] sm:$0xff]  ;;  %v2356_v53 = vld [vmem:[%s5755_s5 + $0xf0] sm:$0xff] }
 0x404   :  { %v2154_v14 = vadd.f32 %v2835_v25, %v2537_v62  ;;  %v4055_v62 = vpack.c.bf16 %v2347_v60, %v2346_v47  ;;  %v2357_v25 = vld [vmem:[%s5755_s5 + $0xf8] sm:$0xff] }
 0x406   :  { %4056 = vmatprep.subr.bf16.mxu0 %v4055_v62 }
 0x407   :  { %4058 = vmatpush3.bf16.msra.mxu0 %v4057_v56 }
 0x408   :  { %4060 = vmatprep.subr.bf16.mxu0 %v4059_v54 }
 0x40b   :  { %4062 = vmatpush3.bf16.msra.mxu0 %v4061_v51 }
 0x40c   :  { %4064 = vmatprep.subr.bf16.mxu0 %v4063_v7 }
 0x40f   :  { %4066 = vmatpush3.bf16.msra.mxu0 %v4065_v9 }
 0x410   :  { %4068 = vmatprep.subr.bf16.mxu0 %v4067_v46 }
 0x413   :  { %4070 = vmatpush3.bf16.msra.mxu0 %v4069_v23 }
 0x423   :  { %v2293_v26 = vpop.f32.mrb[22].mxu1 }
 0x424   :  { %v2868_v24 = vpop.f32.mrb[20].mxu0  ;;  %v3067_v44 = vpop.f32.mrb[23].mxu1 }
 0x425   :  { %v2869_v41 = vpop.f32.mrb[21].mxu0  ;;  %v2340_v44 = vld [vmem:[%s5755_s5 + $0x70] sm:$0xff] }
 0x426   :  { %v2870_v4 = vadd.f32 %v2869_v41, %v2868_v24  ;;  %v4075_v24 = vpack.c.bf16 %v2357_v25, %v2356_v53  ;;  %v2341_v41 = vld [vmem:[%s5755_s5 + $0x78] sm:$0xff] }
 0x428   :  { %v2224_v16 = vadd.f32 %v2870_v4, %v2154_v14  ;;  %v4077_v14 = vpack.c.bf16 %v2341_v41, %v2340_v44 }
 0x42a   :  { %v2294_v49 = vadd.f32 %v2293_v26, %v2224_v16 }
 0x42c   :  { %v2297_v31 = vmax.f32 %v2294_v49, 0.0 }
 0x42e   :  { %v5624_v39 = vmax.f32 %v2054_v42, %v2297_v31  ;;  %v4071_v42 = vpack.c.bf16 %v2355_v2, %v2354_v10 }
 0x430   :  { %2312 = vrot.lane.b32.xlu1 %v5624_v39, %s4143_s30  ;;  %4072 = vmatprep.subr.bf16.mxu0 %v4071_v42 }
 0x45e   :  { %v2307_v30 = vpop.permute.xlu0 %2306 }
 0x45f   :  { %v2309_v58 = vmax.f32 %v2304_v20, %v2307_v30  ;;  %v2338_v20 = vld [vmem:[%s5755_s5 + $0x60] sm:$0xff] }
 0x460   :  { %v4073_v26 = vpack.c.bf16 %v2339_v27, %v2338_v20 }
 0x461   :  { %v4120_v33 = vpack.i.bf16 %v2309_v58, %v2298_v3 }
 0x462   :  { %4074 = vmatpush3.bf16.msra.mxu0 %v4073_v26 }
 0x463   :  { %4121 = vrot.lane.b32.xlu0 %v4120_v33, %s4143_s30  ;;  %4076 = vmatprep.subr.bf16.mxu0 %v4075_v24 }
 0x466   :  { %4078 = vmatpush3.bf16.msra.mxu0 %v4077_v14 }
 0x4a2   :  { %v2313_v4 = vpop.permute.xlu1 %2312 }
 0x4a3   :  { %v2315_v16 = vmax.f32 %v5624_v39, %v2313_v4  ;;  %v2538_v39 = vld [vmem:[%s5756_s6] ss:$0 sm:$0xff] }
 0x4a5   :  { %2321 = vrot.lane.b32.xlu1 %v2315_v16, %s4136_s17 }
 0x4d5   :  { %v4122_v49 = vpop.permute.xlu0 %4121 }
 0x4d6   :  { %v4123_v31 = vunpack.i.l.bf16 %v4122_v49  ;;  %v4124_v55 = vunpack.i.h.bf16 %v4122_v49 }
 0x4d8   :  { %v2303_v63 = vmax.f32 %v2298_v3, %v4123_v31 }
 0x4da   :  { %v2324_v8 = vsel %vm96_vm0, %v2303_v63, %v4124_v55 }
 0x517   :  { %v2322_v32 = vpop.permute.xlu1 %2321 }
 0x518   :  { %3077 = vmatmul.mubr.msk.f32.vlgmr.msra.gmra.mrb[24].mxu1 %vm279_vm4, %v2322_v32  ;;  %v2325_v1 = vsel %vm924_vm7, %v4124_v55, %v2322_v32 }
 0x519   :  { %2435 = vmatprep.mubr.f32.mxu0 %v2325_v1 }
 0x51a   :  { %2436 = vmatmul.mubr.f32.vlgmr.msra.gmra.mrb[22].mxu0 %v2324_v8 }
 0x5eb   :  { %v2507_v40 = vpop.f32.mrb[24].mxu1 }
 0x5ec   :  { %v3078_v45 = vpop.f32.mrb[25].mxu1 }
 0x5ed   :  { %v2920_v50 = vpop.f32.mrb[22].mxu0 }
 0x5ee   :  { %v2921_v13 = vpop.f32.mrb[23].mxu0 }
 0x5ef   :  { %v2922_v28 = vadd.f32 %v2921_v13, %v2920_v50 }
 0x5f1   :  { %v2438_v36 = vadd.f32 %v2922_v28, %v2538_v39 }
 0x5f3   :  { %v2508_v47 = vadd.f32 %v2507_v40, %v2438_v36 }
 0x5f5   :  { %2511 = vmax.xlane.f32.xlu0 %v2508_v47 }
 0x682   :  { %v2512_v60 = vpop.xlane.xlu0 %2511 }
 0x683   :  { %v2513_v11 = vsub.f32 %v2508_v47, %v2512_v60 }
 0x685   :  { %v2514_v12 = vmul.f32 1.442695, %v2513_v11 }
 0x687   :  { %4125 = vpow2.f32 %v2514_v12 }
 0x691   :  { %v4126_v30 = vpop.eup %4125 }
 0x692   :  { %2516 = vadd.xlane.f32.xlu1 %v4126_v30 }
 0x71f   :  { %v2517_v62 = vpop.xlane.xlu1 %2516 }
 0x720   :  { %4127 = vlog2.f32 %v2517_v62 }
 0x72a   :  { %v4128_v19 = vpop.eup %4127 }
 0x72b   :  { %v2519_v48 = vmul.f32 0.6931472, %v4128_v19 }
 0x72d   :  { %v2520_v3 = vsub.f32 %v2513_v11, %v2519_v48 }
 0x72f   :  { %2521 = vst [vmem:[%s5757_s7] sm:$0xff] %v2520_v3 }

</bundles_post_ra>
